<compile_context>
chip_gen: v7x
topology: tpu7x:2x2x1
jax: 0.10.0
libtpu: 0.0.40
codegen_flags: <defaults>
</compile_context>

<pallas_src>
import numpy as np
import jax
import jax.numpy as jnp
from jax import lax
from jax.experimental import pallas as pl
from jax.experimental.pallas import tpu as pltpu

# Small, module-consistent shapes (embed_dim divisible by nhead).
EMBED_DIM = 32
NHEAD = 4
FF_DIM = 64
SEQ = 8
ENC_SEQ = 8
BATCH = 2
EPS = 1e-5          # nn.LayerNorm default
LANES = 128         # TPU lane width


# ----------------------------- shared elementwise helpers -----------------------------
def _layernorm(v, g, b):
    # v: (T, E); g, b: (1, E). Biased variance, eps=1e-5 -> matches nn.LayerNorm.
    mu = jnp.mean(v, axis=-1, keepdims=True)
    var = jnp.mean(jnp.square(v - mu), axis=-1, keepdims=True)
    return (v - mu) * lax.rsqrt(var + EPS) * g + b


def _gelu_exact(v):
    # nn.GELU() default: exact erf-based GELU.
    return 0.5 * v * (1.0 + lax.erf(v * jnp.float32(1.0 / np.sqrt(2.0))))


# ----------------------------- kernel-side compute helpers -----------------------------
def _linear_bf16(v, w, b):
    # bf16 MXU operands, f32 accumulation.  w is (out, in) torch convention,
    # b is (1, out) f32 added after accumulation.
    return lax.dot_general(
        v.astype(jnp.bfloat16), w.astype(jnp.bfloat16),
        (((1,), (1,)), ((), ())),
        preferred_element_type=jnp.float32) + b


def _mha_bf16(q_in, kv_in, bsz, sq, sk, w_in, b_in, w_out, b_out):
    # Mirrors nn.MultiheadAttention: packed in_proj (3E, E) + bias (1, 3E),
    # out_proj (E, E) + bias (1, E).  q_in: (bsz*sq, E), kv_in: (bsz*sk, E).
    E = q_in.shape[-1]
    dh = E // NHEAD
    scale = jnp.float32(1.0 / np.sqrt(dh))

    # Dense QKV projections on the flattened token matrices.
    q = _linear_bf16(q_in, w_in[:E, :], b_in[:, :E])             # (bsz*sq, E) f32
    k = _linear_bf16(kv_in, w_in[E:2 * E, :], b_in[:, E:2 * E])  # (bsz*sk, E)
    v = _linear_bf16(kv_in, w_in[2 * E:, :], b_in[:, 2 * E:])    # (bsz*sk, E)

    outs = []
    for b in range(bsz):  # static, tiny loop: only the (S, S) score/PV step
        qb = q[b * sq:(b + 1) * sq, :].astype(jnp.bfloat16)
        kb = k[b * sk:(b + 1) * sk, :].astype(jnp.bfloat16)
        vb = v[b * sk:(b + 1) * sk, :].astype(jnp.bfloat16)
        # (s, E) -> (H, s, dh): heads batched, no per-head loop / lane concat.
        qh = qb.reshape(sq, NHEAD, dh).transpose(1, 0, 2)
        kh = kb.reshape(sk, NHEAD, dh).transpose(1, 0, 2)
        vh = vb.reshape(sk, NHEAD, dh).transpose(1, 0, 2)

        s = jnp.einsum('hqd,hkd->hqk', qh, kh,
                       preferred_element_type=jnp.float32) * scale   # (H, sq, sk) f32
        s = s - jnp.max(s, axis=-1, keepdims=True)
        p = jnp.exp(s)
        p = p * pl.reciprocal(jnp.sum(p, axis=-1, keepdims=True), approx=True)
        o = jnp.einsum('hqk,hkd->hqd', p.astype(jnp.bfloat16), vh,
                       preferred_element_type=jnp.float32)           # (H, sq, dh) f32
        outs.append(o.transpose(1, 0, 2).reshape(sq, E))             # (sq, E)

    attn = outs[0] if bsz == 1 else jnp.concatenate(outs, axis=0)    # (bsz*sq, E)
    return _linear_bf16(attn, w_out, b_out)


# ----------------------------------- Pallas kernel -----------------------------------
def decoder_block_kernel(x_ref, enc_ref, vec_ref, w_ref, out_ref):
    Bblk, S, E = x_ref.shape
    Se = enc_ref.shape[1]
    F = FF_DIM
    T = Bblk * S

    # Flatten tokens: all dense work runs on (B*S, E).
    x = x_ref[...].astype(jnp.float32).reshape(T, E)
    enc = enc_ref[...].astype(jnp.float32).reshape(Bblk * Se, E)

    # ---- unpack the f32 vector slab (LN gains/biases + linear biases) ----
    V = vec_ref[...]                                   # (12, 128) f32
    ln1_g, ln1_b = V[0:1, :E], V[1:2, :E]
    sa_b, sa_ob = V[2:3, :3 * E], V[3:4, :E]
    ln2_g, ln2_b = V[4:5, :E], V[5:6, :E]
    ca_b, ca_ob = V[6:7, :3 * E], V[7:8, :E]
    ln3_g, ln3_b = V[8:9, :E], V[9:10, :E]
    ff_b1, ff_b2 = V[10:11, :F], V[11:12, :E]

    # ---- unpack the bf16 weight slab (static ref slices) ----
    r = 0
    sa_w = w_ref[r:r + 3 * E, :E]; r += 3 * E
    sa_ow = w_ref[r:r + E, :E]; r += E
    ca_w = w_ref[r:r + 3 * E, :E]; r += 3 * E
    ca_ow = w_ref[r:r + E, :E]; r += E
    ff_w1 = w_ref[r:r + F, :E]; r += F
    ff_w2 = w_ref[r:r + E, :F]

    # 1) self-attention block (dropout == identity)
    xn = _layernorm(x, ln1_g, ln1_b)
    x = x + _mha_bf16(xn, xn, Bblk, S, S, sa_w, sa_b, sa_ow, sa_ob)

    # 2) cross-attention block
    xn = _layernorm(x, ln2_g, ln2_b)
    x = x + _mha_bf16(xn, enc, Bblk, S, Se, ca_w, ca_b, ca_ow, ca_ob)

    # 3) feed-forward block: Linear -> GELU(exact) -> Linear
    xn = _layernorm(x, ln3_g, ln3_b)
    h = _gelu_exact(_linear_bf16(xn, ff_w1, ff_b1))
    x = x + _linear_bf16(h, ff_w2, ff_b2)

    out_ref[...] = x.reshape(Bblk, S, E).astype(out_ref.dtype)


# ----------------------------------- param packing -----------------------------------
def _pack_params(params):
    E, F = EMBED_DIM, FF_DIM

    def vrow(v):
        v = jnp.asarray(v, jnp.float32).reshape(1, -1)
        return jnp.pad(v, ((0, 0), (0, LANES - v.shape[-1])))

    vecs = jnp.concatenate([
        vrow(params["ln1_g"]), vrow(params["ln1_b"]),
        vrow(params["sa_b"]), vrow(params["sa_ob"]),
        vrow(params["ln2_g"]), vrow(params["ln2_b"]),
        vrow(params["ca_b"]), vrow(params["ca_ob"]),
        vrow(params["ln3_g"]), vrow(params["ln3_b"]),
        vrow(params["ff_b1"]), vrow(params["ff_b2"]),
    ], axis=0)                                          # (12, 128) f32

    wcols = max(E, F)

    def wpad(w):
        w = jnp.asarray(w, jnp.bfloat16)
        return jnp.pad(w, ((0, 0), (0, wcols - w.shape[-1])))

    weights = jnp.concatenate([
        wpad(params["sa_w"]), wpad(params["sa_ow"]),
        wpad(params["ca_w"]), wpad(params["ca_ow"]),
        wpad(params["ff_w1"]), wpad(params["ff_w2"]),
    ], axis=0)                                          # (8E + 2F, max(E,F)) bf16
    return vecs, weights


# ----------------------------------- wrapper -----------------------------------
def transformer_decoder_block(x, enc, params, *, grid_splits=1):
    # grid_splits=1 folds the whole batch into a single kernel invocation
    # (best on single-TensorCore v5e/v6e).  On v7x pass grid_splits=2 so the
    # 'parallel' grid axis gives each of the two TensorCores one batch element.
    B, S, E = x.shape
    Se = enc.shape[1]
    assert B % grid_splits == 0
    Bblk = B // grid_splits

    vecs, weights = _pack_params(params)

    return pl.pallas_call(
        decoder_block_kernel,
        out_shape=jax.ShapeDtypeStruct((B, S, E), x.dtype),
        grid=(grid_splits,),
        in_specs=[
            pl.BlockSpec((Bblk, S, E), lambda g: (g, 0, 0)),
            pl.BlockSpec((Bblk, Se, E), lambda g: (g, 0, 0)),
            pl.BlockSpec(vecs.shape, lambda g: (0, 0)),
            pl.BlockSpec(weights.shape, lambda g: (0, 0)),
        ],
        out_specs=pl.BlockSpec((Bblk, S, E), lambda g: (g, 0, 0)),
        compiler_params=pltpu.CompilerParams(
            dimension_semantics=("parallel",)),
    )(x, enc, vecs, weights)


# ----------------------------------- pure-JAX f32 reference -----------------------------------
def _linear_ref(v, w, b):
    return v @ w.T + b


def _mha_ref(q_in, kv_in, w_in, b_in, w_out, b_out):
    E = q_in.shape[-1]
    dh = E // NHEAD
    scale = 1.0 / np.sqrt(dh)
    q = _linear_ref(q_in, w_in[:E], b_in[:, :E])
    k = _linear_ref(kv_in, w_in[E:2 * E], b_in[:, E:2 * E])
    v = _linear_ref(kv_in, w_in[2 * E:], b_in[:, 2 * E:])
    heads = []
    for h in range(NHEAD):
        sl = slice(h * dh, (h + 1) * dh)
        s = (q[:, sl] * scale) @ k[:, sl].T
        p = jax.nn.softmax(s, axis=-1)
        heads.append(p @ v[:, sl])
    return _linear_ref(jnp.concatenate(heads, axis=-1), w_out, b_out)


def reference(x, enc, p):
    def one(xb, eb):
        xn = _layernorm(xb, p["ln1_g"], p["ln1_b"])
        xb = xb + _mha_ref(xn, xn, p["sa_w"], p["sa_b"], p["sa_ow"], p["sa_ob"])
        xn = _layernorm(xb, p["ln2_g"], p["ln2_b"])
        xb = xb + _mha_ref(xn, eb, p["ca_w"], p["ca_b"], p["ca_ow"], p["ca_ob"])
        xn = _layernorm(xb, p["ln3_g"], p["ln3_b"])
        h = _gelu_exact(_linear_ref(xn, p["ff_w1"], p["ff_b1"]))
        return xb + _linear_ref(h, p["ff_w2"], p["ff_b2"])
    return jnp.stack([one(x[b], enc[b]) for b in range(x.shape[0])], axis=0)


# ----------------------------------- driver -----------------------------------
if __name__ == "__main__":
    key = jax.random.PRNGKey(0)
    keys = jax.random.split(key, 20)
    E, F = EMBED_DIM, FF_DIM

    def nrm(k, shape, scale=0.05):
        return (scale * jax.random.normal(k, shape)).astype(jnp.float32)

    params = {
        "ln1_g": 1.0 + nrm(keys[0], (1, E)), "ln1_b": nrm(keys[1], (1, E)),
        "sa_w": nrm(keys[2], (3 * E, E)),    "sa_b": nrm(keys[3], (1, 3 * E)),
        "sa_ow": nrm(keys[4], (E, E)),       "sa_ob": nrm(keys[5], (1, E)),
        "ln2_g": 1.0 + nrm(keys[6], (1, E)), "ln2_b": nrm(keys[7], (1, E)),
        "ca_w": nrm(keys[8], (3 * E, E)),    "ca_b": nrm(keys[9], (1, 3 * E)),
        "ca_ow": nrm(keys[10], (E, E)),      "ca_ob": nrm(keys[11], (1, E)),
        "ln3_g": 1.0 + nrm(keys[12], (1, E)), "ln3_b": nrm(keys[13], (1, E)),
        "ff_w1": nrm(keys[14], (F, E)),      "ff_b1": nrm(keys[15], (1, F)),
        "ff_w2": nrm(keys[16], (E, F)),      "ff_b2": nrm(keys[17], (1, E)),
    }

    x = jax.random.normal(keys[18], (BATCH, SEQ, E), dtype=jnp.float32)
    # encoder_out given as 3-D (B, Senc, E); the 2-D branch in the PyTorch
    # forward just expands a (B, E) memory to (B, S, E) and is wrapper-side.
    enc = jax.random.normal(keys[19], (BATCH, ENC_SEQ, E), dtype=jnp.float32)

    out = transformer_decoder_block(x, enc, params)
    out = jax.block_until_ready(out)

    ref = reference(x, enc, params)
    # bf16 MXU operands with f32 accumulation -> ~1e-3 abs error vs f32 ref.
    np.testing.assert_allclose(np.asarray(out), np.asarray(ref), rtol=2e-2, atol=2e-2)
    print("KERNEL_OK")
</pallas_src>

<mosaic_0001>
module attributes {stable_mosaic.version = 11 : i64} {
  func.func @decoder_block_kernel(%arg0: i32, %arg1: memref<2x8x32xf32, #tpu.memory_space<vmem>>, %arg2: memref<2x8x32xf32, #tpu.memory_space<vmem>>, %arg3: memref<12x128xf32, #tpu.memory_space<vmem>>, %arg4: memref<352x64xbf16, #tpu.memory_space<vmem>>, %arg5: memref<2x8x32xf32, #tpu.memory_space<vmem>>) attributes {dimension_semantics = [#tpu.dimension_semantics<parallel>], iteration_bounds = array<i64: 1>, scalar_prefetch = 0 : i64, scratch_operands = 0 : i64, tpu.core_type = #tpu.core_type<tc>, window_params = [{transform_indices = @transform_0, window_bounds = array<i64: 2, 8, 32>}, {transform_indices = @transform_1, window_bounds = array<i64: 2, 8, 32>}, {pipeline_mode = #tpu.pipeline_mode<synchronous>, transform_indices = @transform_2, window_bounds = array<i64: 12, 128>}, {pipeline_mode = #tpu.pipeline_mode<synchronous>, transform_indices = @transform_3, window_bounds = array<i64: 352, 64>}, {transform_indices = @transform_4, window_bounds = array<i64: 2, 8, 32>}]} {
    %c0 = arith.constant 0 : index
    %c0_0 = arith.constant 0 : index
    %c0_1 = arith.constant 0 : index
    %0 = vector.load %arg1[%c0, %c0_0, %c0_1] : memref<2x8x32xf32, #tpu.memory_space<vmem>>, vector<2x8x32xf32>
    %1 = vector.shape_cast %0 : vector<2x8x32xf32> to vector<16x32xf32>
    %c0_2 = arith.constant 0 : index
    %c0_3 = arith.constant 0 : index
    %c0_4 = arith.constant 0 : index
    %2 = vector.load %arg2[%c0_2, %c0_3, %c0_4] : memref<2x8x32xf32, #tpu.memory_space<vmem>>, vector<2x8x32xf32>
    %3 = vector.shape_cast %2 : vector<2x8x32xf32> to vector<16x32xf32>
    %c0_5 = arith.constant 0 : index
    %c0_6 = arith.constant 0 : index
    %4 = vector.load %arg3[%c0_5, %c0_6] : memref<12x128xf32, #tpu.memory_space<vmem>>, vector<12x128xf32>
    %5 = vector.extract_strided_slice %4 {offsets = [0, 0], sizes = [1, 32], strides = [1, 1]} : vector<12x128xf32> to vector<1x32xf32>
    %6 = vector.extract_strided_slice %4 {offsets = [1, 0], sizes = [1, 32], strides = [1, 1]} : vector<12x128xf32> to vector<1x32xf32>
    %7 = vector.extract_strided_slice %4 {offsets = [2, 0], sizes = [1, 96], strides = [1, 1]} : vector<12x128xf32> to vector<1x96xf32>
    %8 = vector.extract_strided_slice %4 {offsets = [3, 0], sizes = [1, 32], strides = [1, 1]} : vector<12x128xf32> to vector<1x32xf32>
    %9 = vector.extract_strided_slice %4 {offsets = [4, 0], sizes = [1, 32], strides = [1, 1]} : vector<12x128xf32> to vector<1x32xf32>
    %10 = vector.extract_strided_slice %4 {offsets = [5, 0], sizes = [1, 32], strides = [1, 1]} : vector<12x128xf32> to vector<1x32xf32>
    %11 = vector.extract_strided_slice %4 {offsets = [6, 0], sizes = [1, 96], strides = [1, 1]} : vector<12x128xf32> to vector<1x96xf32>
    %12 = vector.extract_strided_slice %4 {offsets = [7, 0], sizes = [1, 32], strides = [1, 1]} : vector<12x128xf32> to vector<1x32xf32>
    %13 = vector.extract_strided_slice %4 {offsets = [8, 0], sizes = [1, 32], strides = [1, 1]} : vector<12x128xf32> to vector<1x32xf32>
    %14 = vector.extract_strided_slice %4 {offsets = [9, 0], sizes = [1, 32], strides = [1, 1]} : vector<12x128xf32> to vector<1x32xf32>
    %15 = vector.extract_strided_slice %4 {offsets = [10, 0], sizes = [1, 64], strides = [1, 1]} : vector<12x128xf32> to vector<1x64xf32>
    %16 = vector.extract_strided_slice %4 {offsets = [11, 0], sizes = [1, 32], strides = [1, 1]} : vector<12x128xf32> to vector<1x32xf32>
    %c0_7 = arith.constant 0 : index
    %c0_8 = arith.constant 0 : index
    %17 = vector.load %arg4[%c0_7, %c0_8] : memref<352x64xbf16, #tpu.memory_space<vmem>>, vector<96x32xbf16>
    %c96 = arith.constant 96 : index
    %c0_9 = arith.constant 0 : index
    %18 = vector.load %arg4[%c96, %c0_9] : memref<352x64xbf16, #tpu.memory_space<vmem>>, vector<32x32xbf16>
    %c128 = arith.constant 128 : index
    %c0_10 = arith.constant 0 : index
    %19 = vector.load %arg4[%c128, %c0_10] : memref<352x64xbf16, #tpu.memory_space<vmem>>, vector<96x32xbf16>
    %c224 = arith.constant 224 : index
    %c0_11 = arith.constant 0 : index
    %20 = vector.load %arg4[%c224, %c0_11] : memref<352x64xbf16, #tpu.memory_space<vmem>>, vector<32x32xbf16>
    %c256 = arith.constant 256 : index
    %c0_12 = arith.constant 0 : index
    %21 = vector.load %arg4[%c256, %c0_12] : memref<352x64xbf16, #tpu.memory_space<vmem>>, vector<64x32xbf16>
    %c320 = arith.constant 320 : index
    %c0_13 = arith.constant 0 : index
    %22 = vector.load %arg4[%c320, %c0_13] : memref<352x64xbf16, #tpu.memory_space<vmem>>, vector<32x64xbf16>
    %cst = arith.constant dense<0.000000e+00> : vector<16xf32>
    %23 = vector.multi_reduction <add>, %1, %cst [1] : vector<16x32xf32> to vector<16xf32>
    %24 = vector.shape_cast %23 : vector<16xf32> to vector<16x1xf32>
    %cst_14 = arith.constant 3.200000e+01 : f32
    %25 = vector.broadcast %cst_14 : f32 to vector<16x1xf32>
    %26 = arith.divf %24, %25 : vector<16x1xf32>
    %27 = vector.broadcast %26 : vector<16x1xf32> to vector<16x32xf32>
    %28 = arith.subf %1, %27 : vector<16x32xf32>
    %29 = arith.mulf %28, %28 : vector<16x32xf32>
    %cst_15 = arith.constant dense<0.000000e+00> : vector<16xf32>
    %30 = vector.multi_reduction <add>, %29, %cst_15 [1] : vector<16x32xf32> to vector<16xf32>
    %31 = vector.shape_cast %30 : vector<16xf32> to vector<16x1xf32>
    %cst_16 = arith.constant 3.200000e+01 : f32
    %32 = vector.broadcast %cst_16 : f32 to vector<16x1xf32>
    %33 = arith.divf %31, %32 : vector<16x1xf32>
    %34 = vector.broadcast %26 : vector<16x1xf32> to vector<16x32xf32>
    %35 = arith.subf %1, %34 : vector<16x32xf32>
    %cst_17 = arith.constant 9.99999974E-6 : f32
    %36 = vector.broadcast %cst_17 : f32 to vector<16x1xf32>
    %37 = arith.addf %33, %36 : vector<16x1xf32>
    %38 = math.rsqrt %37 : vector<16x1xf32>
    %39 = vector.broadcast %38 : vector<16x1xf32> to vector<16x32xf32>
    %40 = arith.mulf %35, %39 : vector<16x32xf32>
    %41 = vector.broadcast %5 : vector<1x32xf32> to vector<16x32xf32>
    %42 = arith.mulf %40, %41 : vector<16x32xf32>
    %43 = vector.broadcast %6 : vector<1x32xf32> to vector<16x32xf32>
    %44 = arith.addf %42, %43 : vector<16x32xf32>
    %45 = vector.extract_strided_slice %17 {offsets = [0, 0], sizes = [32, 32], strides = [1, 1]} : vector<96x32xbf16> to vector<32x32xbf16>
    %46 = vector.extract_strided_slice %7 {offsets = [0, 0], sizes = [1, 32], strides = [1, 1]} : vector<1x96xf32> to vector<1x32xf32>
    %47 = arith.truncf %44 : vector<16x32xf32> to vector<16x32xbf16>
    %cst_18 = arith.constant dense<0.000000e+00> : vector<16x32xf32>
    %48 = tpu.matmul %47, %45, %cst_18 {dimension_numbers = #tpu.dot_dimension_numbers<[1], [1], [0], [0], [0, 0, 1, 0], [], []>} : vector<16x32xbf16>, vector<32x32xbf16>, vector<16x32xf32> -> vector<16x32xf32>
    %49 = vector.broadcast %46 : vector<1x32xf32> to vector<16x32xf32>
    %50 = arith.addf %48, %49 : vector<16x32xf32>
    %51 = vector.extract_strided_slice %17 {offsets = [32, 0], sizes = [32, 32], strides = [1, 1]} : vector<96x32xbf16> to vector<32x32xbf16>
    %52 = vector.extract_strided_slice %7 {offsets = [0, 32], sizes = [1, 32], strides = [1, 1]} : vector<1x96xf32> to vector<1x32xf32>
    %53 = arith.truncf %44 : vector<16x32xf32> to vector<16x32xbf16>
    %cst_19 = arith.constant dense<0.000000e+00> : vector<16x32xf32>
    %54 = tpu.matmul %53, %51, %cst_19 {dimension_numbers = #tpu.dot_dimension_numbers<[1], [1], [0], [0], [0, 0, 1, 0], [], []>} : vector<16x32xbf16>, vector<32x32xbf16>, vector<16x32xf32> -> vector<16x32xf32>
    %55 = vector.broadcast %52 : vector<1x32xf32> to vector<16x32xf32>
    %56 = arith.addf %54, %55 : vector<16x32xf32>
    %57 = vector.extract_strided_slice %17 {offsets = [64, 0], sizes = [32, 32], strides = [1, 1]} : vector<96x32xbf16> to vector<32x32xbf16>
    %58 = vector.extract_strided_slice %7 {offsets = [0, 64], sizes = [1, 32], strides = [1, 1]} : vector<1x96xf32> to vector<1x32xf32>
    %59 = arith.truncf %44 : vector<16x32xf32> to vector<16x32xbf16>
    %cst_20 = arith.constant dense<0.000000e+00> : vector<16x32xf32>
    %60 = tpu.matmul %59, %57, %cst_20 {dimension_numbers = #tpu.dot_dimension_numbers<[1], [1], [0], [0], [0, 0, 1, 0], [], []>} : vector<16x32xbf16>, vector<32x32xbf16>, vector<16x32xf32> -> vector<16x32xf32>
    %61 = vector.broadcast %58 : vector<1x32xf32> to vector<16x32xf32>
    %62 = arith.addf %60, %61 : vector<16x32xf32>
    %63 = vector.extract_strided_slice %50 {offsets = [0, 0], sizes = [8, 32], strides = [1, 1]} : vector<16x32xf32> to vector<8x32xf32>
    %64 = arith.truncf %63 : vector<8x32xf32> to vector<8x32xbf16>
    %65 = vector.extract_strided_slice %56 {offsets = [0, 0], sizes = [8, 32], strides = [1, 1]} : vector<16x32xf32> to vector<8x32xf32>
    %66 = arith.truncf %65 : vector<8x32xf32> to vector<8x32xbf16>
    %67 = vector.extract_strided_slice %62 {offsets = [0, 0], sizes = [8, 32], strides = [1, 1]} : vector<16x32xf32> to vector<8x32xf32>
    %68 = arith.truncf %67 : vector<8x32xf32> to vector<8x32xbf16>
    %69 = vector.shape_cast %64 : vector<8x32xbf16> to vector<8x4x8xbf16>
    %70 = tpu.transpose %69, [1, 0, 2] : vector<8x4x8xbf16> -> vector<4x8x8xbf16>
    %71 = vector.shape_cast %66 : vector<8x32xbf16> to vector<8x4x8xbf16>
    %72 = tpu.transpose %71, [1, 0, 2] : vector<8x4x8xbf16> -> vector<4x8x8xbf16>
    %73 = vector.shape_cast %68 : vector<8x32xbf16> to vector<8x4x8xbf16>
    %74 = tpu.transpose %73, [1, 0, 2] : vector<8x4x8xbf16> -> vector<4x8x8xbf16>
    "tpu.trace_start"() <{level = 10 : i32, message = "hqd,hkd->hqk"}> : () -> ()
    %cst_21 = arith.constant dense<0.000000e+00> : vector<4x8x8xf32>
    %75 = tpu.matmul %70, %72, %cst_21 {dimension_numbers = #tpu.dot_dimension_numbers<[2], [2], [1], [1], [0, 0, 0, 1, 1, 1], [0], [0]>} : vector<4x8x8xbf16>, vector<4x8x8xbf16>, vector<4x8x8xf32> -> vector<4x8x8xf32>
    "tpu.trace_stop"() : () -> ()
    %cst_22 = arith.constant 0.353553385 : f32
    %76 = vector.broadcast %cst_22 : f32 to vector<4x8x8xf32>
    %77 = arith.mulf %75, %76 : vector<4x8x8xf32>
    %cst_23 = arith.constant dense<0xFF800000> : vector<4x8xf32>
    %78 = vector.multi_reduction <maximumf>, %77, %cst_23 [2] : vector<4x8x8xf32> to vector<4x8xf32>
    %79 = vector.shape_cast %78 : vector<4x8xf32> to vector<4x8x1xf32>
    %80 = vector.broadcast %79 : vector<4x8x1xf32> to vector<4x8x8xf32>
    %81 = arith.subf %77, %80 : vector<4x8x8xf32>
    %82 = math.exp %81 : vector<4x8x8xf32>
    %cst_24 = arith.constant dense<0.000000e+00> : vector<4x8xf32>
    %83 = vector.multi_reduction <add>, %82, %cst_24 [2] : vector<4x8x8xf32> to vector<4x8xf32>
    %84 = vector.shape_cast %83 : vector<4x8xf32> to vector<4x8x1xf32>
    %85 = tpu.reciprocal %84 {approx = true} : vector<4x8x1xf32> -> vector<4x8x1xf32>
    %86 = vector.broadcast %85 : vector<4x8x1xf32> to vector<4x8x8xf32>
    %87 = arith.mulf %82, %86 : vector<4x8x8xf32>
    %88 = arith.truncf %87 : vector<4x8x8xf32> to vector<4x8x8xbf16>
    "tpu.trace_start"() <{level = 10 : i32, message = "hqk,hkd->hqd"}> : () -> ()
    %cst_25 = arith.constant dense<0.000000e+00> : vector<4x8x8xf32>
    %89 = tpu.matmul %88, %74, %cst_25 {dimension_numbers = #tpu.dot_dimension_numbers<[2], [1], [1], [2], [0, 0, 0, 1, 1, 2], [0], [0]>} : vector<4x8x8xbf16>, vector<4x8x8xbf16>, vector<4x8x8xf32> -> vector<4x8x8xf32>
    "tpu.trace_stop"() : () -> ()
    %90 = tpu.transpose %89, [1, 0, 2] : vector<4x8x8xf32> -> vector<8x4x8xf32>
    %91 = vector.shape_cast %90 : vector<8x4x8xf32> to vector<8x32xf32>
    %92 = vector.extract_strided_slice %50 {offsets = [8, 0], sizes = [8, 32], strides = [1, 1]} : vector<16x32xf32> to vector<8x32xf32>
    %93 = arith.truncf %92 : vector<8x32xf32> to vector<8x32xbf16>
    %94 = vector.extract_strided_slice %56 {offsets = [8, 0], sizes = [8, 32], strides = [1, 1]} : vector<16x32xf32> to vector<8x32xf32>
    %95 = arith.truncf %94 : vector<8x32xf32> to vector<8x32xbf16>
    %96 = vector.extract_strided_slice %62 {offsets = [8, 0], sizes = [8, 32], strides = [1, 1]} : vector<16x32xf32> to vector<8x32xf32>
    %97 = arith.truncf %96 : vector<8x32xf32> to vector<8x32xbf16>
    %98 = vector.shape_cast %93 : vector<8x32xbf16> to vector<8x4x8xbf16>
    %99 = tpu.transpose %98, [1, 0, 2] : vector<8x4x8xbf16> -> vector<4x8x8xbf16>
    %100 = vector.shape_cast %95 : vector<8x32xbf16> to vector<8x4x8xbf16>
    %101 = tpu.transpose %100, [1, 0, 2] : vector<8x4x8xbf16> -> vector<4x8x8xbf16>
    %102 = vector.shape_cast %97 : vector<8x32xbf16> to vector<8x4x8xbf16>
    %103 = tpu.transpose %102, [1, 0, 2] : vector<8x4x8xbf16> -> vector<4x8x8xbf16>
    "tpu.trace_start"() <{level = 10 : i32, message = "hqd,hkd->hqk"}> : () -> ()
    %cst_26 = arith.constant dense<0.000000e+00> : vector<4x8x8xf32>
    %104 = tpu.matmul %99, %101, %cst_26 {dimension_numbers = #tpu.dot_dimension_numbers<[2], [2], [1], [1], [0, 0, 0, 1, 1, 1], [0], [0]>} : vector<4x8x8xbf16>, vector<4x8x8xbf16>, vector<4x8x8xf32> -> vector<4x8x8xf32>
    "tpu.trace_stop"() : () -> ()
    %cst_27 = arith.constant 0.353553385 : f32
    %105 = vector.broadcast %cst_27 : f32 to vector<4x8x8xf32>
    %106 = arith.mulf %104, %105 : vector<4x8x8xf32>
    %cst_28 = arith.constant dense<0xFF800000> : vector<4x8xf32>
    %107 = vector.multi_reduction <maximumf>, %106, %cst_28 [2] : vector<4x8x8xf32> to vector<4x8xf32>
    %108 = vector.shape_cast %107 : vector<4x8xf32> to vector<4x8x1xf32>
    %109 = vector.broadcast %108 : vector<4x8x1xf32> to vector<4x8x8xf32>
    %110 = arith.subf %106, %109 : vector<4x8x8xf32>
    %111 = math.exp %110 : vector<4x8x8xf32>
    %cst_29 = arith.constant dense<0.000000e+00> : vector<4x8xf32>
    %112 = vector.multi_reduction <add>, %111, %cst_29 [2] : vector<4x8x8xf32> to vector<4x8xf32>
    %113 = vector.shape_cast %112 : vector<4x8xf32> to vector<4x8x1xf32>
    %114 = tpu.reciprocal %113 {approx = true} : vector<4x8x1xf32> -> vector<4x8x1xf32>
    %115 = vector.broadcast %114 : vector<4x8x1xf32> to vector<4x8x8xf32>
    %116 = arith.mulf %111, %115 : vector<4x8x8xf32>
    %117 = arith.truncf %116 : vector<4x8x8xf32> to vector<4x8x8xbf16>
    "tpu.trace_start"() <{level = 10 : i32, message = "hqk,hkd->hqd"}> : () -> ()
    %cst_30 = arith.constant dense<0.000000e+00> : vector<4x8x8xf32>
    %118 = tpu.matmul %117, %103, %cst_30 {dimension_numbers = #tpu.dot_dimension_numbers<[2], [1], [1], [2], [0, 0, 0, 1, 1, 2], [0], [0]>} : vector<4x8x8xbf16>, vector<4x8x8xbf16>, vector<4x8x8xf32> -> vector<4x8x8xf32>
    "tpu.trace_stop"() : () -> ()
    %119 = tpu.transpose %118, [1, 0, 2] : vector<4x8x8xf32> -> vector<8x4x8xf32>
    %120 = vector.shape_cast %119 : vector<8x4x8xf32> to vector<8x32xf32>
    %121 = tpu.concatenate %91, %120 in 0 : vector<8x32xf32>, vector<8x32xf32> -> vector<16x32xf32>
    %122 = arith.truncf %121 : vector<16x32xf32> to vector<16x32xbf16>
    %cst_31 = arith.constant dense<0.000000e+00> : vector<16x32xf32>
    %123 = tpu.matmul %122, %18, %cst_31 {dimension_numbers = #tpu.dot_dimension_numbers<[1], [1], [0], [0], [0, 0, 1, 0], [], []>} : vector<16x32xbf16>, vector<32x32xbf16>, vector<16x32xf32> -> vector<16x32xf32>
    %124 = vector.broadcast %8 : vector<1x32xf32> to vector<16x32xf32>
    %125 = arith.addf %123, %124 : vector<16x32xf32>
    %126 = arith.addf %1, %125 : vector<16x32xf32>
    %cst_32 = arith.constant dense<0.000000e+00> : vector<16xf32>
    %127 = vector.multi_reduction <add>, %126, %cst_32 [1] : vector<16x32xf32> to vector<16xf32>
    %128 = vector.shape_cast %127 : vector<16xf32> to vector<16x1xf32>
    %cst_33 = arith.constant 3.200000e+01 : f32
    %129 = vector.broadcast %cst_33 : f32 to vector<16x1xf32>
    %130 = arith.divf %128, %129 : vector<16x1xf32>
    %131 = vector.broadcast %130 : vector<16x1xf32> to vector<16x32xf32>
    %132 = arith.subf %126, %131 : vector<16x32xf32>
    %133 = arith.mulf %132, %132 : vector<16x32xf32>
    %cst_34 = arith.constant dense<0.000000e+00> : vector<16xf32>
    %134 = vector.multi_reduction <add>, %133, %cst_34 [1] : vector<16x32xf32> to vector<16xf32>
    %135 = vector.shape_cast %134 : vector<16xf32> to vector<16x1xf32>
    %cst_35 = arith.constant 3.200000e+01 : f32
    %136 = vector.broadcast %cst_35 : f32 to vector<16x1xf32>
    %137 = arith.divf %135, %136 : vector<16x1xf32>
    %138 = vector.broadcast %130 : vector<16x1xf32> to vector<16x32xf32>
    %139 = arith.subf %126, %138 : vector<16x32xf32>
    %cst_36 = arith.constant 9.99999974E-6 : f32
    %140 = vector.broadcast %cst_36 : f32 to vector<16x1xf32>
    %141 = arith.addf %137, %140 : vector<16x1xf32>
    %142 = math.rsqrt %141 : vector<16x1xf32>
    %143 = vector.broadcast %142 : vector<16x1xf32> to vector<16x32xf32>
    %144 = arith.mulf %139, %143 : vector<16x32xf32>
    %145 = vector.broadcast %9 : vector<1x32xf32> to vector<16x32xf32>
    %146 = arith.mulf %144, %145 : vector<16x32xf32>
    %147 = vector.broadcast %10 : vector<1x32xf32> to vector<16x32xf32>
    %148 = arith.addf %146, %147 : vector<16x32xf32>
    %149 = vector.extract_strided_slice %19 {offsets = [0, 0], sizes = [32, 32], strides = [1, 1]} : vector<96x32xbf16> to vector<32x32xbf16>
    %150 = vector.extract_strided_slice %11 {offsets = [0, 0], sizes = [1, 32], strides = [1, 1]} : vector<1x96xf32> to vector<1x32xf32>
    %151 = arith.truncf %148 : vector<16x32xf32> to vector<16x32xbf16>
    %cst_37 = arith.constant dense<0.000000e+00> : vector<16x32xf32>
    %152 = tpu.matmul %151, %149, %cst_37 {dimension_numbers = #tpu.dot_dimension_numbers<[1], [1], [0], [0], [0, 0, 1, 0], [], []>} : vector<16x32xbf16>, vector<32x32xbf16>, vector<16x32xf32> -> vector<16x32xf32>
    %153 = vector.broadcast %150 : vector<1x32xf32> to vector<16x32xf32>
    %154 = arith.addf %152, %153 : vector<16x32xf32>
    %155 = vector.extract_strided_slice %19 {offsets = [32, 0], sizes = [32, 32], strides = [1, 1]} : vector<96x32xbf16> to vector<32x32xbf16>
    %156 = vector.extract_strided_slice %11 {offsets = [0, 32], sizes = [1, 32], strides = [1, 1]} : vector<1x96xf32> to vector<1x32xf32>
    %157 = arith.truncf %3 : vector<16x32xf32> to vector<16x32xbf16>
    %cst_38 = arith.constant dense<0.000000e+00> : vector<16x32xf32>
    %158 = tpu.matmul %157, %155, %cst_38 {dimension_numbers = #tpu.dot_dimension_numbers<[1], [1], [0], [0], [0, 0, 1, 0], [], []>} : vector<16x32xbf16>, vector<32x32xbf16>, vector<16x32xf32> -> vector<16x32xf32>
    %159 = vector.broadcast %156 : vector<1x32xf32> to vector<16x32xf32>
    %160 = arith.addf %158, %159 : vector<16x32xf32>
    %161 = vector.extract_strided_slice %19 {offsets = [64, 0], sizes = [32, 32], strides = [1, 1]} : vector<96x32xbf16> to vector<32x32xbf16>
    %162 = vector.extract_strided_slice %11 {offsets = [0, 64], sizes = [1, 32], strides = [1, 1]} : vector<1x96xf32> to vector<1x32xf32>
    %163 = arith.truncf %3 : vector<16x32xf32> to vector<16x32xbf16>
    %cst_39 = arith.constant dense<0.000000e+00> : vector<16x32xf32>
    %164 = tpu.matmul %163, %161, %cst_39 {dimension_numbers = #tpu.dot_dimension_numbers<[1], [1], [0], [0], [0, 0, 1, 0], [], []>} : vector<16x32xbf16>, vector<32x32xbf16>, vector<16x32xf32> -> vector<16x32xf32>
    %165 = vector.broadcast %162 : vector<1x32xf32> to vector<16x32xf32>
    %166 = arith.addf %164, %165 : vector<16x32xf32>
    %167 = vector.extract_strided_slice %154 {offsets = [0, 0], sizes = [8, 32], strides = [1, 1]} : vector<16x32xf32> to vector<8x32xf32>
    %168 = arith.truncf %167 : vector<8x32xf32> to vector<8x32xbf16>
    %169 = vector.extract_strided_slice %160 {offsets = [0, 0], sizes = [8, 32], strides = [1, 1]} : vector<16x32xf32> to vector<8x32xf32>
    %170 = arith.truncf %169 : vector<8x32xf32> to vector<8x32xbf16>
    %171 = vector.extract_strided_slice %166 {offsets = [0, 0], sizes = [8, 32], strides = [1, 1]} : vector<16x32xf32> to vector<8x32xf32>
    %172 = arith.truncf %171 : vector<8x32xf32> to vector<8x32xbf16>
    %173 = vector.shape_cast %168 : vector<8x32xbf16> to vector<8x4x8xbf16>
    %174 = tpu.transpose %173, [1, 0, 2] : vector<8x4x8xbf16> -> vector<4x8x8xbf16>
    %175 = vector.shape_cast %170 : vector<8x32xbf16> to vector<8x4x8xbf16>
    %176 = tpu.transpose %175, [1, 0, 2] : vector<8x4x8xbf16> -> vector<4x8x8xbf16>
    %177 = vector.shape_cast %172 : vector<8x32xbf16> to vector<8x4x8xbf16>
    %178 = tpu.transpose %177, [1, 0, 2] : vector<8x4x8xbf16> -> vector<4x8x8xbf16>
    "tpu.trace_start"() <{level = 10 : i32, message = "hqd,hkd->hqk"}> : () -> ()
    %cst_40 = arith.constant dense<0.000000e+00> : vector<4x8x8xf32>
    %179 = tpu.matmul %174, %176, %cst_40 {dimension_numbers = #tpu.dot_dimension_numbers<[2], [2], [1], [1], [0, 0, 0, 1, 1, 1], [0], [0]>} : vector<4x8x8xbf16>, vector<4x8x8xbf16>, vector<4x8x8xf32> -> vector<4x8x8xf32>
    "tpu.trace_stop"() : () -> ()
    %cst_41 = arith.constant 0.353553385 : f32
    %180 = vector.broadcast %cst_41 : f32 to vector<4x8x8xf32>
    %181 = arith.mulf %179, %180 : vector<4x8x8xf32>
    %cst_42 = arith.constant dense<0xFF800000> : vector<4x8xf32>
    %182 = vector.multi_reduction <maximumf>, %181, %cst_42 [2] : vector<4x8x8xf32> to vector<4x8xf32>
    %183 = vector.shape_cast %182 : vector<4x8xf32> to vector<4x8x1xf32>
    %184 = vector.broadcast %183 : vector<4x8x1xf32> to vector<4x8x8xf32>
    %185 = arith.subf %181, %184 : vector<4x8x8xf32>
    %186 = math.exp %185 : vector<4x8x8xf32>
    %cst_43 = arith.constant dense<0.000000e+00> : vector<4x8xf32>
    %187 = vector.multi_reduction <add>, %186, %cst_43 [2] : vector<4x8x8xf32> to vector<4x8xf32>
    %188 = vector.shape_cast %187 : vector<4x8xf32> to vector<4x8x1xf32>
    %189 = tpu.reciprocal %188 {approx = true} : vector<4x8x1xf32> -> vector<4x8x1xf32>
    %190 = vector.broadcast %189 : vector<4x8x1xf32> to vector<4x8x8xf32>
    %191 = arith.mulf %186, %190 : vector<4x8x8xf32>
    %192 = arith.truncf %191 : vector<4x8x8xf32> to vector<4x8x8xbf16>
    "tpu.trace_start"() <{level = 10 : i32, message = "hqk,hkd->hqd"}> : () -> ()
    %cst_44 = arith.constant dense<0.000000e+00> : vector<4x8x8xf32>
    %193 = tpu.matmul %192, %178, %cst_44 {dimension_numbers = #tpu.dot_dimension_numbers<[2], [1], [1], [2], [0, 0, 0, 1, 1, 2], [0], [0]>} : vector<4x8x8xbf16>, vector<4x8x8xbf16>, vector<4x8x8xf32> -> vector<4x8x8xf32>
    "tpu.trace_stop"() : () -> ()
    %194 = tpu.transpose %193, [1, 0, 2] : vector<4x8x8xf32> -> vector<8x4x8xf32>
    %195 = vector.shape_cast %194 : vector<8x4x8xf32> to vector<8x32xf32>
    %196 = vector.extract_strided_slice %154 {offsets = [8, 0], sizes = [8, 32], strides = [1, 1]} : vector<16x32xf32> to vector<8x32xf32>
    %197 = arith.truncf %196 : vector<8x32xf32> to vector<8x32xbf16>
    %198 = vector.extract_strided_slice %160 {offsets = [8, 0], sizes = [8, 32], strides = [1, 1]} : vector<16x32xf32> to vector<8x32xf32>
    %199 = arith.truncf %198 : vector<8x32xf32> to vector<8x32xbf16>
    %200 = vector.extract_strided_slice %166 {offsets = [8, 0], sizes = [8, 32], strides = [1, 1]} : vector<16x32xf32> to vector<8x32xf32>
    %201 = arith.truncf %200 : vector<8x32xf32> to vector<8x32xbf16>
    %202 = vector.shape_cast %197 : vector<8x32xbf16> to vector<8x4x8xbf16>
    %203 = tpu.transpose %202, [1, 0, 2] : vector<8x4x8xbf16> -> vector<4x8x8xbf16>
    %204 = vector.shape_cast %199 : vector<8x32xbf16> to vector<8x4x8xbf16>
    %205 = tpu.transpose %204, [1, 0, 2] : vector<8x4x8xbf16> -> vector<4x8x8xbf16>
    %206 = vector.shape_cast %201 : vector<8x32xbf16> to vector<8x4x8xbf16>
    %207 = tpu.transpose %206, [1, 0, 2] : vector<8x4x8xbf16> -> vector<4x8x8xbf16>
    "tpu.trace_start"() <{level = 10 : i32, message = "hqd,hkd->hqk"}> : () -> ()
    %cst_45 = arith.constant dense<0.000000e+00> : vector<4x8x8xf32>
    %208 = tpu.matmul %203, %205, %cst_45 {dimension_numbers = #tpu.dot_dimension_numbers<[2], [2], [1], [1], [0, 0, 0, 1, 1, 1], [0], [0]>} : vector<4x8x8xbf16>, vector<4x8x8xbf16>, vector<4x8x8xf32> -> vector<4x8x8xf32>
    "tpu.trace_stop"() : () -> ()
    %cst_46 = arith.constant 0.353553385 : f32
    %209 = vector.broadcast %cst_46 : f32 to vector<4x8x8xf32>
    %210 = arith.mulf %208, %209 : vector<4x8x8xf32>
    %cst_47 = arith.constant dense<0xFF800000> : vector<4x8xf32>
    %211 = vector.multi_reduction <maximumf>, %210, %cst_47 [2] : vector<4x8x8xf32> to vector<4x8xf32>
    %212 = vector.shape_cast %211 : vector<4x8xf32> to vector<4x8x1xf32>
    %213 = vector.broadcast %212 : vector<4x8x1xf32> to vector<4x8x8xf32>
    %214 = arith.subf %210, %213 : vector<4x8x8xf32>
    %215 = math.exp %214 : vector<4x8x8xf32>
    %cst_48 = arith.constant dense<0.000000e+00> : vector<4x8xf32>
    %216 = vector.multi_reduction <add>, %215, %cst_48 [2] : vector<4x8x8xf32> to vector<4x8xf32>
    %217 = vector.shape_cast %216 : vector<4x8xf32> to vector<4x8x1xf32>
    %218 = tpu.reciprocal %217 {approx = true} : vector<4x8x1xf32> -> vector<4x8x1xf32>
    %219 = vector.broadcast %218 : vector<4x8x1xf32> to vector<4x8x8xf32>
    %220 = arith.mulf %215, %219 : vector<4x8x8xf32>
    %221 = arith.truncf %220 : vector<4x8x8xf32> to vector<4x8x8xbf16>
    "tpu.trace_start"() <{level = 10 : i32, message = "hqk,hkd->hqd"}> : () -> ()
    %cst_49 = arith.constant dense<0.000000e+00> : vector<4x8x8xf32>
    %222 = tpu.matmul %221, %207, %cst_49 {dimension_numbers = #tpu.dot_dimension_numbers<[2], [1], [1], [2], [0, 0, 0, 1, 1, 2], [0], [0]>} : vector<4x8x8xbf16>, vector<4x8x8xbf16>, vector<4x8x8xf32> -> vector<4x8x8xf32>
    "tpu.trace_stop"() : () -> ()
    %223 = tpu.transpose %222, [1, 0, 2] : vector<4x8x8xf32> -> vector<8x4x8xf32>
    %224 = vector.shape_cast %223 : vector<8x4x8xf32> to vector<8x32xf32>
    %225 = tpu.concatenate %195, %224 in 0 : vector<8x32xf32>, vector<8x32xf32> -> vector<16x32xf32>
    %226 = arith.truncf %225 : vector<16x32xf32> to vector<16x32xbf16>
    %cst_50 = arith.constant dense<0.000000e+00> : vector<16x32xf32>
    %227 = tpu.matmul %226, %20, %cst_50 {dimension_numbers = #tpu.dot_dimension_numbers<[1], [1], [0], [0], [0, 0, 1, 0], [], []>} : vector<16x32xbf16>, vector<32x32xbf16>, vector<16x32xf32> -> vector<16x32xf32>
    %228 = vector.broadcast %12 : vector<1x32xf32> to vector<16x32xf32>
    %229 = arith.addf %227, %228 : vector<16x32xf32>
    %230 = arith.addf %126, %229 : vector<16x32xf32>
    %cst_51 = arith.constant dense<0.000000e+00> : vector<16xf32>
    %231 = vector.multi_reduction <add>, %230, %cst_51 [1] : vector<16x32xf32> to vector<16xf32>
    %232 = vector.shape_cast %231 : vector<16xf32> to vector<16x1xf32>
    %cst_52 = arith.constant 3.200000e+01 : f32
    %233 = vector.broadcast %cst_52 : f32 to vector<16x1xf32>
    %234 = arith.divf %232, %233 : vector<16x1xf32>
    %235 = vector.broadcast %234 : vector<16x1xf32> to vector<16x32xf32>
    %236 = arith.subf %230, %235 : vector<16x32xf32>
    %237 = arith.mulf %236, %236 : vector<16x32xf32>
    %cst_53 = arith.constant dense<0.000000e+00> : vector<16xf32>
    %238 = vector.multi_reduction <add>, %237, %cst_53 [1] : vector<16x32xf32> to vector<16xf32>
    %239 = vector.shape_cast %238 : vector<16xf32> to vector<16x1xf32>
    %cst_54 = arith.constant 3.200000e+01 : f32
    %240 = vector.broadcast %cst_54 : f32 to vector<16x1xf32>
    %241 = arith.divf %239, %240 : vector<16x1xf32>
    %242 = vector.broadcast %234 : vector<16x1xf32> to vector<16x32xf32>
    %243 = arith.subf %230, %242 : vector<16x32xf32>
    %cst_55 = arith.constant 9.99999974E-6 : f32
    %244 = vector.broadcast %cst_55 : f32 to vector<16x1xf32>
    %245 = arith.addf %241, %244 : vector<16x1xf32>
    %246 = math.rsqrt %245 : vector<16x1xf32>
    %247 = vector.broadcast %246 : vector<16x1xf32> to vector<16x32xf32>
    %248 = arith.mulf %243, %247 : vector<16x32xf32>
    %249 = vector.broadcast %13 : vector<1x32xf32> to vector<16x32xf32>
    %250 = arith.mulf %248, %249 : vector<16x32xf32>
    %251 = vector.broadcast %14 : vector<1x32xf32> to vector<16x32xf32>
    %252 = arith.addf %250, %251 : vector<16x32xf32>
    %253 = arith.truncf %252 : vector<16x32xf32> to vector<16x32xbf16>
    %cst_56 = arith.constant dense<0.000000e+00> : vector<16x64xf32>
    %254 = tpu.matmul %253, %21, %cst_56 {dimension_numbers = #tpu.dot_dimension_numbers<[1], [1], [0], [0], [0, 0, 1, 0], [], []>} : vector<16x32xbf16>, vector<64x32xbf16>, vector<16x64xf32> -> vector<16x64xf32>
    %255 = vector.broadcast %15 : vector<1x64xf32> to vector<16x64xf32>
    %256 = arith.addf %254, %255 : vector<16x64xf32>
    %cst_57 = arith.constant 5.000000e-01 : f32
    %257 = vector.broadcast %cst_57 : f32 to vector<16x64xf32>
    %258 = arith.mulf %257, %256 : vector<16x64xf32>
    %cst_58 = arith.constant 0.707106769 : f32
    %259 = vector.broadcast %cst_58 : f32 to vector<16x64xf32>
    %260 = arith.mulf %256, %259 : vector<16x64xf32>
    %261 = math.erf %260 : vector<16x64xf32>
    %cst_59 = arith.constant 1.000000e+00 : f32
    %262 = vector.broadcast %cst_59 : f32 to vector<16x64xf32>
    %263 = arith.addf %262, %261 : vector<16x64xf32>
    %264 = arith.mulf %258, %263 : vector<16x64xf32>
    %265 = arith.truncf %264 : vector<16x64xf32> to vector<16x64xbf16>
    %cst_60 = arith.constant dense<0.000000e+00> : vector<16x32xf32>
    %266 = tpu.matmul %265, %22, %cst_60 {dimension_numbers = #tpu.dot_dimension_numbers<[1], [1], [0], [0], [0, 0, 1, 0], [], []>} : vector<16x64xbf16>, vector<32x64xbf16>, vector<16x32xf32> -> vector<16x32xf32>
    %267 = vector.broadcast %16 : vector<1x32xf32> to vector<16x32xf32>
    %268 = arith.addf %266, %267 : vector<16x32xf32>
    %269 = arith.addf %230, %268 : vector<16x32xf32>
    %270 = vector.shape_cast %269 : vector<16x32xf32> to vector<2x8x32xf32>
    %c0_61 = arith.constant 0 : index
    %c0_62 = arith.constant 0 : index
    %c0_63 = arith.constant 0 : index
    %271 = vector.load %arg5[%c0_61, %c0_62, %c0_63] : memref<2x8x32xf32, #tpu.memory_space<vmem>>, vector<2x8x32xf32>
    tpu.vector_store %arg5[%c0_61, %c0_62, %c0_63], %270 {strides = array<i32>} : memref<2x8x32xf32, #tpu.memory_space<vmem>>, vector<2x8x32xf32>,
    return
  }
  func.func @transform_0(%arg0: i32) -> (i32, i32, i32) {
    %c0_i32 = arith.constant 0 : i32
    %c0_i32_0 = arith.constant 0 : i32
    %c0_i32_1 = arith.constant 0 : i32
    return %arg0, %c0_i32, %c0_i32_0 : i32, i32, i32
  }
  func.func @transform_1(%arg0: i32) -> (i32, i32, i32) {
    %c0_i32 = arith.constant 0 : i32
    %c0_i32_0 = arith.constant 0 : i32
    %c0_i32_1 = arith.constant 0 : i32
    return %arg0, %c0_i32, %c0_i32_0 : i32, i32, i32
  }
  func.func @transform_2(%arg0: i32) -> (i32, i32) {
    %c0_i32 = arith.constant 0 : i32
    %c0_i32_0 = arith.constant 0 : i32
    %c0_i32_1 = arith.constant 0 : i32
    return %c0_i32, %c0_i32_0 : i32, i32
  }
  func.func @transform_3(%arg0: i32) -> (i32, i32) {
    %c0_i32 = arith.constant 0 : i32
    %c0_i32_0 = arith.constant 0 : i32
    %c0_i32_1 = arith.constant 0 : i32
    return %c0_i32, %c0_i32_0 : i32, i32
  }
  func.func @transform_4(%arg0: i32) -> (i32, i32, i32) {
    %c0_i32 = arith.constant 0 : i32
    %c0_i32_0 = arith.constant 0 : i32
    %c0_i32_1 = arith.constant 0 : i32
    return %arg0, %c0_i32, %c0_i32_0 : i32, i32, i32
  }
}

</mosaic_0001>

<bundles_post_ra>
// kernel: tpu_custom_call.1
= control target key start
LH: loop header
LB: loop body
LE: loop exit
PB: predicated region body
PF: predicated region fallthrough
CT: control target
= control target key end

     0   :  { %vm69_vm0 = vcmask 261120   ;;  %s6896_s0 = inlined_call_operand.vmem [shape: f32[2,8,32], index: 0, kind: input, shape index: {}]   ;;  %s6897_s1 = inlined_call_operand.vmem [shape: f32[2,8,32], index: 1, kind: input, shape index: {}]   ;;  %s6898_s2 = inlined_call_operand.vmem [shape: f32[12,128], index: 2, kind: input, shape index: {}]   ;;  %s6899_s3 = inlined_call_operand.vmem [shape: bf16[352,64], index: 3, kind: input, shape index: {}]   ;;  %s6900_s4 = inlined_call_operand.hbm [shape: f32[2,8,32], index: 4, kind: output, shape index: {}]  }
   0x1   :  { %v19_v0 = vld [vmem:[%s6896_s0] sm:$0xff]  ;;  %v20_v1 = vld [vmem:[%s6896_s0 + $0x8] sm:$0xff] }
   0x2   :  { %v70_v2 = vsel %vm69_vm0, %v19_v0, 0.0  ;;  %v73_v3 = vsel %vm69_vm0, %v20_v1, 0.0 }
   0x3   :  { %71 = vadd.xlane.f32.xlu0 %v70_v2 }
   0x7   :  { %74 = vadd.xlane.f32.xlu0 %v73_v3 }
   0x8   :  { %9 = vsyncpa [#allocation3], 0  ;;  %v5677_v14 = vld [vmem:[%s6899_s3] sm:$0xff]   ;;  %v5678_v15 = vld [vmem:[%s6899_s3 + $0x10] sm:$0xff]   ;;  %v5807_v16 = vmov 0.0   ;;  %vm5808_vm1 = vmmov 0   ;;  %v97_v23 = vlaneseq }
   0x9   :  { %5356 = vmatprep.subr.bf16.mxu0 %v5807_v16  ;;  %v128_v17 = vsel %vm69_vm0, %v5677_v14, 0  ;;  %5364 = vmatprep.subr.bf16.mxu1 %v5807_v16  ;;  %v189_v18 = vsel %vm69_vm0, %v5678_v15, 0  ;;  %v5679_v19 = vld [vmem:[%s6899_s3 + $0x8] sm:$0xff]   ;;  %v5680_v20 = vld [vmem:[%s6899_s3 + $0x18] sm:$0xff]   ;;  %v23_v26 = vld [vmem:[%s6898_s2] sm:$0xff]  ;;  %s5809_s29 = smov 96  }
   0xa   :  { %5357 = vmatpush3.bf16.xpose.msra.mxu0 %v128_v17  ;;  %5365 = vmatpush3.bf16.xpose.msra.mxu1 %v189_v18  ;;  %v131_v21 = vsel %vm69_vm0, %v5679_v19, 0  ;;  %v192_v22 = vsel %vm69_vm0, %v5680_v20, 0  ;;  %v5883_v24 = vshrl.u32 %v97_v23, 7  ;;  %v5681_v44 = vld [vmem:[%s6899_s3 + $0x20] sm:$0xff]   ;;  %v5682_v49 = vld [vmem:[%s6899_s3 + $0x28] sm:$0xff]   ;;  %s5810_s8 = smov 120  }
   0xb   :  { %5358 = vmatprep.subr.bf16.mxu0 %v5807_v16  ;;  %5366 = vmatprep.subr.bf16.mxu1 %v5807_v16  ;;  %v249_v48 = vsel %vm69_vm0, %v5681_v44, 0  ;;  %v252_v50 = vsel %vm69_vm0, %v5682_v49, 0  ;;  %s5811_s9 = smov 104   ;;  %s5812_s10 = smov 112   ;;  %vm802_vm2 = vcmask 64512   ;;  %vm1042_vm3 = vcmask 1043456  }
   0xc   :  { %5360 = vmatprep.mubr.msk.bf16.mxu0 %vm5808_vm1, %v5807_v16  ;;  %5368 = vmatprep.mubr.msk.bf16.mxu1 %vm5808_vm1, %v5807_v16  ;;  %v112_v25 = vsub.s32 2, %v5883_v24  ;;  %v99_v34 = vsub.s32 0, %v5883_v24  ;;  %v105_v38 = vsub.s32 1, %v5883_v24  ;;  %s5816_s11 = smov 64   ;;  %s5817_s16 = smov 16   ;;  %vm1373_vm4 = vcmask 130048  }
   0xd   :  { %s5818_s17 = smov 8   ;;  %s5819_s18 = smov 24   ;;  %vm1375_vm5 = vcmask 195584   ;;  %vm5117_vm6 = vcmask 523264  }
   0xe   :  { %v5891_v27 = vrot.slane %v23_v26, %v112_v25  ;;  %v100_v37 = vrot.slane %v23_v26, %v99_v34  ;;  %v106_v42 = vrot.slane %v23_v26, %v105_v38 }
  0x12   :  { %5359 = vmatpush3.bf16.xpose.msra.mxu0 %v131_v21  ;;  %5367 = vmatpush3.bf16.xpose.msra.mxu1 %v192_v22 }
  0x13   :  { %5372 = vmatprep.subr.bf16.mxu0 %v5807_v16  ;;  %5380 = vmatprep.subr.bf16.mxu1 %v5807_v16 }
  0x1d   :  { %185 = vrot.lane.b32.xlu0 %v5891_v27, %s5809_s29 }
  0x90   :  { %v72_v4 = vpop.xlane.xlu0 %71 }
  0x91   :  { %v77_v5 = vmul.f32 0.03125, %v72_v4  ;;  %v5813_v4 = vmov 1983009808  }
  0x93   :  { %v79_v6 = vsub.f32 %v19_v0, %v77_v5  ;;  %v306_v5 = vunpack.c.l.s4 %v5813_v4 }
  0x94   :  { %v75_v7 = vpop.xlane.xlu0 %74 }
  0x95   :  { %v78_v8 = vmul.f32 0.03125, %v75_v7  ;;  %v81_v9 = vmul.f32 %v79_v6, %v79_v6 }
  0x97   :  { %v80_v10 = vsub.f32 %v20_v1, %v78_v8  ;;  %v83_v11 = vsel %vm69_vm0, %v81_v9, 0.0  ;;  %v307_v8 = vunpack.c.0.s8 %v306_v5 }
  0x98   :  { %84 = vadd.xlane.f32.xlu1 %v83_v11  ;;  %v5920_v51 = vpop.permute.xlu0 %185 }
  0x99   :  { %v82_v12 = vmul.f32 %v80_v10, %v80_v10 }
  0x9b   :  { %v86_v13 = vsel %vm69_vm0, %v82_v12, 0.0  ;;  %v5939_v12 = vsub.s32 %v307_v8, %v5883_v24 }
  0x9c   :  { %87 = vadd.xlane.f32.xlu1 %v86_v13 }
 0x125   :  { %v85_v28 = vpop.xlane.xlu1 %84 }
 0x126   :  { %v89_v29 = vmul.f32 0.03125, %v85_v28 }
 0x128   :  { %v91_v30 = vadd.f32 1e-05, %v89_v29 }
 0x129   :  { %v88_v31 = vpop.xlane.xlu1 %87 }
 0x12a   :  { %5699 = vrsqrt.f32 %v91_v30  ;;  %v90_v32 = vmul.f32 0.03125, %v88_v31 }
 0x12c   :  { %v92_v33 = vadd.f32 1e-05, %v90_v32 }
 0x12e   :  { %5701 = vrsqrt.f32 %v92_v33 }
 0x134   :  { %v5700_v35 = vpop.eup %5699 }
 0x135   :  { %v95_v36 = vmul.f32 %v5700_v35, %v79_v6  ;;  %v5814_v6 = vmov 1934713408  }
 0x136   :  { %v323_v7 = vunpack.c.l.s4 %v5814_v6 }
 0x137   :  { %v101_v41 = vmul.f32 %v100_v37, %v95_v36  ;;  %v5815_v36 = vmov 0  }
 0x138   :  { %v5702_v39 = vpop.eup %5701  ;;  %v324_v9 = vunpack.c.0.s8 %v323_v7 }
 0x139   :  { %v96_v40 = vmul.f32 %v5702_v39, %v80_v10  ;;  %v107_v45 = vadd.f32 %v106_v42, %v101_v41 }
 0x13a   :  { %v5942_v13 = vsub.s32 %v324_v9, %v5883_v24 }
 0x13b   :  { %v102_v43 = vmul.f32 %v100_v37, %v96_v40 }
 0x13d   :  { %v108_v46 = vadd.f32 %v106_v42, %v102_v43 }
 0x13f   :  { %v109_v47 = vpack.c.bf16 %v108_v46, %v107_v45 }
 0x141   :  { %5361 = vmatmul.mubr.msk.bf16.vlgmr.msra.gmra.mrb[0].mxu0 %vm69_vm0, %v109_v47  ;;  %5369 = vmatmul.mubr.msk.bf16.vlgmr.msra.gmra.mrb[0].mxu1 %vm69_vm0, %v109_v47 }
 0x142   :  { %5373 = vmatpush3.bf16.xpose.msra.mxu0 %v249_v48  ;;  %5376 = vmatprep.mubr.msk.bf16.mxu0 %vm5808_vm1, %v5807_v16 }
 0x143   :  { %5374 = vmatprep.subr.bf16.mxu0 %v5807_v16  ;;  %5382 = vmatprep.mubr.msk.bf16.mxu1 %vm5808_vm1, %v5807_v16 }
 0x14a   :  { %5375 = vmatpush3.bf16.xpose.msra.mxu0 %v252_v50 }
 0x14b   :  { %5392 = vmatprep.subr.bf16.mxu0 %v5807_v16 }
 0x151   :  { %5377 = vmatmul.mubr.msk.bf16.vlgmr.msra.gmra.mrb[4].mxu0 %vm69_vm0, %v109_v47 }
 0x152   :  { %5394 = vmatprep.mubr.msk.bf16.mxu0 %vm5808_vm1, %v5807_v16 }
 0x214   :  { %v167_v52 = vpop.f32.mrb[0].mxu0  ;;  %v228_v53 = vpop.f32.mrb[0].mxu1 }
 0x215   :  { %v168_v54 = vadd.f32 %v167_v52, %v5891_v27  ;;  %v229_v55 = vadd.f32 %v228_v53, %v5920_v51  ;;  %v5362_v56 = vpop.f32.mrb[1].mxu0  ;;  %v5370_v57 = vpop.f32.mrb[1].mxu1 }
 0x216   :  { %v5924_v58 = vpop.f32.mrb[2].mxu0  ;;  %v5926_v59 = vpop.f32.mrb[2].mxu1 }
 0x217   :  { %v295_v60 = vpack.c.bf16 %v168_v54, %v168_v54  ;;  %v296_v61 = vpack.c.bf16 %v229_v55, %v229_v55  ;;  %v5363_v62 = vpop.f32.mrb[3].mxu0  ;;  %v5371_v63 = vpop.f32.mrb[3].mxu1 }
 0x219   :  { %299 = vrot.lane.b32.xlu0 %v295_v60, %s5810_s8  ;;  %467 = vrot.lane.b32.xlu1 %v296_v61, %s5810_s8  ;;  %v479_v18 = vrot.slane %v296_v61, %v5939_v12  ;;  %v311_v46 = vrot.slane %v295_v60, %v5939_v12 }
 0x21d   :  { %303 = vrot.lane.b32.xlu0 %v295_v60, %s5811_s9  ;;  %469 = vrot.lane.b32.xlu1 %v296_v61, %s5812_s10 }
 0x221   :  { %471 = vrot.lane.b32.xlu1 %v296_v61, %s5811_s9 }
 0x224   :  { %v5933_v0 = vpop.f32.mrb[4].mxu0 }
 0x225   :  { %v5378_v1 = vpop.f32.mrb[5].mxu0  ;;  %301 = vrot.lane.b32.xlu1 %v295_v60, %s5812_s10 }
 0x226   :  { %v5936_v2 = vpop.f32.mrb[6].mxu0 }
 0x227   :  { %v5379_v3 = vpop.f32.mrb[7].mxu0 }
 0x28b   :  { %v468_v10 = vpop.permute.xlu1 %467  ;;  %v300_v11 = vpop.permute.xlu0 %299 }
 0x28c   :  { %v345_v17 = vrot.slane %v300_v11, %v5939_v12  ;;  %v513_v35 = vrot.slane %v468_v10, %v5939_v12 }
 0x28f   :  { %v470_v14 = vpop.permute.xlu1 %469  ;;  %v304_v15 = vpop.permute.xlu0 %303 }
 0x290   :  { %v487_v19 = vrot.slane %v470_v14, %v5939_v12  ;;  %v353_v20 = vrot.slane %v304_v15, %v5939_v12 }
 0x292   :  { %v488_v21 = vcombine.low %v479_v18, %v487_v19  ;;  %v489_v22 = vcombine.high %v479_v18, %v487_v19  ;;  %v354_v23 = vcombine.low %v345_v17, %v353_v20  ;;  %v355_v26 = vcombine.high %v345_v17, %v353_v20 }
 0x293   :  { %v472_v28 = vpop.permute.xlu1 %471 }
 0x294   :  { %v496_v29 = vrot.slane %v488_v21, %v5942_v13  ;;  %v503_v30 = vrot.slane %v489_v22, %v5942_v13  ;;  %v362_v31 = vrot.slane %v354_v23, %v5942_v13  ;;  %v369_v32 = vrot.slane %v355_v26, %v5942_v13 }
 0x295   :  { %v521_v33 = vrot.slane %v472_v28, %v5939_v12 }
 0x296   :  { %v504_v37 = vcombine.high %v496_v29, %v5815_v36  ;;  %v505_v39 = vcombine.high %v503_v30, %v5815_v36  ;;  %v370_v40 = vcombine.high %v362_v31, %v5815_v36  ;;  %v371_v41 = vcombine.high %v369_v32, %v5815_v36 }
 0x297   :  { %v302_v42 = vpop.permute.xlu1 %301  ;;  %v544_v43 = vshrl.u32 %v496_v29, 16  ;;  %v522_v44 = vcombine.low %v513_v35, %v521_v33  ;;  %v523_v45 = vcombine.high %v513_v35, %v521_v33  ;;  %v560_v47 = vshrl.u32 %v503_v30, 16 }
 0x298   :  { %v377_v48 = vshrl.u32 %v362_v31, 16  ;;  %v393_v49 = vshrl.u32 %v369_v32, 16  ;;  %v319_v50 = vrot.slane %v302_v42, %v5939_v12  ;;  %v552_v52 = vshrl.u32 %v504_v37, 16 }
 0x299   :  { %v568_v53 = vshrl.u32 %v505_v39, 16  ;;  %v530_v54 = vrot.slane %v522_v44, %v5942_v13  ;;  %v537_v55 = vrot.slane %v523_v45, %v5942_v13  ;;  %v385_v56 = vshrl.u32 %v370_v40, 16 }
 0x29a   :  { %v401_v57 = vshrl.u32 %v371_v41, 16  ;;  %v320_v61 = vcombine.low %v311_v46, %v319_v50  ;;  %v321_v62 = vcombine.high %v311_v46, %v319_v50 }
 0x29b   :  { %v538_v63 = vcombine.high %v530_v54, %v5815_v36  ;;  %v539_v1 = vcombine.high %v537_v55, %v5815_v36  ;;  %v542_v60 = vpack.i.b16 %v530_v54, %v496_v29  ;;  %v545_v3 = vshrl.u32 %v530_v54, 16 }
 0x29c   :  { %v558_v4 = vpack.i.b16 %v537_v55, %v503_v30  ;;  %v561_v5 = vshrl.u32 %v537_v55, 16  ;;  %v328_v6 = vrot.slane %v320_v61, %v5942_v13  ;;  %v335_v7 = vrot.slane %v321_v62, %v5942_v13 }
 0x29d   :  { %v546_v8 = vpack.i.b16 %v545_v3, %v544_v43  ;;  %v550_v9 = vpack.i.b16 %v538_v63, %v504_v37  ;;  %v553_v10 = vshrl.u32 %v538_v63, 16  ;;  %v566_v11 = vpack.i.b16 %v539_v1, %v505_v39 }
 0x29e   :  { %v562_v14 = vpack.i.b16 %v561_v5, %v560_v47  ;;  %v569_v15 = vshrl.u32 %v539_v1, 16  ;;  %v572_v17 = vcombine.low %v542_v60, %v558_v4  ;;  %v336_v18 = vcombine.high %v328_v6, %v5815_v36 }
 0x29f   :  { %v554_v19 = vpack.i.b16 %v553_v10, %v552_v52  ;;  %v580_v20 = vcombine.low %v550_v9, %v566_v11  ;;  %v337_v21 = vcombine.high %v335_v7, %v5815_v36  ;;  %v374_v22 = vpack.i.b16 %v362_v31, %v328_v6 }
 0x2a0   :  { %v570_v23 = vpack.i.b16 %v569_v15, %v568_v53  ;;  %v579_v26 = vrot.slane %v572_v17, %v5939_v12  ;;  %v597_v28 = vcombine.low %v546_v8, %v562_v14  ;;  %v376_v29 = vshrl.u32 %v328_v6, 16 }
 0x2a1   :  { %v382_v30 = vpack.i.b16 %v370_v40, %v336_v18  ;;  %v384_v33 = vshrl.u32 %v336_v18, 16  ;;  %v390_v35 = vpack.i.b16 %v369_v32, %v335_v7  ;;  %v392_v37 = vshrl.u32 %v335_v7, 16 }
 0x2a2   :  { %v605_v39 = vcombine.low %v554_v19, %v570_v23  ;;  %v378_v42 = vpack.i.b16 %v377_v48, %v376_v29  ;;  %v398_v43 = vpack.i.b16 %v371_v41, %v337_v21  ;;  %v400_v44 = vshrl.u32 %v337_v21, 16 }
 0x2a3   :  { %v386_v45 = vpack.i.b16 %v385_v56, %v384_v33  ;;  %v394_v46 = vpack.i.b16 %v393_v49, %v392_v37  ;;  %v404_v47 = vcombine.low %v374_v22, %v390_v35  ;;  %v587_v50 = vrot.slane %v580_v20, %v5939_v12 }
 0x2a4   :  { %v402_v52 = vpack.i.b16 %v401_v57, %v400_v44  ;;  %v412_v31 = vcombine.low %v382_v30, %v398_v43  ;;  %v604_v53 = vrot.slane %v597_v28, %v5939_v12  ;;  %v612_v54 = vrot.slane %v605_v39, %v5939_v12 }
 0x2a5   :  { %v429_v55 = vcombine.low %v378_v42, %v394_v46  ;;  %v588_v40 = vcombine.low %v579_v26, %v587_v50  ;;  %v411_v41 = vrot.slane %v404_v47, %v5939_v12 }
 0x2a6   :  { %v419_v32 = vrot.slane %v412_v31, %v5939_v12  ;;  %v437_v61 = vcombine.low %v386_v45, %v402_v52  ;;  %v613_v62 = vcombine.low %v604_v53, %v612_v54 }
 0x2a7   :  { %v595_v48 = vrot.slane %v588_v40, %v5942_v13  ;;  %v436_v49 = vrot.slane %v429_v55, %v5939_v12 }
 0x2a8   :  { %v444_v56 = vrot.slane %v437_v61, %v5939_v12  ;;  %v620_v57 = vrot.slane %v613_v62, %v5942_v13  ;;  %v420_v63 = vcombine.low %v411_v41, %v419_v32 }
 0x2a9   :  { %v596_v3 = vcombine.high %v595_v48, %v5815_v36  ;;  %v625_v11 = vshrl.u32 %v595_v48, 16 }
 0x2aa   :  { %v445_v1 = vcombine.low %v436_v49, %v444_v56  ;;  %v624_v60 = vpack.i.b16 %v620_v57, %v595_v48  ;;  %v621_v4 = vcombine.high %v620_v57, %v5815_v36  ;;  %v626_v8 = vshrl.u32 %v620_v57, 16 }
 0x2ab   :  { %v427_v10 = vrot.slane %v420_v63, %v5942_v13  ;;  %v631_v23 = vshrl.u32 %v596_v3, 16 }
 0x2ac   :  { %v807_v5 = vsel %vm802_vm2, %v624_v60, 0  ;;  %v630_v6 = vpack.i.b16 %v621_v4, %v596_v3  ;;  %v452_v7 = vrot.slane %v445_v1, %v5942_v13  ;;  %v627_v14 = vpack.i.b16 %v626_v8, %v625_v11 }
 0x2ad   :  { %5381 = vmatpush3.bf16.xpose.msra.mxu1 %v807_v5  ;;  %v428_v18 = vcombine.high %v427_v10, %v5815_v36  ;;  %v632_v21 = vshrl.u32 %v621_v4, 16  ;;  %v457_v26 = vshrl.u32 %v427_v10, 16  ;;  %v232_v5 = vadd.f32 %v5926_v59, %v5920_v51 }
 0x2ae   :  { %v899_v9 = vsel %vm802_vm2, %v630_v6, 0  ;;  %5386 = vmatprep.subr.bf16.mxu1 %v5807_v16  ;;  %v453_v15 = vcombine.high %v452_v7, %v5815_v36  ;;  %v456_v17 = vpack.i.b16 %v452_v7, %v427_v10  ;;  %v853_v19 = vsel %vm802_vm2, %v627_v14, 0 }
 0x2af   :  { %5393 = vmatpush3.bf16.xpose.msra.mxu0 %v899_v9  ;;  %v458_v22 = vshrl.u32 %v452_v7, 16  ;;  %v633_v28 = vpack.i.b16 %v632_v21, %v631_v23  ;;  %v463_v35 = vshrl.u32 %v428_v18, 16  ;;  %v6018_v7 = vpack.c.bf16 %v232_v5, %v232_v5 }
 0x2b0   :  { %5404 = vmatprep.subr.bf16.mxu0 %v5807_v16  ;;  %v462_v20 = vpack.i.b16 %v453_v15, %v428_v18  ;;  %v464_v33 = vshrl.u32 %v453_v15, 16 }
 0x2b1   :  { %v459_v29 = vpack.i.b16 %v458_v22, %v457_v26  ;;  %v945_v30 = vsel %vm802_vm2, %v633_v28, 0 }
 0x2b2   :  { %v465_v37 = vpack.i.b16 %v464_v33, %v463_v35 }
 0x2b4   :  { %5383 = vmatmul.mubr.msk.bf16.vlgmr.msra.gmra.mrb[4].mxu1 %vm802_vm2, %v456_v17 }
 0x2b5   :  { %5387 = vmatpush3.bf16.xpose.msra.mxu1 %v853_v19  ;;  %5388 = vmatprep.mubr.msk.bf16.mxu1 %vm5808_vm1, %v5807_v16 }
 0x2b6   :  { %5395 = vmatmul.mubr.msk.bf16.vlgmr.msra.gmra.mrb[8].mxu0 %vm802_vm2, %v462_v20  ;;  %5398 = vmatprep.subr.bf16.mxu1 %v5807_v16 }
 0x2b7   :  { %5406 = vmatprep.mubr.msk.bf16.mxu0 %vm5808_vm1, %v5807_v16 }
 0x2bc   :  { %5389 = vmatmul.mubr.msk.bf16.vlgmr.msra.gmra.mrb[8].mxu1 %vm802_vm2, %v459_v29 }
 0x2bd   :  { %5399 = vmatpush3.bf16.xpose.msra.mxu1 %v945_v30  ;;  %5400 = vmatprep.mubr.msk.bf16.mxu1 %vm5808_vm1, %v5807_v16 }
 0x2be   :  { %5410 = vmatprep.subr.bf16.mxu1 %v5807_v16 }
 0x2c4   :  { %5401 = vmatmul.mubr.msk.bf16.vlgmr.msra.gmra.mrb[12].mxu1 %vm802_vm2, %v465_v37 }
 0x2c5   :  { %5412 = vmatprep.mubr.msk.bf16.mxu1 %vm5808_vm1, %v5807_v16 }
 0x387   :  { %v843_v39 = vpop.f32.mrb[4].mxu1 }
 0x388   :  { %v987_v42 = vmul.f32 0.35355338, %v843_v39  ;;  %v5384_v43 = vpop.f32.mrb[5].mxu1 }
 0x389   :  { %v846_v44 = vpop.f32.mrb[6].mxu1  ;;  %v935_v45 = vpop.f32.mrb[8].mxu0 }
 0x38a   :  { %v5385_v46 = vpop.f32.mrb[7].mxu1  ;;  %v5396_v47 = vpop.f32.mrb[9].mxu0  ;;  %v991_v50 = vsel %vm802_vm2, %v987_v42, -inf  ;;  %v989_v32 = vmul.f32 0.35355338, %v935_v45 }
 0x38b   :  { %992 = vmax.xlane.f32.xlu1 %v991_v50  ;;  %v938_v52 = vpop.f32.mrb[10].mxu0 }
 0x38c   :  { %v5397_v31 = vpop.f32.mrb[11].mxu0  ;;  %v997_v41 = vsel %vm802_vm2, %v989_v32, -inf }
 0x38f   :  { %v889_v53 = vpop.f32.mrb[8].mxu1 }
 0x390   :  { %v988_v54 = vmul.f32 0.35355338, %v889_v53  ;;  %v5390_v55 = vpop.f32.mrb[9].mxu1 }
 0x391   :  { %v892_v40 = vpop.f32.mrb[10].mxu1 }
 0x392   :  { %v5391_v61 = vpop.f32.mrb[11].mxu1  ;;  %v994_v62 = vsel %vm802_vm2, %v988_v54, -inf }
 0x393   :  { %995 = vmax.xlane.f32.xlu0 %v994_v62 }
 0x397   :  { %v981_v48 = vpop.f32.mrb[12].mxu1  ;;  %998 = vmax.xlane.f32.xlu0 %v997_v41 }
 0x398   :  { %v990_v49 = vmul.f32 0.35355338, %v981_v48  ;;  %v5402_v56 = vpop.f32.mrb[13].mxu1 }
 0x399   :  { %v984_v57 = vpop.f32.mrb[14].mxu1 }
 0x39a   :  { %v5403_v63 = vpop.f32.mrb[15].mxu1  ;;  %v1000_v1 = vsel %vm802_vm2, %v990_v49, -inf }
 0x39b   :  { %1001 = vmax.xlane.f32.xlu0 %v1000_v1 }
 0x39c   :  { %245 = vrot.lane.b32.xlu1 %v5891_v27, %s5816_s11 }
 0x418   :  { %v993_v60 = vpop.xlane.xlu1 %992 }
 0x41c   :  { %v6010_v3 = vpop.permute.xlu1 %245 }
 0x41d   :  { %v289_v4 = vadd.f32 %v5933_v0, %v6010_v3  ;;  %v171_v0 = vadd.f32 %v5924_v58, %v5891_v27  ;;  %v1003_v27 = vsub.f32 %v987_v42, %v993_v60 }
 0x41f   :  { %v297_v6 = vpack.c.bf16 %v289_v4, %v289_v4  ;;  %v6029_v9 = vpack.c.bf16 %v171_v0, %v171_v0  ;;  %v1007_v19 = vmul.f32 1.442695, %v1003_v27 }
 0x420   :  { %v996_v8 = vpop.xlane.xlu0 %995 }
 0x421   :  { %637 = vrot.lane.b32.xlu1 %v297_v6, %s5812_s10  ;;  %635 = vrot.lane.b32.xlu0 %v297_v6, %s5810_s8  ;;  %v1004_v10 = vsub.f32 %v988_v54, %v996_v8  ;;  %v647_v33 = vrot.slane %v297_v6, %v5939_v12 }
 0x423   :  { %v1009_v15 = vmul.f32 1.442695, %v1004_v10 }
 0x424   :  { %v999_v51 = vpop.xlane.xlu0 %998 }
 0x425   :  { %639 = vrot.lane.b32.xlu1 %v297_v6, %s5811_s9  ;;  %1551 = vrot.lane.b32.xlu0 %v6018_v7, %s5812_s10  ;;  %v1005_v59 = vsub.f32 %v989_v32, %v999_v51 }
 0x427   :  { %v1011_v11 = vmul.f32 1.442695, %v1005_v59 }
 0x428   :  { %v1002_v14 = vpop.xlane.xlu0 %1001 }
 0x429   :  { %1549 = vrot.lane.b32.xlu1 %v6018_v7, %s5810_s8  ;;  %5703 = vpow2.f32 %v1011_v11  ;;  %v1006_v17 = vsub.f32 %v990_v49, %v1002_v14 }
 0x42a   :  { %5705 = vpow2.f32 %v1009_v15 }
 0x42b   :  { %v1013_v18 = vmul.f32 1.442695, %v1006_v17 }
 0x42d   :  { %1553 = vrot.lane.b32.xlu1 %v6018_v7, %s5811_s9  ;;  %5707 = vpow2.f32 %v1013_v18 }
 0x42e   :  { %5709 = vpow2.f32 %v1007_v19 }
 0x431   :  { %1381 = vrot.lane.b32.xlu1 %v6029_v9, %s5810_s8 }
 0x433   :  { %v6033_v58 = vpop.eup %5703 }
 0x434   :  { %v1021_v20 = vsel %vm802_vm2, %v6033_v58, 0.0  ;;  %v6037_v21 = vpop.eup %5705 }
 0x435   :  { %v1018_v22 = vsel %vm802_vm2, %v6037_v21, 0.0 }
 0x437   :  { %v6041_v23 = vpop.eup %5707 }
 0x438   :  { %v1024_v26 = vsel %vm802_vm2, %v6041_v23, 0.0  ;;  %v6045_v28 = vpop.eup %5709 }
 0x439   :  { %v1015_v29 = vsel %vm802_vm2, %v6045_v28, 0.0 }
 0x444   :  { %1022 = vadd.xlane.f32.xlu0 %v1021_v20 }
 0x448   :  { %1019 = vadd.xlane.f32.xlu0 %v1018_v22 }
 0x44c   :  { %1025 = vadd.xlane.f32.xlu0 %v1024_v26 }
 0x455   :  { %1016 = vadd.xlane.f32.xlu1 %v1015_v29 }
 0x462   :  { %1385 = vrot.lane.b32.xlu0 %v6029_v9, %s5811_s9 }
 0x466   :  { %1383 = vrot.lane.b32.xlu1 %v6029_v9, %s5812_s10 }
 0x493   :  { %v638_v30 = vpop.permute.xlu1 %637  ;;  %v636_v42 = vpop.permute.xlu0 %635 }
 0x494   :  { %v655_v35 = vrot.slane %v638_v30, %v5939_v12  ;;  %v681_v46 = vrot.slane %v636_v42, %v5939_v12 }
 0x496   :  { %v656_v37 = vcombine.low %v647_v33, %v655_v35  ;;  %v657_v39 = vcombine.high %v647_v33, %v655_v35 }
 0x497   :  { %v640_v43 = vpop.permute.xlu1 %639 }
 0x498   :  { %v664_v44 = vrot.slane %v656_v37, %v5942_v13  ;;  %v689_v45 = vrot.slane %v640_v43, %v5939_v12  ;;  %v671_v47 = vrot.slane %v657_v39, %v5942_v13 }
 0x49a   :  { %v690_v50 = vcombine.low %v681_v46, %v689_v45  ;;  %v691_v52 = vcombine.high %v681_v46, %v689_v45  ;;  %v672_v31 = vcombine.high %v664_v44, %v5815_v36  ;;  %v673_v55 = vcombine.high %v671_v47, %v5815_v36 }
 0x49b   :  { %v712_v40 = vshrl.u32 %v664_v44, 16  ;;  %v728_v49 = vshrl.u32 %v671_v47, 16  ;;  %v1550_v39 = vpop.permute.xlu1 %1549 }
 0x49c   :  { %v698_v53 = vrot.slane %v690_v50, %v5942_v13  ;;  %v705_v54 = vrot.slane %v691_v52, %v5942_v13  ;;  %v720_v48 = vshrl.u32 %v672_v31, 16  ;;  %v736_v5 = vshrl.u32 %v673_v55, 16 }
 0x49d   :  { %v1561_v50 = vrot.slane %v6018_v7, %v5939_v12 }
 0x49e   :  { %v706_v32 = vcombine.high %v698_v53, %v5815_v36  ;;  %v707_v61 = vcombine.high %v705_v54, %v5815_v36  ;;  %v710_v62 = vpack.i.b16 %v698_v53, %v664_v44  ;;  %v713_v41 = vshrl.u32 %v698_v53, 16  ;;  %v1552_v44 = vpop.permute.xlu0 %1551 }
 0x49f   :  { %v726_v56 = vpack.i.b16 %v705_v54, %v671_v47  ;;  %v729_v57 = vshrl.u32 %v705_v54, 16  ;;  %v1554_v43 = vpop.permute.xlu1 %1553  ;;  %v1569_v46 = vrot.slane %v1552_v44, %v5939_v12  ;;  %v1595_v47 = vrot.slane %v1550_v39, %v5939_v12 }
 0x4a0   :  { %v714_v63 = vpack.i.b16 %v713_v41, %v712_v40  ;;  %v718_v1 = vpack.i.b16 %v706_v32, %v672_v31  ;;  %v721_v60 = vshrl.u32 %v706_v32, 16  ;;  %v734_v4 = vpack.i.b16 %v707_v61, %v673_v55 }
 0x4a1   :  { %v730_v6 = vpack.i.b16 %v729_v57, %v728_v49  ;;  %v737_v8 = vshrl.u32 %v707_v61, 16  ;;  %v740_v0 = vcombine.low %v710_v62, %v726_v56  ;;  %v1603_v45 = vrot.slane %v1554_v43, %v5939_v12 }
 0x4a2   :  { %v722_v51 = vpack.i.b16 %v721_v60, %v720_v48  ;;  %v748_v59 = vcombine.low %v718_v1, %v734_v4  ;;  %v1570_v53 = vcombine.low %v1561_v50, %v1569_v46  ;;  %v1571_v54 = vcombine.high %v1561_v50, %v1569_v46 }
 0x4a3   :  { %v738_v10 = vpack.i.b16 %v737_v8, %v736_v5  ;;  %v765_v11 = vcombine.low %v714_v63, %v730_v6  ;;  %v747_v14 = vrot.slane %v740_v0, %v5939_v12  ;;  %v1604_v52 = vcombine.low %v1595_v47, %v1603_v45  ;;  %v1382_v39 = vpop.permute.xlu1 %1381 }
 0x4a4   :  { %v755_v15 = vrot.slane %v748_v59, %v5939_v12  ;;  %v1605_v31 = vcombine.high %v1595_v47, %v1603_v45  ;;  %v1578_v32 = vrot.slane %v1570_v53, %v5942_v13  ;;  %v1585_v61 = vrot.slane %v1571_v54, %v5942_v13 }
 0x4a5   :  { %v773_v17 = vcombine.low %v722_v51, %v738_v10  ;;  %v772_v27 = vrot.slane %v765_v11, %v5939_v12  ;;  %v1612_v55 = vrot.slane %v1604_v52, %v5942_v13  ;;  %v1427_v47 = vrot.slane %v1382_v39, %v5939_v12 }
 0x4a6   :  { %v756_v18 = vcombine.low %v747_v14, %v755_v15  ;;  %v1619_v40 = vrot.slane %v1605_v31, %v5942_v13  ;;  %v1586_v48 = vcombine.high %v1578_v32, %v5815_v36  ;;  %v1587_v7 = vcombine.high %v1585_v61, %v5815_v36 }
 0x4a7   :  { %v780_v19 = vrot.slane %v773_v17, %v5939_v12  ;;  %v1620_v62 = vcombine.high %v1612_v55, %v5815_v36  ;;  %v1627_v1 = vshrl.u32 %v1612_v55, 16  ;;  %v1626_v4 = vshrl.u32 %v1578_v32, 16 }
 0x4a8   :  { %v763_v22 = vrot.slane %v756_v18, %v5942_v13  ;;  %v1621_v41 = vcombine.high %v1619_v40, %v5815_v36  ;;  %v1634_v57 = vshrl.u32 %v1586_v48, 16  ;;  %v1650_v63 = vshrl.u32 %v1587_v7, 16 }
 0x4a9   :  { %v781_v20 = vcombine.low %v772_v27, %v780_v19  ;;  %v1635_v49 = vshrl.u32 %v1620_v62, 16  ;;  %v1643_v60 = vshrl.u32 %v1619_v40, 16  ;;  %v1642_v5 = vshrl.u32 %v1585_v61, 16 }
 0x4aa   :  { %v793_v30 = vshrl.u32 %v763_v22, 16  ;;  %v1651_v56 = vshrl.u32 %v1621_v41, 16  ;;  %v1628_v51 = vpack.i.b16 %v1627_v1, %v1626_v4  ;;  %v1632_v59 = vpack.i.b16 %v1620_v62, %v1586_v48 }
 0x4ab   :  { %v788_v26 = vrot.slane %v781_v20, %v5942_v13  ;;  %v1636_v6 = vpack.i.b16 %v1635_v49, %v1634_v57  ;;  %v1644_v10 = vpack.i.b16 %v1643_v60, %v1642_v5  ;;  %v1648_v11 = vpack.i.b16 %v1621_v41, %v1587_v7 }
 0x4ac   :  { %v1652_v8 = vpack.i.b16 %v1651_v56, %v1650_v63  ;;  %v1624_v14 = vpack.i.b16 %v1612_v55, %v1578_v32  ;;  %v1640_v15 = vpack.i.b16 %v1619_v40, %v1585_v61  ;;  %v1393_v1 = vrot.slane %v6029_v9, %v5939_v12 }
 0x4ad   :  { %v792_v29 = vpack.i.b16 %v788_v26, %v763_v22  ;;  %v794_v33 = vshrl.u32 %v788_v26, 16  ;;  %v1662_v27 = vcombine.low %v1632_v59, %v1648_v11  ;;  %v1679_v19 = vcombine.low %v1628_v51, %v1644_v10 }
 0x4ae   :  { %v1687_v17 = vcombine.low %v1636_v6, %v1652_v8  ;;  %v1654_v20 = vcombine.low %v1624_v14, %v1640_v15 }
 0x4af   :  { %v1044_v35 = vsel %vm1042_vm3, %v792_v29, 0  ;;  %v795_v37 = vpack.i.b16 %v794_v33, %v793_v30  ;;  %v6090_v33 = vcombine.high %v788_v26, %v5815_v36 }
 0x4b0   :  { %5405 = vmatpush3.bf16.msra.mxu0 %v1044_v35  ;;  %v1694_v29 = vrot.slane %v1687_v17, %v5939_v12  ;;  %v1669_v35 = vrot.slane %v1662_v27, %v5939_v12  ;;  %v1661_v43 = vrot.slane %v1654_v20, %v5939_v12 }
 0x4b1   :  { %5416 = vmatprep.subr.bf16.mxu0 %v5807_v16  ;;  %v1090_v42 = vsel %vm1042_vm3, %v795_v37, 0  ;;  %v1686_v37 = vrot.slane %v1679_v19, %v5939_v12  ;;  %v800_v46 = vshrl.u32 %v6090_v33, 16 }
 0x4b2   :  { %5411 = vmatpush3.bf16.msra.mxu1 %v1090_v42  ;;  %v6095_v42 = vcombine.high %v763_v22, %v5815_v36  ;;  %v1670_v50 = vcombine.low %v1661_v43, %v1669_v35 }
 0x4b3   :  { %5422 = vmatprep.subr.bf16.mxu1 %v5807_v16  ;;  %v1695_v44 = vcombine.low %v1686_v37, %v1694_v29 }
 0x4b4   :  { %v799_v52 = vshrl.u32 %v6095_v42, 16  ;;  %v6107_v61 = vrot.slane %v1670_v50, %v5942_v13 }
 0x4b5   :  { %v6103_v54 = vrot.slane %v1695_v44, %v5942_v13 }
 0x4b6   :  { %v801_v55 = vpack.i.b16 %v800_v46, %v799_v52  ;;  %v1707_v57 = vshrl.u32 %v6107_v61, 16 }
 0x4b7   :  { %v1708_v7 = vshrl.u32 %v6103_v54, 16 }
 0x4b8   :  { %v1182_v49 = vsel %vm1042_vm3, %v801_v55, 0 }
 0x4b9   :  { %v1709_v5 = vpack.i.b16 %v1708_v7, %v1707_v57 }
 0x4bb   :  { %v1934_v15 = vsel %vm802_vm2, %v1709_v5, 0 }
 0x4d1   :  { %v1023_v0 = vpop.xlane.xlu0 %1022 }
 0x4d5   :  { %v1020_v18 = vpop.xlane.xlu0 %1019 }
 0x4d6   :  { %5711 = vrcp.f32 %v1020_v18 }
 0x4d9   :  { %v1026_v30 = vpop.xlane.xlu0 %1025 }
 0x4da   :  { %5713 = vrcp.f32 %v1026_v30 }
 0x4dd   :  { %v1386_v45 = vpop.permute.xlu0 %1385 }
 0x4de   :  { %v1435_v26 = vrot.slane %v1386_v45, %v5939_v12 }
 0x4e0   :  { %v5712_v31 = vpop.eup %5711  ;;  %v1436_v53 = vcombine.low %v1427_v47, %v1435_v26  ;;  %v1437_v40 = vcombine.high %v1427_v47, %v1435_v26 }
 0x4e1   :  { %v1032_v22 = vmul.f32 %v5712_v31, %v6037_v21 }
 0x4e2   :  { %v1017_v32 = vpop.xlane.xlu1 %1016  ;;  %v1444_v48 = vrot.slane %v1436_v53, %v5942_v13  ;;  %v1451_v56 = vrot.slane %v1437_v40, %v5942_v13 }
 0x4e3   :  { %5715 = vrcp.f32 %v1017_v32  ;;  %v1036_v62 = vpack.c.bf16 %v1032_v22, %v1032_v22 }
 0x4e4   :  { %v5714_v41 = vpop.eup %5713  ;;  %5717 = vrcp.f32 %v1023_v0  ;;  %v1452_v4 = vcombine.high %v1444_v48, %v5815_v36  ;;  %v1453_v51 = vcombine.high %v1451_v56, %v5815_v36  ;;  %v1459_v9 = vshrl.u32 %v1444_v48, 16 }
 0x4e5   :  { %5413 = vmatmul.mubr.msk.bf16.vlgmr.msra.gmra.mrb[16].mxu1 %vm802_vm2, %v1036_v62  ;;  %v1034_v63 = vmul.f32 %v5714_v41, %v6041_v23  ;;  %v798_v23 = vpack.i.b16 %v6090_v33, %v6095_v42  ;;  %v1475_v14 = vshrl.u32 %v1451_v56, 16  ;;  %v1703_v62 = vcombine.high %v6103_v54, %v5815_v36 }
 0x4e6   :  { %5423 = vmatpush3.bf16.msra.mxu1 %v1182_v49  ;;  %v1384_v21 = vpop.permute.xlu1 %1383  ;;  %5424 = vmatprep.mubr.msk.bf16.mxu1 %vm5808_vm1, %v5807_v16  ;;  %v1467_v11 = vshrl.u32 %v1452_v4, 16  ;;  %v1483_v29 = vshrl.u32 %v1453_v51, 16  ;;  %v1678_v49 = vcombine.high %v6107_v61, %v5815_v36 }
 0x4e7   :  { %v1401_v60 = vrot.slane %v1384_v21, %v5939_v12  ;;  %5434 = vmatprep.subr.bf16.mxu1 %v5807_v16  ;;  %v1038_v10 = vpack.c.bf16 %v1034_v63, %v1034_v63  ;;  %v1136_v53 = vsel %vm1042_vm3, %v798_v23, 0  ;;  %v1714_v63 = vshrl.u32 %v1703_v62, 16 }
 0x4e9   :  { %v1402_v6 = vcombine.low %v1393_v1, %v1401_v60  ;;  %v1403_v8 = vcombine.high %v1393_v1, %v1401_v60  ;;  %v1713_v60 = vshrl.u32 %v1678_v49, 16 }
 0x4eb   :  { %v1410_v59 = vrot.slane %v1402_v6, %v5942_v13  ;;  %v1417_v0 = vrot.slane %v1403_v8, %v5942_v13  ;;  %v1715_v8 = vpack.i.b16 %v1714_v63, %v1713_v60 }
 0x4ed   :  { %v5716_v17 = vpop.eup %5715  ;;  %v1418_v18 = vcombine.high %v1410_v59, %v5815_v36  ;;  %v1419_v27 = vcombine.high %v1417_v0, %v5815_v36  ;;  %v1456_v19 = vpack.i.b16 %v1444_v48, %v1410_v59  ;;  %v1458_v20 = vshrl.u32 %v1410_v59, 16  ;;  %5425 = vmatmul.mubr.msk.bf16.vlgmr.msra.gmra.mrb[20].mxu1 %vm802_vm2, %v1038_v10 }
 0x4ee   :  { %v1031_v30 = vmul.f32 %v5716_v17, %v6045_v28  ;;  %v1472_v35 = vpack.i.b16 %v1451_v56, %v1417_v0  ;;  %v1474_v37 = vshrl.u32 %v1417_v0, 16  ;;  %5436 = vmatprep.mubr.msk.bf16.mxu1 %vm5808_vm1, %v5807_v16  ;;  %v5718_v26 = vpop.eup %5717  ;;  %v1706_v56 = vpack.i.b16 %v6103_v54, %v6107_v61 }
 0x4ef   :  { %v1460_v33 = vpack.i.b16 %v1459_v9, %v1458_v20  ;;  %v1464_v39 = vpack.i.b16 %v1452_v4, %v1418_v18  ;;  %v1466_v42 = vshrl.u32 %v1418_v18, 16  ;;  %v1480_v43 = vpack.i.b16 %v1453_v51, %v1419_v27  ;;  %5435 = vmatpush3.bf16.xpose.msra.mxu1 %v1934_v15 }
 0x4f0   :  { %v1476_v44 = vpack.i.b16 %v1475_v14, %v1474_v37  ;;  %v1482_v45 = vshrl.u32 %v1419_v27, 16  ;;  %v1486_v46 = vcombine.low %v1456_v19, %v1472_v35  ;;  %v1035_v47 = vpack.c.bf16 %v1031_v30, %v1031_v30  ;;  %5446 = vmatprep.subr.bf16.mxu1 %v5807_v16 }
 0x4f1   :  { %v1468_v50 = vpack.i.b16 %v1467_v11, %v1466_v42  ;;  %v1494_v52 = vcombine.low %v1464_v39, %v1480_v43  ;;  %v1033_v40 = vmul.f32 %v5718_v26, %v6033_v58  ;;  %v1888_v4 = vsel %vm802_vm2, %v1706_v56, 0 }
 0x4f2   :  { %v1484_v28 = vpack.i.b16 %v1483_v29, %v1482_v45  ;;  %v1511_v31 = vcombine.low %v1460_v33, %v1476_v44  ;;  %5407 = vmatmul.mubr.msk.bf16.vlgmr.msra.gmra.mrb[12].mxu0 %vm802_vm2, %v1035_v47  ;;  %v1493_v22 = vrot.slane %v1486_v46, %v5939_v12  ;;  %v1712_v51 = vpack.i.b16 %v1703_v62, %v1678_v49 }
 0x4f3   :  { %v1501_v55 = vrot.slane %v1494_v52, %v5939_v12  ;;  %5417 = vmatpush3.bf16.msra.mxu0 %v1136_v53  ;;  %5418 = vmatprep.mubr.msk.bf16.mxu0 %vm5808_vm1, %v5807_v16  ;;  %v1037_v57 = vpack.c.bf16 %v1033_v40, %v1033_v40  ;;  %v2026_v59 = vsel %vm802_vm2, %v1715_v8, 0 }
 0x4f4   :  { %v1519_v32 = vcombine.low %v1468_v50, %v1484_v28  ;;  %5428 = vmatprep.subr.bf16.mxu0 %v5807_v16  ;;  %v1518_v48 = vrot.slane %v1511_v31, %v5939_v12  ;;  %v1980_v9 = vsel %vm802_vm2, %v1712_v51, 0 }
 0x4f5   :  { %v1502_v41 = vcombine.low %v1493_v22, %v1501_v55 }
 0x4f6   :  { %v1526_v7 = vrot.slane %v1519_v32, %v5939_v12 }
 0x4f7   :  { %v1509_v21 = vrot.slane %v1502_v41, %v5942_v13 }
 0x4f8   :  { %v1527_v58 = vcombine.low %v1518_v48, %v1526_v7 }
 0x4f9   :  { %v1539_v5 = vshrl.u32 %v1509_v21, 16  ;;  %v1510_v0 = vcombine.high %v1509_v21, %v5815_v36 }
 0x4fa   :  { %5419 = vmatmul.mubr.msk.bf16.vlgmr.msra.gmra.mrb[16].mxu0 %vm802_vm2, %v1037_v57  ;;  %v1534_v1 = vrot.slane %v1527_v58, %v5942_v13 }
 0x4fb   :  { %5430 = vmatprep.mubr.msk.bf16.mxu0 %vm5808_vm1, %v5807_v16  ;;  %v1545_v11 = vshrl.u32 %v1510_v0, 16 }
 0x4fc   :  { %5429 = vmatpush3.bf16.xpose.msra.mxu0 %v1888_v4  ;;  %v1540_v6 = vshrl.u32 %v1534_v1, 16  ;;  %v1535_v61 = vcombine.high %v1534_v1, %v5815_v36  ;;  %v1538_v10 = vpack.i.b16 %v1534_v1, %v1509_v21 }
 0x4fd   :  { %5440 = vmatprep.subr.bf16.mxu0 %v5807_v16 }
 0x4fe   :  { %v1541_v54 = vpack.i.b16 %v1540_v6, %v1539_v5  ;;  %v1546_v23 = vshrl.u32 %v1535_v61, 16  ;;  %v1544_v15 = vpack.i.b16 %v1535_v61, %v1510_v0 }
 0x500   :  { %5437 = vmatmul.mubr.msk.bf16.vlgmr.msra.gmra.mrb[24].mxu1 %vm802_vm2, %v1541_v54  ;;  %v1547_v14 = vpack.i.b16 %v1546_v23, %v1545_v11 }
 0x501   :  { %5447 = vmatpush3.bf16.xpose.msra.mxu1 %v2026_v59  ;;  %5448 = vmatprep.mubr.msk.bf16.mxu1 %vm5808_vm1, %v5807_v16 }
 0x502   :  { %5458 = vmatprep.subr.bf16.mxu1 %v5807_v16 }
 0x503   :  { %5431 = vmatmul.mubr.msk.bf16.vlgmr.msra.gmra.mrb[20].mxu0 %vm802_vm2, %v1538_v10 }
 0x504   :  { %5441 = vmatpush3.bf16.xpose.msra.mxu0 %v1980_v9  ;;  %5442 = vmatprep.mubr.msk.bf16.mxu0 %vm5808_vm1, %v5807_v16 }
 0x505   :  { %5452 = vmatprep.subr.bf16.mxu0 %v5807_v16 }
 0x508   :  { %5449 = vmatmul.mubr.msk.bf16.vlgmr.msra.gmra.mrb[28].mxu1 %vm802_vm2, %v1547_v14 }
 0x509   :  { %5460 = vmatprep.mubr.msk.bf16.mxu1 %vm5808_vm1, %v5807_v16 }
 0x50b   :  { %5443 = vmatmul.mubr.msk.bf16.vlgmr.msra.gmra.mrb[24].mxu0 %vm802_vm2, %v1544_v15 }
 0x50c   :  { %5454 = vmatprep.mubr.msk.bf16.mxu0 %vm5808_vm1, %v5807_v16 }
 0x5b8   :  { %v1126_v17 = vpop.f32.mrb[16].mxu1 }
 0x5b9   :  { %v5414_v18 = vpop.f32.mrb[17].mxu1 }
 0x5ba   :  { %v1129_v27 = vpop.f32.mrb[18].mxu1 }
 0x5bb   :  { %v5415_v19 = vpop.f32.mrb[19].mxu1 }
 0x5c0   :  { %v1218_v20 = vpop.f32.mrb[20].mxu1 }
 0x5c1   :  { %v1240_v29 = vcombine.low %v1126_v17, %v1218_v20  ;;  %v1241_v30 = vcombine.high %v1126_v17, %v1218_v20  ;;  %v5426_v35 = vpop.f32.mrb[21].mxu1 }
 0x5c2   :  { %v1221_v37 = vpop.f32.mrb[22].mxu1 }
 0x5c3   :  { %v5427_v33 = vpop.f32.mrb[23].mxu1  ;;  %v1248_v52 = vrot.slane %v1240_v29, %v5939_v12  ;;  %v1255_v28 = vrot.slane %v1241_v30, %v5939_v12 }
 0x5c5   :  { %v1080_v39 = vpop.f32.mrb[12].mxu0 }
 0x5c6   :  { %v5408_v42 = vpop.f32.mrb[13].mxu0 }
 0x5c7   :  { %v1083_v43 = vpop.f32.mrb[14].mxu0 }
 0x5c8   :  { %v5409_v44 = vpop.f32.mrb[15].mxu0 }
 0x5cd   :  { %v1172_v45 = vpop.f32.mrb[16].mxu0 }
 0x5ce   :  { %v1224_v46 = vcombine.low %v1080_v39, %v1172_v45  ;;  %v1225_v47 = vcombine.high %v1080_v39, %v1172_v45  ;;  %v5420_v26 = vpop.f32.mrb[17].mxu0 }
 0x5cf   :  { %v1175_v50 = vpop.f32.mrb[18].mxu0 }
 0x5d0   :  { %v1232_v31 = vrot.slane %v1224_v46, %v5939_v12  ;;  %v1239_v53 = vrot.slane %v1225_v47, %v5939_v12  ;;  %v5421_v22 = vpop.f32.mrb[19].mxu0 }
 0x5d2   :  { %v1256_v55 = vcombine.low %v1232_v31, %v1248_v52  ;;  %v1257_v40 = vcombine.high %v1232_v31, %v1248_v52  ;;  %v1272_v32 = vcombine.low %v1239_v53, %v1255_v28  ;;  %v1273_v62 = vcombine.high %v1239_v53, %v1255_v28 }
 0x5d3   :  { %v1970_v41 = vpop.f32.mrb[24].mxu1  ;;  %v292_v31 = vadd.f32 %v5936_v2, %v6010_v3 }
 0x5d4   :  { %v1264_v48 = vrot.slane %v1256_v55, %v5942_v13  ;;  %v1271_v7 = vrot.slane %v1257_v40, %v5942_v13  ;;  %v1280_v49 = vrot.slane %v1272_v32, %v5942_v13  ;;  %v1287_v56 = vrot.slane %v1273_v62, %v5942_v13  ;;  %v5438_v21 = vpop.f32.mrb[25].mxu1 }
 0x5d5   :  { %v2069_v58 = vmul.f32 0.35355338, %v1970_v41  ;;  %v1973_v57 = vpop.f32.mrb[26].mxu1  ;;  %v1379_v22 = vpack.c.bf16 %v292_v31, %v292_v31 }
 0x5d6   :  { %v1292_v63 = vcombine.low %v1264_v48, %v1271_v7  ;;  %v5205_v1 = vcombine.high %v1264_v48, %v1271_v7  ;;  %v1308_v60 = vcombine.low %v1280_v49, %v1287_v56  ;;  %v5206_v4 = vcombine.high %v1280_v49, %v1287_v56  ;;  %v1924_v5 = vpop.f32.mrb[20].mxu0  ;;  %v5439_v6 = vpop.f32.mrb[27].mxu1 }
 0x5d7   :  { %v2068_v8 = vmul.f32 0.35355338, %v1924_v5  ;;  %v2075_v54 = vsel %vm802_vm2, %v2069_v58, -inf  ;;  %v5432_v61 = vpop.f32.mrb[21].mxu0 }
 0x5d8   :  { %v1299_v51 = vrot.slane %v1292_v63, %v5939_v12  ;;  %v1307_v59 = vrot.slane %v5205_v1, %v5939_v12  ;;  %v1315_v0 = vrot.slane %v1308_v60, %v5939_v12  ;;  %v1323_v10 = vrot.slane %v5206_v4, %v5939_v12  ;;  %2076 = vmax.xlane.f32.xlu0 %v2075_v54  ;;  %v1927_v23 = vpop.f32.mrb[22].mxu0 }
 0x5d9   :  { %v5433_v9 = vpop.f32.mrb[23].mxu0  ;;  %v2072_v11 = vsel %vm802_vm2, %v2068_v8, -inf }
 0x5da   :  { %2073 = vmax.xlane.f32.xlu1 %v2072_v11  ;;  %v1325_v14 = vcombine.high %v1299_v51, %v1307_v59  ;;  %v1341_v15 = vcombine.high %v1315_v0, %v1323_v10  ;;  %v1324_v17 = vcombine.low %v1299_v51, %v1307_v59  ;;  %v1340_v18 = vcombine.low %v1315_v0, %v1323_v10 }
 0x5db   :  { %v2062_v27 = vpop.f32.mrb[28].mxu1  ;;  %v1729_v59 = vrot.slane %v1379_v22, %v5939_v12 }
 0x5dc   :  { %v5450_v19 = vpop.f32.mrb[29].mxu1  ;;  %v6192_v20 = vrot.slane %v1325_v14, %v5942_v13  ;;  %v6195_v29 = vrot.slane %v1341_v15, %v5942_v13  ;;  %v6198_v30 = vrot.slane %v1324_v17, %v5942_v13  ;;  %v6201_v37 = vrot.slane %v1340_v18, %v5942_v13 }
 0x5dd   :  { %v2065_v35 = vpop.f32.mrb[30].mxu1  ;;  %v2071_v50 = vmul.f32 0.35355338, %v2062_v27 }
 0x5de   :  { %v2016_v33 = vpop.f32.mrb[24].mxu0  ;;  %v5451_v39 = vpop.f32.mrb[31].mxu1  ;;  %v1358_v42 = vcombine.low %v6192_v20, %v6195_v29  ;;  %v1359_v43 = vcombine.high %v6192_v20, %v6195_v29  ;;  %v1356_v46 = vcombine.low %v6198_v30, %v6201_v37  ;;  %v1357_v47 = vcombine.high %v6198_v30, %v6201_v37  ;;  %v6332_v37 = vld [vmem:[%s6898_s2] sm:$0xff] }
 0x5df   :  { %v2070_v44 = vmul.f32 0.35355338, %v2016_v33  ;;  %v5444_v45 = vpop.f32.mrb[25].mxu0  ;;  %v2081_v53 = vsel %vm802_vm2, %v2071_v50, -inf  ;;  %v2458_v30 = vsub.s32 3, %v5883_v24 }
 0x5e0   :  { %v2019_v26 = vpop.f32.mrb[26].mxu0 }
 0x5e1   :  { %v5445_v52 = vpop.f32.mrb[27].mxu0  ;;  %v2078_v28 = vsel %vm802_vm2, %v2070_v44, -inf }
 0x5e2   :  { %2079 = vmax.xlane.f32.xlu0 %v2078_v28 }
 0x5e6   :  { %2082 = vmax.xlane.f32.xlu0 %v2081_v53 }
 0x5eb   :  { %1717 = vrot.lane.b32.xlu1 %v1379_v22, %s5810_s8 }
 0x665   :  { %v2077_v55 = vpop.xlane.xlu0 %2076 }
 0x666   :  { %v2085_v40 = vsub.f32 %v2069_v58, %v2077_v55 }
 0x667   :  { %v2074_v32 = vpop.xlane.xlu1 %2073 }
 0x668   :  { %v2090_v62 = vmul.f32 1.442695, %v2085_v40  ;;  %v2084_v41 = vsub.f32 %v2068_v8, %v2074_v32 }
 0x66a   :  { %5719 = vpow2.f32 %v2090_v62  ;;  %v2088_v48 = vmul.f32 1.442695, %v2084_v41 }
 0x66b   :  { %v1718_v8 = vpop.permute.xlu1 %1717 }
 0x66c   :  { %5721 = vpow2.f32 %v2088_v48  ;;  %v1763_v23 = vrot.slane %v1718_v8, %v5939_v12 }
 0x66f   :  { %v2080_v56 = vpop.xlane.xlu0 %2079 }
 0x670   :  { %v2086_v57 = vsub.f32 %v2070_v44, %v2080_v56 }
 0x672   :  { %v2092_v1 = vmul.f32 1.442695, %v2086_v57 }
 0x673   :  { %v2083_v21 = vpop.xlane.xlu0 %2082 }
 0x674   :  { %v6216_v7 = vpop.eup %5719  ;;  %v2087_v58 = vsub.f32 %v2071_v50, %v2083_v21 }
 0x675   :  { %v2099_v49 = vsel %vm802_vm2, %v6216_v7, 0.0 }
 0x676   :  { %v6220_v2 = vpop.eup %5721  ;;  %2100 = vadd.xlane.f32.xlu0 %v2099_v49  ;;  %v2094_v63 = vmul.f32 1.442695, %v2087_v58 }
 0x677   :  { %v2096_v3 = vsel %vm802_vm2, %v6220_v2, 0.0 }
 0x678   :  { %2097 = vadd.xlane.f32.xlu1 %v2096_v3  ;;  %5723 = vpow2.f32 %v2094_v63 }
 0x679   :  { %5725 = vpow2.f32 %v2092_v1 }
 0x682   :  { %v6226_v60 = vpop.eup %5723 }
 0x683   :  { %v6228_v4 = vpop.eup %5725  ;;  %v2105_v5 = vsel %vm802_vm2, %v6226_v60, 0.0 }
 0x684   :  { %v2102_v6 = vsel %vm802_vm2, %v6228_v4, 0.0 }
 0x689   :  { %1721 = vrot.lane.b32.xlu1 %v1379_v22, %s5811_s9 }
 0x68c   :  { %1719 = vrot.lane.b32.xlu0 %v1379_v22, %s5812_s10 }
 0x6ab   :  { %2106 = vadd.xlane.f32.xlu0 %v2105_v5 }
 0x6ad   :  { %2103 = vadd.xlane.f32.xlu1 %v2102_v6 }
 0x703   :  { %v2101_v54 = vpop.xlane.xlu0 %2100 }
 0x704   :  { %5727 = vrcp.f32 %v2101_v54 }
 0x705   :  { %v2098_v61 = vpop.xlane.xlu1 %2097 }
 0x706   :  { %5729 = vrcp.f32 %v2098_v61 }
 0x707   :  { %v1720_v51 = vpop.permute.xlu0 %1719 }
 0x708   :  { %v1737_v0 = vrot.slane %v1720_v51, %v5939_v12 }
 0x709   :  { %v1722_v10 = vpop.permute.xlu1 %1721 }
 0x70a   :  { %v1738_v9 = vcombine.low %v1729_v59, %v1737_v0  ;;  %v1739_v11 = vcombine.high %v1729_v59, %v1737_v0  ;;  %v1771_v14 = vrot.slane %v1722_v10, %v5939_v12 }
 0x70c   :  { %v1746_v15 = vrot.slane %v1738_v9, %v5942_v13  ;;  %v1753_v17 = vrot.slane %v1739_v11, %v5942_v13  ;;  %v1772_v18 = vcombine.low %v1763_v23, %v1771_v14  ;;  %v1773_v27 = vcombine.high %v1763_v23, %v1771_v14 }
 0x70e   :  { %v1754_v19 = vcombine.high %v1746_v15, %v5815_v36  ;;  %v1755_v35 = vcombine.high %v1753_v17, %v5815_v36  ;;  %v1780_v33 = vrot.slane %v1772_v18, %v5942_v13  ;;  %v1787_v39 = vrot.slane %v1773_v27, %v5942_v13  ;;  %v5728_v6 = vpop.eup %5727 }
 0x70f   :  { %v1794_v44 = vshrl.u32 %v1746_v15, 16  ;;  %v1810_v45 = vshrl.u32 %v1753_v17, 16  ;;  %v2113_v18 = vmul.f32 %v5728_v6, %v6216_v7 }
 0x710   :  { %v1802_v26 = vshrl.u32 %v1754_v19, 16  ;;  %v1788_v50 = vcombine.high %v1780_v33, %v5815_v36  ;;  %v1789_v52 = vcombine.high %v1787_v39, %v5815_v36  ;;  %v1792_v28 = vpack.i.b16 %v1780_v33, %v1746_v15  ;;  %v5730_v51 = vpop.eup %5729 }
 0x711   :  { %v1818_v31 = vshrl.u32 %v1755_v35, 16  ;;  %v1795_v53 = vshrl.u32 %v1780_v33, 16  ;;  %v1808_v22 = vpack.i.b16 %v1787_v39, %v1753_v17  ;;  %v1811_v55 = vshrl.u32 %v1787_v39, 16 }
 0x712   :  { %v1800_v40 = vpack.i.b16 %v1788_v50, %v1754_v19  ;;  %v1803_v32 = vshrl.u32 %v1788_v50, 16  ;;  %v1816_v62 = vpack.i.b16 %v1789_v52, %v1755_v35  ;;  %v1819_v41 = vshrl.u32 %v1789_v52, 16 }
 0x713   :  { %v1796_v48 = vpack.i.b16 %v1795_v53, %v1794_v44  ;;  %v1812_v49 = vpack.i.b16 %v1811_v55, %v1810_v45  ;;  %v1822_v3 = vcombine.low %v1792_v28, %v1808_v22  ;;  %v2112_v9 = vmul.f32 %v5730_v51, %v6220_v2 }
 0x714   :  { %v1804_v56 = vpack.i.b16 %v1803_v32, %v1802_v26  ;;  %v1820_v21 = vpack.i.b16 %v1819_v41, %v1818_v31  ;;  %v1830_v58 = vcombine.low %v1800_v40, %v1816_v62  ;;  %v2117_v50 = vpack.c.bf16 %v2113_v18, %v2113_v18  ;;  %v5683_v62 = vld [vmem:[%s6899_s3 + $0x30] sm:$0xff]  }
 0x715   :  { %v1847_v57 = vcombine.low %v1796_v48, %v1812_v49  ;;  %v1829_v63 = vrot.slane %v1822_v3, %v5939_v12  ;;  %v2116_v45 = vpack.c.bf16 %v2112_v9, %v2112_v9 }
 0x716   :  { %v1855_v1 = vcombine.low %v1804_v56, %v1820_v21  ;;  %v1837_v5 = vrot.slane %v1830_v58, %v5939_v12 }
 0x717   :  { %v1854_v54 = vrot.slane %v1847_v57, %v5939_v12 }
 0x718   :  { %v1838_v8 = vcombine.low %v1829_v63, %v1837_v5  ;;  %v1862_v61 = vrot.slane %v1855_v1, %v5939_v12 }
 0x71a   :  { %v1845_v59 = vrot.slane %v1838_v8, %v5942_v13  ;;  %v1863_v0 = vcombine.low %v1854_v54, %v1862_v61 }
 0x71c   :  { %v1870_v10 = vrot.slane %v1863_v0, %v5942_v13  ;;  %v1846_v23 = vcombine.high %v1845_v59, %v5815_v36  ;;  %v1875_v14 = vshrl.u32 %v1845_v59, 16 }
 0x71e   :  { %v1874_v11 = vpack.i.b16 %v1870_v10, %v1845_v59  ;;  %v1876_v15 = vshrl.u32 %v1870_v10, 16  ;;  %v1871_v17 = vcombine.high %v1870_v10, %v5815_v36  ;;  %v1881_v27 = vshrl.u32 %v1846_v23, 16 }
 0x720   :  { %v2124_v19 = vsel %vm1042_vm3, %v1874_v11, 0  ;;  %v1877_v35 = vpack.i.b16 %v1876_v15, %v1875_v14  ;;  %v1880_v33 = vpack.i.b16 %v1871_v17, %v1846_v23  ;;  %v1882_v39 = vshrl.u32 %v1871_v17, 16 }
 0x721   :  { %5453 = vmatpush3.bf16.msra.mxu0 %v2124_v19 }
 0x722   :  { %v2170_v44 = vsel %vm1042_vm3, %v1877_v35, 0  ;;  %5464 = vmatprep.subr.bf16.mxu0 %v5807_v16  ;;  %v1883_v2 = vpack.i.b16 %v1882_v39, %v1881_v27  ;;  %v2216_v26 = vsel %vm1042_vm3, %v1880_v33, 0 }
 0x723   :  { %5459 = vmatpush3.bf16.msra.mxu1 %v2170_v44 }
 0x724   :  { %5455 = vmatmul.mubr.msk.bf16.vlgmr.msra.gmra.mrb[28].mxu0 %vm802_vm2, %v2116_v45  ;;  %5470 = vmatprep.subr.bf16.mxu1 %v5807_v16  ;;  %v2262_v7 = vsel %vm1042_vm3, %v1883_v2, 0 }
 0x725   :  { %5465 = vmatpush3.bf16.msra.mxu0 %v2216_v26  ;;  %5466 = vmatprep.mubr.msk.bf16.mxu0 %vm5808_vm1, %v5807_v16 }
 0x726   :  { %5461 = vmatmul.mubr.msk.bf16.vlgmr.msra.gmra.mrb[32].mxu1 %vm802_vm2, %v2117_v50  ;;  %5476 = vmatprep.subr.bf16.mxu0 %v5807_v16  ;;  %v5684_v50 = vld [vmem:[%s6899_s3 + $0x38] sm:$0xff]  }
 0x727   :  { %5471 = vmatpush3.bf16.msra.mxu1 %v2262_v7  ;;  %5472 = vmatprep.mubr.msk.bf16.mxu1 %vm5808_vm1, %v5807_v16 }
 0x728   :  { %5484 = vmatprep.subr.bf16.mxu1 %v5807_v16 }
 0x738   :  { %v2107_v52 = vpop.xlane.xlu0 %2106 }
 0x739   :  { %5731 = vrcp.f32 %v2107_v52 }
 0x73a   :  { %v2104_v28 = vpop.xlane.xlu1 %2103 }
 0x73b   :  { %5733 = vrcp.f32 %v2104_v28 }
 0x743   :  { %v5732_v31 = vpop.eup %5731 }
 0x744   :  { %v2115_v53 = vmul.f32 %v5732_v31, %v6226_v60  ;;  %v2474_v60 = vsel %vm69_vm0, %v5683_v62, 0 }
 0x745   :  { %v5734_v22 = vpop.eup %5733 }
 0x746   :  { %v2114_v55 = vmul.f32 %v5734_v22, %v6228_v4  ;;  %v2119_v40 = vpack.c.bf16 %v2115_v53, %v2115_v53  ;;  %v2477_v53 = vsel %vm69_vm0, %v5684_v50, 0  ;;  %v5686_v50 = vld [vmem:[%s6899_s3 + $0x58] sm:$0xff]  }
 0x748   :  { %5473 = vmatmul.mubr.msk.bf16.vlgmr.msra.gmra.mrb[36].mxu1 %vm802_vm2, %v2119_v40  ;;  %v2118_v32 = vpack.c.bf16 %v2114_v55, %v2114_v55 }
 0x749   :  { %5488 = vmatprep.mubr.msk.bf16.mxu1 %vm5808_vm1, %v5807_v16 }
 0x74a   :  { %5467 = vmatmul.mubr.msk.bf16.vlgmr.msra.gmra.mrb[32].mxu0 %vm802_vm2, %v2118_v32 }
 0x74b   :  { %5480 = vmatprep.mubr.msk.bf16.mxu0 %vm5808_vm1, %v5807_v16  ;;  %5477 = vmatpush3.bf16.xpose.msra.mxu0 %v2474_v60 }
 0x74c   :  { %5478 = vmatprep.subr.bf16.mxu0 %v5807_v16 }
 0x753   :  { %5479 = vmatpush3.bf16.xpose.msra.mxu0 %v2477_v53 }
 0x754   :  { %5492 = vmatprep.subr.bf16.mxu0 %v5807_v16 }
 0x7f7   :  { %v2160_v4 = vpop.f32.mrb[28].mxu0 }
 0x7f8   :  { %v5456_v41 = vpop.f32.mrb[29].mxu0 }
 0x7f9   :  { %v2163_v48 = vpop.f32.mrb[30].mxu0  ;;  %v2206_v49 = vpop.f32.mrb[32].mxu1 }
 0x7fa   :  { %v5457_v3 = vpop.f32.mrb[31].mxu0  ;;  %v5462_v56 = vpop.f32.mrb[33].mxu1 }
 0x7fb   :  { %v2209_v21 = vpop.f32.mrb[34].mxu1 }
 0x7fc   :  { %v5463_v58 = vpop.f32.mrb[35].mxu1 }
 0x81b   :  { %v2298_v57 = vpop.f32.mrb[36].mxu1 }
 0x81c   :  { %v2320_v63 = vcombine.low %v2206_v49, %v2298_v57  ;;  %v2321_v1 = vcombine.high %v2206_v49, %v2298_v57  ;;  %v5474_v5 = vpop.f32.mrb[37].mxu1 }
 0x81d   :  { %v2301_v6 = vpop.f32.mrb[38].mxu1  ;;  %v2252_v8 = vpop.f32.mrb[32].mxu0 }
 0x81e   :  { %v2304_v54 = vcombine.low %v2160_v4, %v2252_v8  ;;  %v2305_v61 = vcombine.high %v2160_v4, %v2252_v8  ;;  %v5475_v51 = vpop.f32.mrb[39].mxu1  ;;  %v5468_v59 = vpop.f32.mrb[33].mxu0  ;;  %v2328_v10 = vrot.slane %v2320_v63, %v5939_v12  ;;  %v2335_v23 = vrot.slane %v2321_v1, %v5939_v12 }
 0x81f   :  { %v2255_v0 = vpop.f32.mrb[34].mxu0 }
 0x820   :  { %v2312_v9 = vrot.slane %v2304_v54, %v5939_v12  ;;  %v2319_v11 = vrot.slane %v2305_v61, %v5939_v12  ;;  %v5469_v14 = vpop.f32.mrb[35].mxu0 }
 0x822   :  { %v2336_v15 = vcombine.low %v2312_v9, %v2328_v10  ;;  %v2337_v17 = vcombine.high %v2312_v9, %v2328_v10  ;;  %v2352_v18 = vcombine.low %v2319_v11, %v2335_v23  ;;  %v2353_v27 = vcombine.high %v2319_v11, %v2335_v23 }
 0x824   :  { %v2344_v19 = vrot.slane %v2336_v15, %v5942_v13  ;;  %v2351_v35 = vrot.slane %v2337_v17, %v5942_v13  ;;  %v2360_v33 = vrot.slane %v2352_v18, %v5942_v13  ;;  %v2367_v39 = vrot.slane %v2353_v27, %v5942_v13  ;;  %v5780_v15 = vld [vmem:[%s6896_s0] sm:$0xff] }
 0x826   :  { %v2372_v44 = vcombine.low %v2344_v19, %v2351_v35  ;;  %v5215_v45 = vcombine.high %v2344_v19, %v2351_v35  ;;  %v2388_v2 = vcombine.low %v2360_v33, %v2367_v39  ;;  %v5216_v26 = vcombine.high %v2360_v33, %v2367_v39  ;;  %v5781_v19 = vld [vmem:[%s6896_s0 + $0x8] sm:$0xff] }
 0x828   :  { %v2379_v7 = vrot.slane %v2372_v44, %v5939_v12  ;;  %v2387_v52 = vrot.slane %v5215_v45, %v5939_v12  ;;  %v2395_v28 = vrot.slane %v2388_v2, %v5939_v12  ;;  %v2403_v31 = vrot.slane %v5216_v26, %v5939_v12  ;;  %v5685_v44 = vld [vmem:[%s6899_s3 + $0x50] sm:$0xff]  }
 0x829   :  { %v2563_v45 = vsub.s32 6, %v5883_v24  ;;  %v2644_v2 = vsel %vm69_vm0, %v5685_v44, 0 }
 0x82a   :  { %v2405_v22 = vcombine.high %v2379_v7, %v2387_v52  ;;  %v2421_v55 = vcombine.high %v2395_v28, %v2403_v31  ;;  %v2404_v40 = vcombine.low %v2379_v7, %v2387_v52  ;;  %v2420_v32 = vcombine.low %v2395_v28, %v2403_v31  ;;  %v21_v52 = vld [vmem:[%s6897_s1] sm:$0xff]  ;;  %v22_v28 = vld [vmem:[%s6897_s1 + $0x8] sm:$0xff] }
 0x82b   :  { %v6357_v26 = vrot.slane %v6332_v37, %v2563_v45  ;;  %v2647_v7 = vsel %vm69_vm0, %v5686_v50, 0  ;;  %v6373_v31 = vpack.c.bf16 %v22_v28, %v21_v52 }
 0x82c   :  { %v2419_v62 = vrot.slane %v2405_v22, %v5942_v13  ;;  %v2435_v60 = vrot.slane %v2421_v55, %v5942_v13  ;;  %v2412_v4 = vrot.slane %v2404_v40, %v5942_v13  ;;  %v2428_v41 = vrot.slane %v2420_v32, %v5942_v13 }
 0x82e   :  { %v2438_v48 = vcombine.low %v2419_v62, %v2435_v60  ;;  %v2437_v49 = vcombine.high %v2412_v4, %v2428_v41  ;;  %v2436_v3 = vcombine.low %v2412_v4, %v2428_v41  ;;  %v2439_v56 = vcombine.high %v2419_v62, %v2435_v60 }
 0x830   :  { %v5652_v21 = vpack.i.bf16 %v2438_v48, %v1358_v42  ;;  %v5647_v58 = vpack.i.bf16 %v2437_v49, %v1357_v47  ;;  %v5657_v57 = vpack.i.bf16 %v2439_v56, %v1359_v43  ;;  %v5687_v49 = vld [vmem:[%s6899_s3 + $0x40] sm:$0xff]   ;;  %v5688_v56 = vld [vmem:[%s6899_s3 + $0x48] sm:$0xff]  }
 0x832   :  { %5653 = vrot.lane.b32.xlu1 %v5652_v21, %s5817_s16  ;;  %5648 = vrot.lane.b32.xlu0 %v5647_v58, %s5818_s17  ;;  %v2582_v21 = vsel %vm69_vm0, %v5688_v56, 0 }
 0x836   :  { %5658 = vrot.lane.b32.xlu1 %v5657_v57, %s5819_s18 }
 0x8a4   :  { %v5654_v63 = vpop.permute.xlu1 %5653  ;;  %v5649_v1 = vpop.permute.xlu0 %5648 }
 0x8a5   :  { %v5651_v42 = vunpack.i.h.bf16 %v5649_v1  ;;  %v5650_v5 = vunpack.i.l.bf16 %v5649_v1  ;;  %v5656_v6 = vunpack.i.h.bf16 %v5654_v63  ;;  %v5655_v8 = vunpack.i.l.bf16 %v5654_v63 }
 0x8a7   :  { %v1372_v20 = vsel %vm802_vm2, %v1356_v46, %v5650_v5  ;;  %v2452_v29 = vsel %vm802_vm2, %v2436_v3, %v5651_v42  ;;  %v2459_v46 = vrot.slane %v6332_v37, %v2458_v30  ;;  %v2579_v3 = vsel %vm69_vm0, %v5687_v49, 0 }
 0x8a8   :  { %v5659_v43 = vpop.permute.xlu1 %5658  ;;  %v1374_v61 = vsel %vm1373_vm4, %v1372_v20, %v5655_v8  ;;  %v2453_v51 = vsel %vm1373_vm4, %v2452_v29, %v5656_v6  ;;  %5485 = vmatpush3.bf16.xpose.msra.mxu1 %v2579_v3 }
 0x8a9   :  { %v5661_v47 = vunpack.i.h.bf16 %v5659_v43  ;;  %v5660_v54 = vunpack.i.l.bf16 %v5659_v43  ;;  %5486 = vmatprep.subr.bf16.mxu1 %v5807_v16 }
 0x8ab   :  { %v1376_v59 = vsel %vm1375_vm5, %v1374_v61, %v5660_v54  ;;  %v2454_v0 = vsel %vm1375_vm5, %v2453_v51, %v5661_v47  ;;  %v2550_v61 = vsub.s32 4, %v5883_v24 }
 0x8ac   :  { %v2455_v10 = vpack.c.bf16 %v2454_v0, %v1376_v59 }
 0x8ad   :  { %v2551_v59 = vrot.slane %v6332_v37, %v2550_v61  ;;  %v5689_v61 = vld [vmem:[%s6899_s3 + $0x60] sm:$0xff]  }
 0x8ae   :  { %5481 = vmatmul.mubr.msk.bf16.vlgmr.msra.gmra.mrb[36].mxu0 %vm69_vm0, %v2455_v10  ;;  %v2556_v10 = vsub.s32 5, %v5883_v24 }
 0x8af   :  { %5496 = vmatprep.mubr.msk.bf16.mxu0 %vm5808_vm1, %v5807_v16  ;;  %5493 = vmatpush3.bf16.xpose.msra.mxu0 %v2644_v2 }
 0x8b0   :  { %5494 = vmatprep.subr.bf16.mxu0 %v5807_v16  ;;  %5487 = vmatpush3.bf16.xpose.msra.mxu1 %v2582_v21 }
 0x8b1   :  { %5500 = vmatprep.subr.bf16.mxu1 %v5807_v16 }
 0x8b7   :  { %5495 = vmatpush3.bf16.xpose.msra.mxu0 %v2647_v7 }
 0x8b8   :  { %5508 = vmatprep.subr.bf16.mxu0 %v5807_v16 }
 0x8be   :  { %5497 = vmatmul.mubr.msk.bf16.vlgmr.msra.gmra.mrb[40].mxu0 %vm69_vm0, %v6373_v31 }
 0x8bf   :  { %5510 = vmatprep.mubr.msk.bf16.mxu0 %vm5808_vm1, %v5807_v16 }
 0x981   :  { %v2513_v23 = vpop.f32.mrb[36].mxu0 }
 0x982   :  { %v2514_v9 = vadd.f32 %v2513_v23, %v2459_v46  ;;  %v5482_v11 = vpop.f32.mrb[37].mxu0 }
 0x983   :  { %v2516_v14 = vpop.f32.mrb[38].mxu0  ;;  %v2557_v11 = vrot.slane %v6332_v37, %v2556_v10  ;;  %v2704_v10 = vsel %vm69_vm0, %v5689_v61, 0 }
 0x984   :  { %v6340_v17 = vadd.f32 %v5780_v15, %v2514_v9  ;;  %v2517_v18 = vadd.f32 %v2516_v14, %v2459_v46  ;;  %v5483_v27 = vpop.f32.mrb[39].mxu0 }
 0x986   :  { %v6345_v35 = vadd.f32 %v5781_v19, %v2517_v18  ;;  %v2522_v33 = vsel %vm69_vm0, %v6340_v17, 0.0 }
 0x987   :  { %2523 = vadd.xlane.f32.xlu1 %v2522_v33 }
 0x988   :  { %v2525_v39 = vsel %vm69_vm0, %v6345_v35, 0.0 }
 0x989   :  { %2526 = vadd.xlane.f32.xlu0 %v2525_v39 }
 0x991   :  { %v2683_v57 = vpop.f32.mrb[40].mxu0 }
 0x992   :  { %v5498_v1 = vpop.f32.mrb[41].mxu0 }
 0x993   :  { %v6396_v42 = vpop.f32.mrb[42].mxu0 }
 0x994   :  { %v5499_v6 = vpop.f32.mrb[43].mxu0 }
 0x998   :  { %2637 = vrot.lane.b32.xlu1 %v6357_v26, %s5809_s29 }
 0xa14   :  { %v2524_v53 = vpop.xlane.xlu1 %2523 }
 0xa15   :  { %v2528_v22 = vmul.f32 0.03125, %v2524_v53 }
 0xa16   :  { %v2527_v55 = vpop.xlane.xlu0 %2526 }
 0xa17   :  { %v2530_v40 = vsub.f32 %v6340_v17, %v2528_v22  ;;  %v2529_v32 = vmul.f32 0.03125, %v2527_v55 }
 0xa18   :  { %v6393_v58 = vpop.permute.xlu1 %2637 }
 0xa19   :  { %v2531_v62 = vsub.f32 %v6345_v35, %v2529_v32  ;;  %v2532_v60 = vmul.f32 %v2530_v40, %v2530_v40  ;;  %v2684_v63 = vadd.f32 %v2683_v57, %v6393_v58 }
 0xa1b   :  { %v2534_v4 = vsel %vm69_vm0, %v2532_v60, 0.0  ;;  %v2533_v41 = vmul.f32 %v2531_v62, %v2531_v62  ;;  %v2751_v5 = vpack.c.bf16 %v2684_v63, %v2684_v63 }
 0xa1c   :  { %2535 = vadd.xlane.f32.xlu0 %v2534_v4 }
 0xa1d   :  { %v2537_v48 = vsel %vm69_vm0, %v2533_v41, 0.0  ;;  %2924 = vrot.lane.b32.xlu1 %v2751_v5, %s5812_s10  ;;  %v2934_v44 = vrot.slane %v2751_v5, %v5939_v12 }
 0xa20   :  { %2538 = vadd.xlane.f32.xlu0 %v2537_v48 }
 0xa21   :  { %2926 = vrot.lane.b32.xlu1 %v2751_v5, %s5811_s9 }
 0xa36   :  { %2922 = vrot.lane.b32.xlu0 %v2751_v5, %s5810_s8 }
 0xa8f   :  { %v2925_v19 = vpop.permute.xlu1 %2924 }
 0xa90   :  { %v2942_v45 = vrot.slane %v2925_v19, %v5939_v12 }
 0xa92   :  { %v2943_v50 = vcombine.low %v2934_v44, %v2942_v45  ;;  %v2944_v7 = vcombine.high %v2934_v44, %v2942_v45 }
 0xa93   :  { %v2927_v33 = vpop.permute.xlu1 %2926 }
 0xa94   :  { %v2976_v2 = vrot.slane %v2927_v33, %v5939_v12  ;;  %v2951_v53 = vrot.slane %v2943_v50, %v5942_v13  ;;  %v2958_v22 = vrot.slane %v2944_v7, %v5942_v13 }
 0xa96   :  { %v2959_v32 = vcombine.high %v2951_v53, %v5815_v36  ;;  %v2999_v41 = vshrl.u32 %v2951_v53, 16  ;;  %v3015_v49 = vshrl.u32 %v2958_v22, 16 }
 0xa98   :  { %v3007_v48 = vshrl.u32 %v2959_v32, 16 }
 0xaa9   :  { %v2536_v8 = vpop.xlane.xlu0 %2535 }
 0xaaa   :  { %v2540_v20 = vmul.f32 0.03125, %v2536_v8 }
 0xaac   :  { %v2542_v29 = vadd.f32 1e-05, %v2540_v20 }
 0xaad   :  { %v2539_v43 = vpop.xlane.xlu0 %2538 }
 0xaae   :  { %5735 = vrsqrt.f32 %v2542_v29  ;;  %v2541_v47 = vmul.f32 0.03125, %v2539_v43 }
 0xab0   :  { %v2543_v54 = vadd.f32 1e-05, %v2541_v47 }
 0xab1   :  { %v2923_v39 = vpop.permute.xlu0 %2922 }
 0xab2   :  { %5737 = vrsqrt.f32 %v2543_v54  ;;  %v2968_v37 = vrot.slane %v2923_v39, %v5939_v12 }
 0xab4   :  { %v2977_v52 = vcombine.low %v2968_v37, %v2976_v2  ;;  %v2978_v28 = vcombine.high %v2968_v37, %v2976_v2 }
 0xab6   :  { %v2985_v55 = vrot.slane %v2977_v52, %v5942_v13 }
 0xab8   :  { %v5736_v51 = vpop.eup %5735  ;;  %v2993_v60 = vcombine.high %v2985_v55, %v5815_v36  ;;  %v3000_v3 = vshrl.u32 %v2985_v55, 16  ;;  %v2997_v1 = vpack.i.b16 %v2985_v55, %v2951_v53 }
 0xab9   :  { %v2546_v0 = vmul.f32 %v5736_v51, %v2530_v40  ;;  %v2992_v40 = vrot.slane %v2978_v28, %v5942_v13 }
 0xaba   :  { %v3008_v21 = vshrl.u32 %v2993_v60, 16  ;;  %v3001_v6 = vpack.i.b16 %v3000_v3, %v2999_v41  ;;  %v3005_v8 = vpack.i.b16 %v2993_v60, %v2959_v32 }
 0xabb   :  { %v2552_v23 = vmul.f32 %v2551_v59, %v2546_v0  ;;  %v2994_v4 = vcombine.high %v2992_v40, %v5815_v36  ;;  %v3016_v57 = vshrl.u32 %v2992_v40, 16  ;;  %v3013_v5 = vpack.i.b16 %v2992_v40, %v2958_v22 }
 0xabc   :  { %v5738_v46 = vpop.eup %5737  ;;  %v3009_v20 = vpack.i.b16 %v3008_v21, %v3007_v48 }
 0xabd   :  { %v2547_v9 = vmul.f32 %v5738_v46, %v2531_v62  ;;  %v2558_v15 = vadd.f32 %v2557_v11, %v2552_v23  ;;  %v2960_v62 = vcombine.high %v2958_v22, %v5815_v36  ;;  %v3024_v63 = vshrl.u32 %v2994_v4, 16  ;;  %v5690_v23 = vld [vmem:[%s6899_s3 + $0x68] sm:$0xff]  }
 0xabe   :  { %v3017_v29 = vpack.i.b16 %v3016_v57, %v3015_v49  ;;  %v3027_v54 = vcombine.low %v2997_v1, %v3013_v5 }
 0xabf   :  { %v2553_v14 = vmul.f32 %v2551_v59, %v2547_v9  ;;  %v3023_v56 = vshrl.u32 %v2960_v62, 16  ;;  %v3021_v43 = vpack.i.b16 %v2994_v4, %v2960_v62 }
 0xac0   :  { %v3052_v59 = vcombine.low %v3001_v6, %v3017_v29  ;;  %v3034_v46 = vrot.slane %v3027_v54, %v5939_v12 }
 0xac1   :  { %v2559_v18 = vadd.f32 %v2557_v11, %v2553_v14  ;;  %v3025_v47 = vpack.i.b16 %v3024_v63, %v3023_v56  ;;  %v3035_v51 = vcombine.low %v3005_v8, %v3021_v43 }
 0xac2   :  { %v3059_v11 = vrot.slane %v3052_v59, %v5939_v12 }
 0xac3   :  { %v2560_v27 = vpack.c.bf16 %v2559_v18, %v2558_v15  ;;  %v3060_v0 = vcombine.low %v3009_v20, %v3025_v47  ;;  %v3042_v9 = vrot.slane %v3035_v51, %v5939_v12 }
 0xac5   :  { %5489 = vmatmul.mubr.msk.bf16.vlgmr.msra.gmra.mrb[40].mxu1 %vm69_vm0, %v2560_v27  ;;  %v3067_v14 = vrot.slane %v3060_v0, %v5939_v12  ;;  %v3043_v15 = vcombine.low %v3034_v46, %v3042_v9  ;;  %v2707_v27 = vsel %vm69_vm0, %v5690_v23, 0 }
 0xac6   :  { %5504 = vmatprep.mubr.msk.bf16.mxu1 %vm5808_vm1, %v5807_v16  ;;  %5501 = vmatpush3.bf16.xpose.msra.mxu1 %v2704_v10 }
 0xac7   :  { %5502 = vmatprep.subr.bf16.mxu1 %v5807_v16  ;;  %v3068_v18 = vcombine.low %v3059_v11, %v3067_v14  ;;  %v3050_v19 = vrot.slane %v3043_v15, %v5942_v13 }
 0xac9   :  { %v3075_v33 = vrot.slane %v3068_v18, %v5942_v13  ;;  %v3080_v44 = vshrl.u32 %v3050_v19, 16  ;;  %v6438_v50 = vcombine.high %v3050_v19, %v5815_v36 }
 0xacb   :  { %v3079_v39 = vpack.i.b16 %v3075_v33, %v3050_v19  ;;  %v3081_v45 = vshrl.u32 %v3075_v33, 16  ;;  %v6441_v7 = vcombine.high %v3075_v33, %v5815_v36  ;;  %v3086_v53 = vshrl.u32 %v6438_v50, 16 }
 0xacd   :  { %v3261_v2 = vsel %vm802_vm2, %v3079_v39, 0  ;;  %v3082_v37 = vpack.i.b16 %v3081_v45, %v3080_v44  ;;  %v3085_v28 = vpack.i.b16 %v6441_v7, %v6438_v50  ;;  %v3087_v22 = vshrl.u32 %v6441_v7, 16 }
 0xace   :  { %5503 = vmatpush3.bf16.xpose.msra.mxu1 %v2707_v27  ;;  %5509 = vmatpush3.bf16.xpose.msra.mxu0 %v3261_v2 }
 0xacf   :  { %5514 = vmatprep.subr.bf16.mxu1 %v5807_v16  ;;  %5520 = vmatprep.subr.bf16.mxu0 %v5807_v16  ;;  %v3307_v52 = vsel %vm802_vm2, %v3082_v37, 0  ;;  %v6451_v55 = vpack.i.b16 %v3087_v22, %v3086_v53 }
 0xad5   :  { %5505 = vmatmul.mubr.msk.bf16.vlgmr.msra.gmra.mrb[44].mxu1 %vm69_vm0, %v6373_v31 }
 0xad6   :  { %5515 = vmatpush3.bf16.xpose.msra.mxu1 %v3307_v52  ;;  %5516 = vmatprep.mubr.msk.bf16.mxu1 %vm5808_vm1, %v5807_v16 }
 0xad7   :  { %5526 = vmatprep.subr.bf16.mxu1 %v5807_v16 }
 0xb98   :  { %v2618_v40 = vpop.f32.mrb[40].mxu1 }
 0xb99   :  { %v2619_v32 = vadd.f32 %v2618_v40, %v6357_v26  ;;  %v5490_v62 = vpop.f32.mrb[41].mxu1 }
 0xb9a   :  { %v6457_v60 = vpop.f32.mrb[42].mxu1 }
 0xb9b   :  { %v2750_v4 = vpack.c.bf16 %v2619_v32, %v2619_v32  ;;  %v5491_v41 = vpop.f32.mrb[43].mxu1 }
 0xb9d   :  { %2754 = vrot.lane.b32.xlu1 %v2750_v4, %s5810_s8  ;;  %2756 = vrot.lane.b32.xlu0 %v2750_v4, %s5812_s10  ;;  %v2766_v57 = vrot.slane %v2750_v4, %v5939_v12 }
 0xba1   :  { %2758 = vrot.lane.b32.xlu1 %v2750_v4, %s5811_s9 }
 0xba8   :  { %v6462_v31 = vpop.f32.mrb[44].mxu1 }
 0xba9   :  { %v5506_v48 = vpop.f32.mrb[45].mxu1 }
 0xbaa   :  { %v6464_v49 = vpop.f32.mrb[46].mxu1 }
 0xbab   :  { %v5507_v3 = vpop.f32.mrb[47].mxu1 }
 0xc0f   :  { %v2755_v56 = vpop.permute.xlu1 %2754  ;;  %v2757_v21 = vpop.permute.xlu0 %2756 }
 0xc10   :  { %v2774_v63 = vrot.slane %v2757_v21, %v5939_v12  ;;  %v2800_v29 = vrot.slane %v2755_v56, %v5939_v12 }
 0xc12   :  { %v2775_v1 = vcombine.low %v2766_v57, %v2774_v63  ;;  %v2776_v5 = vcombine.high %v2766_v57, %v2774_v63 }
 0xc13   :  { %v2759_v6 = vpop.permute.xlu1 %2758 }
 0xc14   :  { %v2783_v8 = vrot.slane %v2775_v1, %v5942_v13  ;;  %v2808_v20 = vrot.slane %v2759_v6, %v5939_v12  ;;  %v2790_v43 = vrot.slane %v2776_v5, %v5942_v13 }
 0xc16   :  { %v2809_v47 = vcombine.low %v2800_v29, %v2808_v20  ;;  %v2810_v54 = vcombine.high %v2800_v29, %v2808_v20  ;;  %v2791_v61 = vcombine.high %v2783_v8, %v5815_v36  ;;  %v2792_v0 = vcombine.high %v2790_v43, %v5815_v36 }
 0xc17   :  { %v2831_v10 = vshrl.u32 %v2783_v8, 16  ;;  %v2847_v15 = vshrl.u32 %v2790_v43, 16 }
 0xc18   :  { %v2817_v51 = vrot.slane %v2809_v47, %v5942_v13  ;;  %v2824_v59 = vrot.slane %v2810_v54, %v5942_v13  ;;  %v2839_v14 = vshrl.u32 %v2791_v61, 16  ;;  %v2855_v45 = vshrl.u32 %v2792_v0, 16 }
 0xc1a   :  { %v2825_v46 = vcombine.high %v2817_v51, %v5815_v36  ;;  %v2826_v23 = vcombine.high %v2824_v59, %v5815_v36  ;;  %v2829_v9 = vpack.i.b16 %v2817_v51, %v2783_v8  ;;  %v2832_v11 = vshrl.u32 %v2817_v51, 16 }
 0xc1b   :  { %v2845_v18 = vpack.i.b16 %v2824_v59, %v2790_v43  ;;  %v2848_v27 = vshrl.u32 %v2824_v59, 16  ;;  %v3353_v8 = vsel %vm802_vm2, %v3085_v28, 0  ;;  %v3399_v43 = vsel %vm802_vm2, %v6451_v55, 0 }
 0xc1c   :  { %v2833_v19 = vpack.i.b16 %v2832_v11, %v2831_v10  ;;  %v2837_v33 = vpack.i.b16 %v2825_v46, %v2791_v61  ;;  %v2840_v39 = vshrl.u32 %v2825_v46, 16  ;;  %v2853_v44 = vpack.i.b16 %v2826_v23, %v2792_v0 }
 0xc1d   :  { %v2849_v2 = vpack.i.b16 %v2848_v27, %v2847_v15  ;;  %v2856_v37 = vshrl.u32 %v2826_v23, 16  ;;  %v2859_v52 = vcombine.low %v2829_v9, %v2845_v18 }
 0xc1e   :  { %v2841_v53 = vpack.i.b16 %v2840_v39, %v2839_v14  ;;  %v2867_v22 = vcombine.low %v2837_v33, %v2853_v44 }
 0xc1f   :  { %v2857_v40 = vpack.i.b16 %v2856_v37, %v2855_v45  ;;  %v2884_v32 = vcombine.low %v2833_v19, %v2849_v2  ;;  %v2866_v62 = vrot.slane %v2859_v52, %v5939_v12 }
 0xc20   :  { %v2874_v4 = vrot.slane %v2867_v22, %v5939_v12 }
 0xc21   :  { %v2892_v41 = vcombine.low %v2841_v53, %v2857_v40  ;;  %v2891_v3 = vrot.slane %v2884_v32, %v5939_v12  ;;  %v2687_v40 = vadd.f32 %v6396_v42, %v6393_v58 }
 0xc22   :  { %v2875_v48 = vcombine.low %v2866_v62, %v2874_v4 }
 0xc23   :  { %v2899_v56 = vrot.slane %v2892_v41, %v5939_v12  ;;  %v3829_v32 = vpack.c.bf16 %v2687_v40, %v2687_v40 }
 0xc24   :  { %v2882_v57 = vrot.slane %v2875_v48, %v5942_v13 }
 0xc25   :  { %v2900_v21 = vcombine.low %v2891_v3, %v2899_v56 }
 0xc26   :  { %v2912_v5 = vshrl.u32 %v2882_v57, 16  ;;  %v2883_v47 = vcombine.high %v2882_v57, %v5815_v36 }
 0xc27   :  { %v2907_v63 = vrot.slane %v2900_v21, %v5942_v13 }
 0xc28   :  { %v2918_v28 = vshrl.u32 %v2883_v47, 16 }
 0xc29   :  { %v2911_v1 = vpack.i.b16 %v2907_v63, %v2882_v57  ;;  %v2913_v6 = vshrl.u32 %v2907_v63, 16  ;;  %v2908_v29 = vcombine.high %v2907_v63, %v5815_v36 }
 0xc2b   :  { %5511 = vmatmul.mubr.msk.bf16.vlgmr.msra.gmra.mrb[44].mxu0 %vm802_vm2, %v2911_v1  ;;  %v2914_v20 = vpack.i.b16 %v2913_v6, %v2912_v5  ;;  %v2919_v50 = vshrl.u32 %v2908_v29, 16  ;;  %v2917_v7 = vpack.i.b16 %v2908_v29, %v2883_v47 }
 0xc2c   :  { %5521 = vmatpush3.bf16.xpose.msra.mxu0 %v3353_v8  ;;  %5522 = vmatprep.mubr.msk.bf16.mxu0 %vm5808_vm1, %v5807_v16 }
 0xc2d   :  { %5517 = vmatmul.mubr.msk.bf16.vlgmr.msra.gmra.mrb[48].mxu1 %vm802_vm2, %v2914_v20  ;;  %5532 = vmatprep.subr.bf16.mxu0 %v5807_v16  ;;  %v2920_v54 = vpack.i.b16 %v2919_v50, %v2918_v28 }
 0xc2e   :  { %5527 = vmatpush3.bf16.xpose.msra.mxu1 %v3399_v43  ;;  %5528 = vmatprep.mubr.msk.bf16.mxu1 %vm5808_vm1, %v5807_v16 }
 0xc2f   :  { %5538 = vmatprep.subr.bf16.mxu1 %v5807_v16 }
 0xc33   :  { %5523 = vmatmul.mubr.msk.bf16.vlgmr.msra.gmra.mrb[48].mxu0 %vm802_vm2, %v2917_v7 }
 0xc34   :  { %5534 = vmatprep.mubr.msk.bf16.mxu0 %vm5808_vm1, %v5807_v16 }
 0xc35   :  { %5529 = vmatmul.mubr.msk.bf16.vlgmr.msra.gmra.mrb[52].mxu1 %vm802_vm2, %v2920_v54 }
 0xc36   :  { %5540 = vmatprep.mubr.msk.bf16.mxu1 %vm5808_vm1, %v5807_v16 }
 0xcfe   :  { %v3297_v55 = vpop.f32.mrb[44].mxu0 }
 0xcff   :  { %v3441_v61 = vmul.f32 0.35355338, %v3297_v55  ;;  %v5512_v51 = vpop.f32.mrb[45].mxu0 }
 0xd00   :  { %v3300_v59 = vpop.f32.mrb[46].mxu0  ;;  %v3343_v0 = vpop.f32.mrb[48].mxu1 }
 0xd01   :  { %v6506_v10 = vmul.f32 0.35355338, %v3343_v0  ;;  %v5513_v46 = vpop.f32.mrb[47].mxu0  ;;  %v5518_v23 = vpop.f32.mrb[49].mxu1  ;;  %v3445_v9 = vsel %vm802_vm2, %v3441_v61, -inf }
 0xd02   :  { %v3346_v11 = vpop.f32.mrb[50].mxu1  ;;  %3446 = vmax.xlane.f32.xlu0 %v3445_v9 }
 0xd03   :  { %v5519_v14 = vpop.f32.mrb[51].mxu1  ;;  %v3448_v15 = vsel %vm802_vm2, %v6506_v10, -inf }
 0xd04   :  { %3449 = vmax.xlane.f32.xlu1 %v3448_v15 }
 0xd06   :  { %v3389_v18 = vpop.f32.mrb[48].mxu0 }
 0xd07   :  { %v3443_v27 = vmul.f32 0.35355338, %v3389_v18  ;;  %v5524_v19 = vpop.f32.mrb[49].mxu0 }
 0xd08   :  { %v3392_v33 = vpop.f32.mrb[50].mxu0  ;;  %v3435_v39 = vpop.f32.mrb[52].mxu1 }
 0xd09   :  { %v3444_v44 = vmul.f32 0.35355338, %v3435_v39  ;;  %v5525_v45 = vpop.f32.mrb[51].mxu0  ;;  %v5530_v2 = vpop.f32.mrb[53].mxu1  ;;  %v3451_v37 = vsel %vm802_vm2, %v3443_v27, -inf  ;;  %v4012_v33 = vrot.slane %v3829_v32, %v5939_v12 }
 0xd0a   :  { %v3438_v52 = vpop.f32.mrb[54].mxu1  ;;  %3452 = vmax.xlane.f32.xlu0 %v3451_v37 }
 0xd0b   :  { %v5531_v53 = vpop.f32.mrb[55].mxu1  ;;  %v3454_v22 = vsel %vm802_vm2, %v3444_v44, -inf }
 0xd0e   :  { %3455 = vmax.xlane.f32.xlu0 %v3454_v22 }
 0xd24   :  { %2700 = vrot.lane.b32.xlu0 %v6357_v26, %s5816_s11 }
 0xd28   :  { %4000 = vrot.lane.b32.xlu0 %v3829_v32, %s5810_s8 }
 0xd8f   :  { %v3447_v62 = vpop.xlane.xlu0 %3446 }
 0xd90   :  { %v3457_v4 = vsub.f32 %v3441_v61, %v3447_v62 }
 0xd91   :  { %v3450_v50 = vpop.xlane.xlu1 %3449 }
 0xd92   :  { %v3461_v41 = vmul.f32 1.442695, %v3457_v4  ;;  %v3458_v7 = vsub.f32 %v6506_v10, %v3450_v50 }
 0xd94   :  { %5739 = vpow2.f32 %v3461_v41  ;;  %v3463_v28 = vmul.f32 1.442695, %v3458_v7 }
 0xd97   :  { %v3453_v48 = vpop.xlane.xlu0 %3452 }
 0xd98   :  { %v3459_v3 = vsub.f32 %v3443_v27, %v3453_v48 }
 0xd9a   :  { %v3465_v56 = vmul.f32 1.442695, %v3459_v3 }
 0xd9b   :  { %v3456_v21 = vpop.xlane.xlu0 %3455 }
 0xd9c   :  { %5741 = vpow2.f32 %v3465_v56  ;;  %v3460_v57 = vsub.f32 %v3444_v44, %v3456_v21 }
 0xd9e   :  { %v6518_v63 = vpop.eup %5739  ;;  %v3467_v1 = vmul.f32 1.442695, %v3460_v57 }
 0xd9f   :  { %v2701_v58 = vpop.permute.xlu0 %2700  ;;  %v3469_v42 = vsel %vm802_vm2, %v6518_v63, 0.0 }
 0xda0   :  { %5743 = vpow2.f32 %v3467_v1  ;;  %v2744_v5 = vadd.f32 %v6462_v31, %v2701_v58  ;;  %v6524_v6 = vadd.f32 %v6464_v49, %v2701_v58  ;;  %3470 = vadd.xlane.f32.xlu0 %v3469_v42  ;;  %v2622_v49 = vadd.f32 %v6457_v60, %v6357_v26 }
 0xda1   :  { %5745 = vpow2.f32 %v3463_v28 }
 0xda2   :  { %v2752_v8 = vpack.c.bf16 %v2744_v5, %v2744_v5  ;;  %v6541_v47 = vpack.c.bf16 %v2622_v49, %v2622_v49 }
 0xda3   :  { %v4001_v42 = vpop.permute.xlu0 %4000 }
 0xda4   :  { %3090 = vrot.lane.b32.xlu1 %v2752_v8, %s5810_s8  ;;  %v3102_v61 = vrot.slane %v2752_v8, %v5939_v12 }
 0xda6   :  { %v6527_v20 = vpop.eup %5741 }
 0xda7   :  { %v3475_v29 = vsel %vm802_vm2, %v6527_v20, 0.0 }
 0xda8   :  { %3476 = vadd.xlane.f32.xlu0 %v3475_v29  ;;  %3092 = vrot.lane.b32.xlu1 %v2752_v8, %s5812_s10 }
 0xdaa   :  { %v6532_v43 = vpop.eup %5743 }
 0xdab   :  { %v3478_v31 = vsel %vm802_vm2, %v6532_v43, 0.0  ;;  %v6548_v54 = vpop.eup %5745 }
 0xdac   :  { %3479 = vadd.xlane.f32.xlu0 %v3478_v31  ;;  %3094 = vrot.lane.b32.xlu1 %v2752_v8, %s5811_s9  ;;  %v3472_v26 = vsel %vm802_vm2, %v6548_v54, 0.0 }
 0xdb0   :  { %4002 = vrot.lane.b32.xlu1 %v3829_v32, %s5812_s10 }
 0xdb4   :  { %4004 = vrot.lane.b32.xlu1 %v3829_v32, %s5811_s9 }
 0xdb8   :  { %3832 = vrot.lane.b32.xlu1 %v6541_v47, %s5810_s8 }
 0xdc2   :  { %3834 = vrot.lane.b32.xlu0 %v6541_v47, %s5812_s10 }
 0xddc   :  { %3473 = vadd.xlane.f32.xlu1 %v3472_v26 }
 0xded   :  { %3836 = vrot.lane.b32.xlu1 %v6541_v47, %s5811_s9 }
 0xe16   :  { %v3091_v60 = vpop.permute.xlu1 %3090 }
 0xe17   :  { %v3136_v11 = vrot.slane %v3091_v60, %v5939_v12  ;;  %v4046_v60 = vrot.slane %v4001_v42, %v5939_v12 }
 0xe1a   :  { %v3093_v55 = vpop.permute.xlu1 %3092 }
 0xe1b   :  { %v3110_v51 = vrot.slane %v3093_v55, %v5939_v12 }
 0xe1d   :  { %v3111_v59 = vcombine.low %v3102_v61, %v3110_v51  ;;  %v3112_v0 = vcombine.high %v3102_v61, %v3110_v51 }
 0xe1e   :  { %v3095_v10 = vpop.permute.xlu1 %3094 }
 0xe1f   :  { %v3119_v46 = vrot.slane %v3111_v59, %v5942_v13  ;;  %v3126_v23 = vrot.slane %v3112_v0, %v5942_v13  ;;  %v3144_v9 = vrot.slane %v3095_v10, %v5939_v12 }
 0xe21   :  { %v3127_v14 = vcombine.high %v3119_v46, %v5815_v36  ;;  %v3145_v15 = vcombine.low %v3136_v11, %v3144_v9  ;;  %v3146_v18 = vcombine.high %v3136_v11, %v3144_v9  ;;  %v3128_v19 = vcombine.high %v3126_v23, %v5815_v36 }
 0xe22   :  { %v4003_v27 = vpop.permute.xlu1 %4002  ;;  %v3167_v44 = vshrl.u32 %v3119_v46, 16  ;;  %v3183_v52 = vshrl.u32 %v3126_v23, 16 }
 0xe23   :  { %v4020_v39 = vrot.slane %v4003_v27, %v5939_v12  ;;  %v3153_v45 = vrot.slane %v3145_v15, %v5942_v13  ;;  %v3160_v2 = vrot.slane %v3146_v18, %v5942_v13  ;;  %v3175_v37 = vshrl.u32 %v3127_v14, 16 }
 0xe24   :  { %v3191_v48 = vshrl.u32 %v3128_v19, 16 }
 0xe25   :  { %v4021_v53 = vcombine.low %v4012_v33, %v4020_v39  ;;  %v4022_v22 = vcombine.high %v4012_v33, %v4020_v39  ;;  %v3161_v40 = vcombine.high %v3153_v45, %v5815_v36  ;;  %v3162_v62 = vcombine.high %v3160_v2, %v5815_v36 }
 0xe26   :  { %v3165_v4 = vpack.i.b16 %v3153_v45, %v3119_v46  ;;  %v3168_v41 = vshrl.u32 %v3153_v45, 16  ;;  %v3181_v3 = vpack.i.b16 %v3160_v2, %v3126_v23  ;;  %v3184_v32 = vshrl.u32 %v3160_v2, 16  ;;  %v4005_v49 = vpop.permute.xlu1 %4004 }
 0xe27   :  { %v4029_v56 = vrot.slane %v4021_v53, %v5942_v13  ;;  %v3173_v57 = vpack.i.b16 %v3161_v40, %v3127_v14  ;;  %v3176_v1 = vshrl.u32 %v3161_v40, 16  ;;  %v3189_v58 = vpack.i.b16 %v3162_v62, %v3128_v19 }
 0xe28   :  { %v3169_v21 = vpack.i.b16 %v3168_v41, %v3167_v44  ;;  %v3185_v5 = vpack.i.b16 %v3184_v32, %v3183_v52  ;;  %v3192_v8 = vshrl.u32 %v3162_v62, 16  ;;  %v3195_v29 = vcombine.low %v3165_v4, %v3181_v3 }
 0xe29   :  { %v4036_v31 = vrot.slane %v4022_v22, %v5942_v13  ;;  %v3177_v50 = vpack.i.b16 %v3176_v1, %v3175_v37  ;;  %v3203_v7 = vcombine.low %v3173_v57, %v3189_v58  ;;  %v4037_v55 = vcombine.high %v4029_v56, %v5815_v36 }
 0xe2a   :  { %v3193_v28 = vpack.i.b16 %v3192_v8, %v3191_v48  ;;  %v3220_v26 = vcombine.low %v3169_v21, %v3185_v5  ;;  %v4054_v61 = vrot.slane %v4005_v49, %v5939_v12  ;;  %v3202_v51 = vrot.slane %v3195_v29, %v5939_v12 }
 0xe2b   :  { %v4038_v0 = vcombine.high %v4036_v31, %v5815_v36  ;;  %v3210_v46 = vrot.slane %v3203_v7, %v5939_v12  ;;  %v4077_v18 = vshrl.u32 %v4029_v56, 16  ;;  %v4085_v27 = vshrl.u32 %v4037_v55, 16 }
 0xe2c   :  { %v3228_v59 = vcombine.low %v3177_v50, %v3193_v28  ;;  %v4055_v23 = vcombine.low %v4046_v60, %v4054_v61  ;;  %v4056_v9 = vcombine.high %v4046_v60, %v4054_v61  ;;  %v3227_v14 = vrot.slane %v3220_v26, %v5939_v12 }
 0xe2d   :  { %v3471_v10 = vpop.xlane.xlu0 %3470  ;;  %v3211_v11 = vcombine.low %v3202_v51, %v3210_v46  ;;  %v4093_v39 = vshrl.u32 %v4036_v31, 16  ;;  %v4101_v44 = vshrl.u32 %v4038_v0, 16 }
 0xe2e   :  { %5747 = vrcp.f32 %v3471_v10  ;;  %v3235_v15 = vrot.slane %v3228_v59, %v5939_v12  ;;  %v4063_v19 = vrot.slane %v4055_v23, %v5942_v13  ;;  %v4070_v33 = vrot.slane %v4056_v9, %v5942_v13 }
 0xe2f   :  { %v3218_v45 = vrot.slane %v3211_v11, %v5942_v13 }
 0xe30   :  { %v3236_v2 = vcombine.low %v3227_v14, %v3235_v15  ;;  %v4071_v37 = vcombine.high %v4063_v19, %v5815_v36  ;;  %v4072_v52 = vcombine.high %v4070_v33, %v5815_v36  ;;  %v4075_v53 = vpack.i.b16 %v4063_v19, %v4029_v56 }
 0xe31   :  { %v4078_v22 = vshrl.u32 %v4063_v19, 16  ;;  %v4091_v40 = vpack.i.b16 %v4070_v33, %v4036_v31  ;;  %v4094_v62 = vshrl.u32 %v4070_v33, 16  ;;  %v3248_v41 = vshrl.u32 %v3218_v45, 16 }
 0xe32   :  { %v3243_v4 = vrot.slane %v3236_v2, %v5942_v13  ;;  %v4083_v3 = vpack.i.b16 %v4071_v37, %v4037_v55  ;;  %v4086_v32 = vshrl.u32 %v4071_v37, 16  ;;  %v4099_v21 = vpack.i.b16 %v4072_v52, %v4038_v0 }
 0xe33   :  { %v4079_v48 = vpack.i.b16 %v4078_v22, %v4077_v18  ;;  %v4095_v57 = vpack.i.b16 %v4094_v62, %v4093_v39  ;;  %v4102_v1 = vshrl.u32 %v4072_v52, 16  ;;  %v4105_v58 = vcombine.low %v4075_v53, %v4091_v40  ;;  %v3833_v52 = vpop.permute.xlu1 %3832 }
 0xe34   :  { %v3247_v5 = vpack.i.b16 %v3243_v4, %v3218_v45  ;;  %v4087_v8 = vpack.i.b16 %v4086_v32, %v4085_v27  ;;  %v4113_v29 = vcombine.low %v4083_v3, %v4099_v21  ;;  %v3249_v49 = vshrl.u32 %v3243_v4, 16 }
 0xe35   :  { %v3477_v42 = vpop.xlane.xlu0 %3476  ;;  %v4103_v56 = vpack.i.b16 %v4102_v1, %v4101_v44  ;;  %v4130_v50 = vcombine.low %v4079_v48, %v4095_v57  ;;  %v3219_v26 = vcombine.high %v3218_v45, %v5815_v36  ;;  %v3244_v60 = vcombine.high %v3243_v4, %v5815_v36 }
 0xe36   :  { %5749 = vrcp.f32 %v3477_v42  ;;  %v3497_v31 = vsel %vm1042_vm3, %v3247_v5, 0  ;;  %v3250_v28 = vpack.i.b16 %v3249_v49, %v3248_v41  ;;  %v4120_v55 = vrot.slane %v4113_v29, %v5939_v12 }
 0xe37   :  { %5533 = vmatpush3.bf16.msra.mxu0 %v3497_v31  ;;  %v4138_v61 = vcombine.low %v4087_v8, %v4103_v56  ;;  %v4112_v59 = vrot.slane %v4105_v58, %v5939_v12  ;;  %v3253_v10 = vpack.i.b16 %v3244_v60, %v3219_v26  ;;  %v4137_v23 = vrot.slane %v4130_v50, %v5939_v12 }
 0xe38   :  { %v5748_v7 = vpop.eup %5747  ;;  %5544 = vmatprep.subr.bf16.mxu0 %v5807_v16  ;;  %v3543_v0 = vsel %vm1042_vm3, %v3250_v28, 0  ;;  %v3878_v48 = vrot.slane %v3833_v52, %v5939_v12  ;;  %v3255_v21 = vshrl.u32 %v3244_v60, 16  ;;  %v3254_v58 = vshrl.u32 %v3219_v26, 16 }
 0xe39   :  { %v3485_v51 = vmul.f32 %v5748_v7, %v6518_v63  ;;  %5539 = vmatpush3.bf16.msra.mxu1 %v3543_v0  ;;  %v4145_v9 = vrot.slane %v4138_v61, %v5939_v12  ;;  %v4121_v11 = vcombine.low %v4112_v59, %v4120_v55  ;;  %v3589_v63 = vsel %vm1042_vm3, %v3253_v10, 0  ;;  %v3480_v45 = vpop.xlane.xlu0 %3479 }
 0xe3a   :  { %5550 = vmatprep.subr.bf16.mxu1 %v5807_v16  ;;  %v3256_v56 = vpack.i.b16 %v3255_v21, %v3254_v58 }
 0xe3b   :  { %v3489_v46 = vpack.c.bf16 %v3485_v51, %v3485_v51  ;;  %v4146_v14 = vcombine.low %v4137_v23, %v4145_v9  ;;  %v6604_v27 = vrot.slane %v4121_v11, %v5942_v13 }
 0xe3d   :  { %5535 = vmatmul.mubr.msk.bf16.vlgmr.msra.gmra.mrb[52].mxu0 %vm802_vm2, %v3489_v46  ;;  %v6601_v15 = vrot.slane %v4146_v14, %v5942_v13  ;;  %v3835_v2 = vpop.permute.xlu0 %3834 }
 0xe3e   :  { %5545 = vmatpush3.bf16.msra.mxu0 %v3589_v63  ;;  %5546 = vmatprep.mubr.msk.bf16.mxu0 %vm5808_vm1, %v5807_v16  ;;  %v3852_v37 = vrot.slane %v3835_v2, %v5939_v12 }
 0xe3f   :  { %5556 = vmatprep.subr.bf16.mxu0 %v5807_v16  ;;  %v4157_v33 = vpack.i.b16 %v6601_v15, %v6604_v27 }
 0xe40   :  { %v5750_v18 = vpop.eup %5749 }
 0xe41   :  { %v3487_v19 = vmul.f32 %v5750_v18, %v6527_v20  ;;  %v4339_v44 = vsel %vm802_vm2, %v4157_v33, 0  ;;  %v3844_v20 = vrot.slane %v6541_v47, %v5939_v12 }
 0xe43   :  { %v3491_v39 = vpack.c.bf16 %v3487_v19, %v3487_v19  ;;  %v3853_v53 = vcombine.low %v3844_v20, %v3852_v37  ;;  %v3854_v22 = vcombine.high %v3844_v20, %v3852_v37  ;;  %v4158_v20 = vshrl.u32 %v6604_v27, 16 }
 0xe45   :  { %5547 = vmatmul.mubr.msk.bf16.vlgmr.msra.gmra.mrb[56].mxu0 %vm802_vm2, %v3491_v39  ;;  %v3861_v62 = vrot.slane %v3853_v53, %v5942_v13  ;;  %v3868_v4 = vrot.slane %v3854_v22, %v5942_v13 }
 0xe46   :  { %5558 = vmatprep.mubr.msk.bf16.mxu0 %vm5808_vm1, %v5807_v16 }
 0xe47   :  { %5557 = vmatpush3.bf16.xpose.msra.mxu0 %v4339_v44  ;;  %v3869_v32 = vcombine.high %v3861_v62, %v5815_v36  ;;  %v3870_v47 = vcombine.high %v3868_v4, %v5815_v36  ;;  %v3909_v8 = vshrl.u32 %v3861_v62, 16  ;;  %v3925_v49 = vshrl.u32 %v3868_v4, 16 }
 0xe48   :  { %5568 = vmatprep.subr.bf16.mxu0 %v5807_v16  ;;  %v3635_v44 = vsel %vm1042_vm3, %v3256_v56, 0 }
 0xe49   :  { %v3917_v29 = vshrl.u32 %v3869_v32, 16  ;;  %v3933_v55 = vshrl.u32 %v3870_v47, 16 }
 0xe69   :  { %v3474_v40 = vpop.xlane.xlu1 %3473 }
 0xe6a   :  { %5751 = vrcp.f32 %v3474_v40 }
 0xe6b   :  { %5753 = vrcp.f32 %v3480_v45  ;;  %v4159_v45 = vshrl.u32 %v6601_v15, 16 }
 0xe6d   :  { %v3837_v41 = vpop.permute.xlu1 %3836 }
 0xe6e   :  { %v3886_v3 = vrot.slane %v3837_v41, %v5939_v12 }
 0xe70   :  { %v3887_v57 = vcombine.low %v3878_v48, %v3886_v3  ;;  %v3888_v1 = vcombine.high %v3878_v48, %v3886_v3 }
 0xe72   :  { %v3895_v42 = vrot.slane %v3887_v57, %v5942_v13  ;;  %v3902_v5 = vrot.slane %v3888_v1, %v5942_v13 }
 0xe74   :  { %v5752_v50 = vpop.eup %5751  ;;  %v3903_v31 = vcombine.high %v3895_v42, %v5815_v36  ;;  %v3904_v7 = vcombine.high %v3902_v5, %v5815_v36  ;;  %v3907_v28 = vpack.i.b16 %v3895_v42, %v3861_v62  ;;  %v3910_v60 = vshrl.u32 %v3895_v42, 16 }
 0xe75   :  { %v3486_v61 = vmul.f32 %v5752_v50, %v6548_v54  ;;  %v3923_v51 = vpack.i.b16 %v3902_v5, %v3868_v4  ;;  %v3926_v26 = vshrl.u32 %v3902_v5, 16  ;;  %v5754_v14 = vpop.eup %5753  ;;  %v4154_v62 = vcombine.high %v6601_v15, %v5815_v36 }
 0xe76   :  { %v3911_v59 = vpack.i.b16 %v3910_v60, %v3909_v8  ;;  %v3915_v0 = vpack.i.b16 %v3903_v31, %v3869_v32  ;;  %v3918_v10 = vshrl.u32 %v3903_v31, 16  ;;  %v3931_v46 = vpack.i.b16 %v3904_v7, %v3870_v47 }
 0xe77   :  { %v3927_v23 = vpack.i.b16 %v3926_v26, %v3925_v49  ;;  %v3934_v9 = vshrl.u32 %v3904_v7, 16  ;;  %v3937_v11 = vcombine.low %v3907_v28, %v3923_v51  ;;  %v3490_v63 = vpack.c.bf16 %v3486_v61, %v3486_v61 }
 0xe78   :  { %v3919_v18 = vpack.i.b16 %v3918_v10, %v3917_v29  ;;  %v3945_v19 = vcombine.low %v3915_v0, %v3931_v46  ;;  %v3488_v2 = vmul.f32 %v5754_v14, %v6532_v43  ;;  %v4160_v4 = vpack.i.b16 %v4159_v45, %v4158_v20 }
 0xe79   :  { %v3935_v33 = vpack.i.b16 %v3934_v9, %v3933_v55  ;;  %v3962_v39 = vcombine.low %v3911_v59, %v3927_v23  ;;  %5541 = vmatmul.mubr.msk.bf16.vlgmr.msra.gmra.mrb[56].mxu1 %vm802_vm2, %v3490_v63  ;;  %v3944_v37 = vrot.slane %v3937_v11, %v5939_v12  ;;  %v4129_v43 = vcombine.high %v6604_v27, %v5815_v36 }
 0xe7a   :  { %v3952_v54 = vrot.slane %v3945_v19, %v5939_v12  ;;  %5551 = vmatpush3.bf16.msra.mxu1 %v3635_v44  ;;  %5552 = vmatprep.mubr.msk.bf16.mxu1 %vm5808_vm1, %v5807_v16  ;;  %v3492_v48 = vpack.c.bf16 %v3488_v2, %v3488_v2  ;;  %v4385_v57 = vsel %vm802_vm2, %v4160_v4, 0  ;;  %v4165_v1 = vshrl.u32 %v4154_v62, 16 }
 0xe7b   :  { %v3970_v52 = vcombine.low %v3919_v18, %v3935_v33  ;;  %5562 = vmatprep.subr.bf16.mxu1 %v5807_v16  ;;  %v3969_v22 = vrot.slane %v3962_v39, %v5939_v12  ;;  %v4163_v21 = vpack.i.b16 %v4154_v62, %v4129_v43  ;;  %v4164_v58 = vshrl.u32 %v4129_v43, 16 }
 0xe7c   :  { %v3953_v53 = vcombine.low %v3944_v37, %v3952_v54 }
 0xe7d   :  { %v3977_v40 = vrot.slane %v3970_v52, %v5939_v12  ;;  %v4431_v27 = vsel %vm802_vm2, %v4163_v21, 0  ;;  %v4166_v5 = vpack.i.b16 %v4165_v1, %v4164_v58 }
 0xe7e   :  { %v3960_v3 = vrot.slane %v3953_v53, %v5942_v13 }
 0xe7f   :  { %v3978_v41 = vcombine.low %v3969_v22, %v3977_v40  ;;  %v4477_v56 = vsel %vm802_vm2, %v4166_v5, 0 }
 0xe80   :  { %v3990_v42 = vshrl.u32 %v3960_v3, 16  ;;  %v3961_v49 = vcombine.high %v3960_v3, %v5815_v36 }
 0xe81   :  { %5553 = vmatmul.mubr.msk.bf16.vlgmr.msra.gmra.mrb[60].mxu1 %vm802_vm2, %v3492_v48  ;;  %v3985_v32 = vrot.slane %v3978_v41, %v5942_v13 }
 0xe82   :  { %5564 = vmatprep.mubr.msk.bf16.mxu1 %vm5808_vm1, %v5807_v16  ;;  %v3996_v7 = vshrl.u32 %v3961_v49, 16 }
 0xe83   :  { %5563 = vmatpush3.bf16.xpose.msra.mxu1 %v4385_v57  ;;  %v3989_v15 = vpack.i.b16 %v3985_v32, %v3960_v3  ;;  %v3991_v47 = vshrl.u32 %v3985_v32, 16  ;;  %v3986_v8 = vcombine.high %v3985_v32, %v5815_v36 }
 0xe84   :  { %5574 = vmatprep.subr.bf16.mxu1 %v5807_v16 }
 0xe85   :  { %5559 = vmatmul.mubr.msk.bf16.vlgmr.msra.gmra.mrb[60].mxu0 %vm802_vm2, %v3989_v15  ;;  %v3992_v29 = vpack.i.b16 %v3991_v47, %v3990_v42  ;;  %v3995_v50 = vpack.i.b16 %v3986_v8, %v3961_v49  ;;  %v3997_v31 = vshrl.u32 %v3986_v8, 16 }
 0xe86   :  { %5569 = vmatpush3.bf16.xpose.msra.mxu0 %v4431_v27  ;;  %5570 = vmatprep.mubr.msk.bf16.mxu0 %vm5808_vm1, %v5807_v16 }
 0xe87   :  { %5580 = vmatprep.subr.bf16.mxu0 %v5807_v16  ;;  %v3998_v28 = vpack.i.b16 %v3997_v31, %v3996_v7 }
 0xe8a   :  { %5565 = vmatmul.mubr.msk.bf16.vlgmr.msra.gmra.mrb[64].mxu1 %vm802_vm2, %v3992_v29 }
 0xe8b   :  { %5575 = vmatpush3.bf16.xpose.msra.mxu1 %v4477_v56  ;;  %5576 = vmatprep.mubr.msk.bf16.mxu1 %vm5808_vm1, %v5807_v16 }
 0xe8c   :  { %5586 = vmatprep.subr.bf16.mxu1 %v5807_v16 }
 0xe8d   :  { %5571 = vmatmul.mubr.msk.bf16.vlgmr.msra.gmra.mrb[64].mxu0 %vm802_vm2, %v3995_v50 }
 0xe8e   :  { %5582 = vmatprep.mubr.msk.bf16.mxu0 %vm5808_vm1, %v5807_v16 }
 0xe92   :  { %5577 = vmatmul.mubr.msk.bf16.vlgmr.msra.gmra.mrb[68].mxu1 %vm802_vm2, %v3998_v28 }
 0xe93   :  { %5588 = vmatprep.mubr.msk.bf16.mxu1 %vm5808_vm1, %v5807_v16 }
 0xf10   :  { %v3533_v60 = vpop.f32.mrb[52].mxu0 }
 0xf11   :  { %v5536_v55 = vpop.f32.mrb[53].mxu0 }
 0xf12   :  { %v3536_v61 = vpop.f32.mrb[54].mxu0 }
 0xf13   :  { %v5537_v51 = vpop.f32.mrb[55].mxu0 }
 0xf18   :  { %v3625_v26 = vpop.f32.mrb[56].mxu0 }
 0xf19   :  { %v3677_v59 = vcombine.low %v3533_v60, %v3625_v26  ;;  %v3678_v0 = vcombine.high %v3533_v60, %v3625_v26  ;;  %v5548_v10 = vpop.f32.mrb[57].mxu0 }
 0xf1a   :  { %v3628_v46 = vpop.f32.mrb[58].mxu0 }
 0xf1b   :  { %v5549_v23 = vpop.f32.mrb[59].mxu0  ;;  %v3685_v54 = vrot.slane %v3677_v59, %v5939_v12  ;;  %v3692_v45 = vrot.slane %v3678_v0, %v5939_v12 }
 0xf4c   :  { %v3579_v9 = vpop.f32.mrb[56].mxu1 }
 0xf4d   :  { %v5542_v11 = vpop.f32.mrb[57].mxu1 }
 0xf4e   :  { %v3582_v63 = vpop.f32.mrb[58].mxu1 }
 0xf4f   :  { %v5543_v14 = vpop.f32.mrb[59].mxu1 }
 0xf54   :  { %v3671_v18 = vpop.f32.mrb[60].mxu1 }
 0xf55   :  { %v3693_v19 = vcombine.low %v3579_v9, %v3671_v18  ;;  %v3694_v33 = vcombine.high %v3579_v9, %v3671_v18  ;;  %v5554_v39 = vpop.f32.mrb[61].mxu1 }
 0xf56   :  { %v3674_v44 = vpop.f32.mrb[62].mxu1 }
 0xf57   :  { %v3701_v2 = vrot.slane %v3693_v19, %v5939_v12  ;;  %v3708_v37 = vrot.slane %v3694_v33, %v5939_v12  ;;  %v5555_v52 = vpop.f32.mrb[63].mxu1 }
 0xf58   :  { %v4375_v20 = vpop.f32.mrb[60].mxu0 }
 0xf59   :  { %v3709_v53 = vcombine.low %v3685_v54, %v3701_v2  ;;  %v3710_v22 = vcombine.high %v3685_v54, %v3701_v2  ;;  %v3725_v40 = vcombine.low %v3692_v45, %v3708_v37  ;;  %v3726_v62 = vcombine.high %v3692_v45, %v3708_v37  ;;  %v5560_v4 = vpop.f32.mrb[61].mxu0 }
 0xf5a   :  { %v4519_v41 = vmul.f32 0.35355338, %v4375_v20  ;;  %v4378_v48 = vpop.f32.mrb[62].mxu0  ;;  %v3830_v20 = vpack.c.bf16 %v6524_v6, %v6524_v6 }
 0xf5b   :  { %v3717_v43 = vrot.slane %v3709_v53, %v5942_v13  ;;  %v3724_v3 = vrot.slane %v3710_v22, %v5942_v13  ;;  %v3733_v32 = vrot.slane %v3725_v40, %v5942_v13  ;;  %v3740_v21 = vrot.slane %v3726_v62, %v5942_v13  ;;  %v5561_v57 = vpop.f32.mrb[63].mxu0 }
 0xf5c   :  { %v4523_v1 = vsel %vm802_vm2, %v4519_v41, -inf }
 0xf5d   :  { %v3745_v15 = vcombine.low %v3717_v43, %v3724_v3  ;;  %v5237_v47 = vcombine.high %v3717_v43, %v3724_v3  ;;  %v3761_v58 = vcombine.low %v3733_v32, %v3740_v21  ;;  %v5238_v27 = vcombine.high %v3733_v32, %v3740_v21  ;;  %4524 = vmax.xlane.f32.xlu0 %v4523_v1  ;;  %v4421_v42 = vpop.f32.mrb[64].mxu1 }
 0xf5e   :  { %v4520_v5 = vmul.f32 0.35355338, %v4421_v42  ;;  %v5566_v8 = vpop.f32.mrb[65].mxu1 }
 0xf5f   :  { %v3752_v29 = vrot.slane %v3745_v15, %v5939_v12  ;;  %v3760_v49 = vrot.slane %v5237_v47, %v5939_v12  ;;  %v3768_v56 = vrot.slane %v3761_v58, %v5939_v12  ;;  %v3776_v50 = vrot.slane %v5238_v27, %v5939_v12  ;;  %v4424_v31 = vpop.f32.mrb[66].mxu1 }
 0xf60   :  { %v5567_v7 = vpop.f32.mrb[67].mxu1  ;;  %v4467_v28 = vpop.f32.mrb[64].mxu0  ;;  %v4526_v60 = vsel %vm802_vm2, %v4520_v5, -inf }
 0xf61   :  { %v4521_v55 = vmul.f32 0.35355338, %v4467_v28  ;;  %4527 = vmax.xlane.f32.xlu1 %v4526_v60  ;;  %v5572_v61 = vpop.f32.mrb[65].mxu0  ;;  %v3778_v51 = vcombine.high %v3752_v29, %v3760_v49  ;;  %v3794_v26 = vcombine.high %v3768_v56, %v3776_v50  ;;  %v3777_v59 = vcombine.low %v3752_v29, %v3760_v49 }
 0xf62   :  { %v4470_v0 = vpop.f32.mrb[66].mxu0  ;;  %v3793_v10 = vcombine.low %v3768_v56, %v3776_v50  ;;  %v4180_v49 = vrot.slane %v3830_v20, %v5939_v12 }
 0xf63   :  { %v5573_v46 = vpop.f32.mrb[67].mxu0  ;;  %v4529_v23 = vsel %vm802_vm2, %v4521_v55, -inf  ;;  %v6685_v9 = vrot.slane %v3778_v51, %v5942_v13  ;;  %v6688_v11 = vrot.slane %v3794_v26, %v5942_v13  ;;  %v6691_v63 = vrot.slane %v3777_v59, %v5942_v13 }
 0xf64   :  { %4530 = vmax.xlane.f32.xlu0 %v4529_v23  ;;  %v6694_v14 = vrot.slane %v3793_v10, %v5942_v13 }
 0xf65   :  { %v4513_v18 = vpop.f32.mrb[68].mxu1  ;;  %v3811_v19 = vcombine.low %v6685_v9, %v6688_v11  ;;  %v3812_v33 = vcombine.high %v6685_v9, %v6688_v11 }
 0xf66   :  { %v4522_v39 = vmul.f32 0.35355338, %v4513_v18  ;;  %v5578_v44 = vpop.f32.mrb[69].mxu1  ;;  %v3809_v54 = vcombine.low %v6691_v63, %v6694_v14  ;;  %v3810_v45 = vcombine.high %v6691_v63, %v6694_v14  ;;  %v4909_v63 = vsub.s32 7, %v5883_v24  ;;  %v5782_v14 = vld [vmem:[%s6898_s2] sm:$0xff] }
 0xf67   :  { %v4516_v2 = vpop.f32.mrb[70].mxu1 }
 0xf68   :  { %v5579_v37 = vpop.f32.mrb[71].mxu1  ;;  %v4532_v52 = vsel %vm802_vm2, %v4522_v39, -inf }
 0xf69   :  { %4533 = vmax.xlane.f32.xlu0 %v4532_v52 }
 0xf72   :  { %4170 = vrot.lane.b32.xlu1 %v3830_v20, %s5812_s10 }
 0xfea   :  { %v4525_v53 = vpop.xlane.xlu0 %4524 }
 0xfeb   :  { %v4535_v22 = vsub.f32 %v4519_v41, %v4525_v53 }
 0xfed   :  { %v4539_v40 = vmul.f32 1.442695, %v4535_v22 }
 0xfee   :  { %v4528_v62 = vpop.xlane.xlu1 %4527 }
 0xfef   :  { %5755 = vpow2.f32 %v4539_v40  ;;  %v4536_v4 = vsub.f32 %v4520_v5, %v4528_v62 }
 0xff1   :  { %v4541_v48 = vmul.f32 1.442695, %v4536_v4  ;;  %v4531_v41 = vpop.xlane.xlu0 %4530 }
 0xff2   :  { %v4537_v1 = vsub.f32 %v4521_v55, %v4531_v41  ;;  %v4171_v8 = vpop.permute.xlu1 %4170 }
 0xff3   :  { %5757 = vpow2.f32 %v4541_v48  ;;  %v4188_v29 = vrot.slane %v4171_v8, %v5939_v12 }
 0xff4   :  { %v4543_v47 = vmul.f32 1.442695, %v4537_v1 }
 0xff5   :  { %v4189_v50 = vcombine.low %v4180_v49, %v4188_v29  ;;  %v4190_v31 = vcombine.high %v4180_v49, %v4188_v29 }
 0xff6   :  { %v4534_v21 = vpop.xlane.xlu0 %4533 }
 0xff7   :  { %v4538_v57 = vsub.f32 %v4522_v39, %v4534_v21  ;;  %v4197_v28 = vrot.slane %v4189_v50, %v5942_v13  ;;  %v4204_v55 = vrot.slane %v4190_v31, %v5942_v13 }
 0xff9   :  { %v6708_v43 = vpop.eup %5755  ;;  %v4545_v15 = vmul.f32 1.442695, %v4538_v57  ;;  %v4205_v59 = vcombine.high %v4197_v28, %v5815_v36  ;;  %v4206_v46 = vcombine.high %v4204_v55, %v5815_v36  ;;  %v4245_v39 = vshrl.u32 %v4197_v28, 16 }
 0xffa   :  { %v4547_v3 = vsel %vm802_vm2, %v6708_v43, 0.0  ;;  %v4261_v2 = vshrl.u32 %v4204_v55, 16 }
 0xffb   :  { %4548 = vadd.xlane.f32.xlu0 %v4547_v3  ;;  %5759 = vpow2.f32 %v4545_v15  ;;  %v4253_v44 = vshrl.u32 %v4205_v59, 16  ;;  %v4269_v22 = vshrl.u32 %v4206_v46, 16 }
 0xffc   :  { %5761 = vpow2.f32 %v4543_v47 }
 0xffd   :  { %v6712_v32 = vpop.eup %5757 }
 0xffe   :  { %v4550_v6 = vsel %vm802_vm2, %v6712_v32, 0.0 }
 0xfff   :  { %4551 = vadd.xlane.f32.xlu1 %v4550_v6 }
0x1005   :  { %v6718_v58 = vpop.eup %5759 }
0x1006   :  { %v4556_v27 = vsel %vm802_vm2, %v6718_v58, 0.0  ;;  %v6722_v42 = vpop.eup %5761 }
0x1007   :  { %v4553_v5 = vsel %vm802_vm2, %v6722_v42, 0.0 }
0x1010   :  { %4172 = vrot.lane.b32.xlu1 %v3830_v20, %s5811_s9 }
0x1011   :  { %4168 = vrot.lane.b32.xlu0 %v3830_v20, %s5810_s8 }
0x1030   :  { %4557 = vadd.xlane.f32.xlu0 %v4556_v27 }
0x1034   :  { %4554 = vadd.xlane.f32.xlu1 %v4553_v5 }
0x1088   :  { %v4549_v56 = vpop.xlane.xlu0 %4548 }
0x1089   :  { %5763 = vrcp.f32 %v4549_v56 }
0x108c   :  { %v4552_v7 = vpop.xlane.xlu1 %4551  ;;  %v4169_v60 = vpop.permute.xlu0 %4168 }
0x108d   :  { %v4214_v51 = vrot.slane %v4169_v60, %v5939_v12  ;;  %5765 = vrcp.f32 %v4552_v7 }
0x1090   :  { %v4173_v61 = vpop.permute.xlu1 %4172 }
0x1091   :  { %v4222_v26 = vrot.slane %v4173_v61, %v5939_v12 }
0x1093   :  { %v4223_v0 = vcombine.low %v4214_v51, %v4222_v26  ;;  %v4224_v10 = vcombine.high %v4214_v51, %v4222_v26  ;;  %v5764_v7 = vpop.eup %5763 }
0x1094   :  { %v4563_v51 = vmul.f32 %v5764_v7, %v6708_v43 }
0x1095   :  { %v4231_v23 = vrot.slane %v4223_v0, %v5942_v13  ;;  %v4238_v18 = vrot.slane %v4224_v10, %v5942_v13 }
0x1097   :  { %v4239_v37 = vcombine.high %v4231_v23, %v5815_v36  ;;  %v4240_v52 = vcombine.high %v4238_v18, %v5815_v36  ;;  %v4243_v20 = vpack.i.b16 %v4231_v23, %v4197_v28  ;;  %v4246_v53 = vshrl.u32 %v4231_v23, 16 }
0x1098   :  { %v4259_v40 = vpack.i.b16 %v4238_v18, %v4204_v55  ;;  %v4262_v62 = vshrl.u32 %v4238_v18, 16  ;;  %v5766_v55 = vpop.eup %5765 }
0x1099   :  { %v4247_v4 = vpack.i.b16 %v4246_v53, %v4245_v39  ;;  %v4251_v48 = vpack.i.b16 %v4239_v37, %v4205_v59  ;;  %v4254_v3 = vshrl.u32 %v4239_v37, 16  ;;  %v4267_v6 = vpack.i.b16 %v4240_v52, %v4206_v46 }
0x109a   :  { %v4263_v41 = vpack.i.b16 %v4262_v62, %v4261_v2  ;;  %v4270_v21 = vshrl.u32 %v4240_v52, 16  ;;  %v4273_v57 = vcombine.low %v4243_v20, %v4259_v40  ;;  %v4564_v46 = vmul.f32 %v5766_v55, %v6712_v32 }
0x109b   :  { %v4255_v1 = vpack.i.b16 %v4254_v3, %v4253_v44  ;;  %v4281_v15 = vcombine.low %v4251_v48, %v4267_v6  ;;  %v4567_v52 = vpack.c.bf16 %v4563_v51, %v4563_v51 }
0x109c   :  { %v4271_v47 = vpack.i.b16 %v4270_v21, %v4269_v22  ;;  %v4298_v27 = vcombine.low %v4247_v4, %v4263_v41  ;;  %v4280_v5 = vrot.slane %v4273_v57, %v5939_v12  ;;  %v4568_v20 = vpack.c.bf16 %v4564_v46, %v4564_v46  ;;  %v5691_v41 = vld [vmem:[%s6899_s3 + $0x70] sm:$0xff]  }
0x109d   :  { %v4288_v8 = vrot.slane %v4281_v15, %v5939_v12 }
0x109e   :  { %v4306_v29 = vcombine.low %v4255_v1, %v4271_v47  ;;  %v4305_v56 = vrot.slane %v4298_v27, %v5939_v12 }
0x109f   :  { %v4289_v49 = vcombine.low %v4280_v5, %v4288_v8 }
0x10a0   :  { %v4313_v50 = vrot.slane %v4306_v29, %v5939_v12 }
0x10a1   :  { %v4296_v31 = vrot.slane %v4289_v49, %v5942_v13 }
0x10a2   :  { %v4314_v28 = vcombine.low %v4305_v56, %v4313_v50 }
0x10a3   :  { %v4297_v60 = vcombine.high %v4296_v31, %v5815_v36  ;;  %v4326_v59 = vshrl.u32 %v4296_v31, 16 }
0x10a4   :  { %v4321_v61 = vrot.slane %v4314_v28, %v5942_v13 }
0x10a5   :  { %v4332_v23 = vshrl.u32 %v4297_v60, 16 }
0x10a6   :  { %v4325_v26 = vpack.i.b16 %v4321_v61, %v4296_v31  ;;  %v4327_v0 = vshrl.u32 %v4321_v61, 16  ;;  %v4322_v10 = vcombine.high %v4321_v61, %v5815_v36 }
0x10a8   :  { %v4575_v18 = vsel %vm1042_vm3, %v4325_v26, 0  ;;  %v4328_v39 = vpack.i.b16 %v4327_v0, %v4326_v59  ;;  %v4331_v44 = vpack.i.b16 %v4322_v10, %v4297_v60  ;;  %v4333_v2 = vshrl.u32 %v4322_v10, 16 }
0x10a9   :  { %5581 = vmatpush3.bf16.msra.mxu0 %v4575_v18 }
0x10aa   :  { %v4621_v37 = vsel %vm1042_vm3, %v4328_v39, 0  ;;  %5592 = vmatprep.subr.bf16.mxu0 %v5807_v16  ;;  %v4334_v43 = vpack.i.b16 %v4333_v2, %v4332_v23  ;;  %v4667_v36 = vsel %vm1042_vm3, %v4331_v44, 0 }
0x10ab   :  { %5587 = vmatpush3.bf16.msra.mxu1 %v4621_v37 }
0x10ac   :  { %5583 = vmatmul.mubr.msk.bf16.vlgmr.msra.gmra.mrb[68].mxu0 %vm802_vm2, %v4567_v52  ;;  %5598 = vmatprep.subr.bf16.mxu1 %v5807_v16  ;;  %v4713_v32 = vsel %vm1042_vm3, %v4334_v43, 0 }
0x10ad   :  { %5593 = vmatpush3.bf16.msra.mxu0 %v4667_v36  ;;  %5594 = vmatprep.mubr.msk.bf16.mxu0 %vm5808_vm1, %v5807_v16 }
0x10ae   :  { %5589 = vmatmul.mubr.msk.bf16.vlgmr.msra.gmra.mrb[72].mxu1 %vm802_vm2, %v4568_v20  ;;  %5604 = vmatprep.subr.bf16.mxu0 %v5807_v16 }
0x10af   :  { %5599 = vmatpush3.bf16.msra.mxu1 %v4713_v32  ;;  %5600 = vmatprep.mubr.msk.bf16.mxu1 %vm5808_vm1, %v5807_v16 }
0x10b0   :  { %5612 = vmatprep.subr.bf16.mxu1 %v5807_v16 }
0x10bd   :  { %v4558_v53 = vpop.xlane.xlu0 %4557 }
0x10be   :  { %5767 = vrcp.f32 %v4558_v53  ;;  %v5692_v53 = vld [vmem:[%s6899_s3 + $0x78] sm:$0xff]  }
0x10c1   :  { %v4555_v22 = vpop.xlane.xlu1 %4554 }
0x10c2   :  { %5769 = vrcp.f32 %v4555_v22 }
0x10c8   :  { %v5768_v40 = vpop.eup %5767 }
0x10c9   :  { %v4566_v62 = vmul.f32 %v5768_v40, %v6718_v58  ;;  %v4925_v58 = vsel %vm69_vm0, %v5691_v41, 0 }
0x10cb   :  { %v4570_v4 = vpack.c.bf16 %v4566_v62, %v4566_v62 }
0x10cc   :  { %v5770_v48 = vpop.eup %5769 }
0x10cd   :  { %v4565_v3 = vmul.f32 %v5770_v48, %v6722_v42  ;;  %5601 = vmatmul.mubr.msk.bf16.vlgmr.msra.gmra.mrb[76].mxu1 %vm802_vm2, %v4570_v4  ;;  %v4928_v48 = vsel %vm69_vm0, %v5692_v53, 0 }
0x10ce   :  { %5620 = vmatprep.mubr.msk.bf16.mxu1 %vm5808_vm1, %v5807_v16 }
0x10cf   :  { %v4569_v6 = vpack.c.bf16 %v4565_v3, %v4565_v3 }
0x10d1   :  { %5595 = vmatmul.mubr.msk.bf16.vlgmr.msra.gmra.mrb[72].mxu0 %vm802_vm2, %v4569_v6 }
0x10d2   :  { %5608 = vmatprep.mubr.msk.bf16.mxu0 %vm5808_vm1, %v5807_v16  ;;  %5605 = vmatpush3.bf16.xpose.msra.mxu0 %v4925_v58 }
0x10d3   :  { %5606 = vmatprep.subr.bf16.mxu0 %v5807_v16 }
0x10da   :  { %5607 = vmatpush3.bf16.xpose.msra.mxu0 %v4928_v48 }
0x10db   :  { %5624 = vmatprep.subr.bf16.mxu0 %v5807_v16 }
0x117f   :  { %v4611_v42 = vpop.f32.mrb[68].mxu0 }
0x1180   :  { %v5584_v21 = vpop.f32.mrb[69].mxu0 }
0x1181   :  { %v4614_v57 = vpop.f32.mrb[70].mxu0  ;;  %v4657_v1 = vpop.f32.mrb[72].mxu1 }
0x1182   :  { %v5585_v15 = vpop.f32.mrb[71].mxu0  ;;  %v5590_v47 = vpop.f32.mrb[73].mxu1 }
0x1183   :  { %v4660_v27 = vpop.f32.mrb[74].mxu1 }
0x1184   :  { %v5591_v5 = vpop.f32.mrb[75].mxu1 }
0x11a0   :  { %v4749_v8 = vpop.f32.mrb[76].mxu1 }
0x11a1   :  { %v4771_v29 = vcombine.low %v4657_v1, %v4749_v8  ;;  %v4772_v49 = vcombine.high %v4657_v1, %v4749_v8  ;;  %v5602_v56 = vpop.f32.mrb[77].mxu1 }
0x11a2   :  { %v4752_v50 = vpop.f32.mrb[78].mxu1 }
0x11a3   :  { %v5603_v31 = vpop.f32.mrb[79].mxu1  ;;  %v4779_v51 = vrot.slane %v4771_v29, %v5939_v12  ;;  %v4786_v26 = vrot.slane %v4772_v49, %v5939_v12 }
0x11a4   :  { %v4703_v7 = vpop.f32.mrb[72].mxu0 }
0x11a5   :  { %v4755_v28 = vcombine.low %v4611_v42, %v4703_v7  ;;  %v4756_v60 = vcombine.high %v4611_v42, %v4703_v7  ;;  %v5596_v55 = vpop.f32.mrb[73].mxu0 }
0x11a6   :  { %v4706_v61 = vpop.f32.mrb[74].mxu0 }
0x11a7   :  { %v4763_v59 = vrot.slane %v4755_v28, %v5939_v12  ;;  %v4770_v0 = vrot.slane %v4756_v60, %v5939_v12  ;;  %v5597_v10 = vpop.f32.mrb[75].mxu0 }
0x11a9   :  { %v4787_v46 = vcombine.low %v4763_v59, %v4779_v51  ;;  %v4788_v23 = vcombine.high %v4763_v59, %v4779_v51  ;;  %v4803_v18 = vcombine.low %v4770_v0, %v4786_v26  ;;  %v4804_v39 = vcombine.high %v4770_v0, %v4786_v26 }
0x11ab   :  { %v4795_v44 = vrot.slane %v4787_v46, %v5942_v13  ;;  %v4802_v2 = vrot.slane %v4788_v23, %v5942_v13  ;;  %v4811_v37 = vrot.slane %v4803_v18, %v5942_v13  ;;  %v4818_v52 = vrot.slane %v4804_v39, %v5942_v13 }
0x11ad   :  { %v4823_v43 = vcombine.low %v4795_v44, %v4802_v2  ;;  %v5247_v36 = vcombine.high %v4795_v44, %v4802_v2  ;;  %v4839_v20 = vcombine.low %v4811_v37, %v4818_v52  ;;  %v5248_v32 = vcombine.high %v4811_v37, %v4818_v52  ;;  %v5693_v37 = vld [vmem:[%s6899_s3 + $0x80] sm:$0xff]  }
0x11af   :  { %v4830_v22 = vrot.slane %v4823_v43, %v5939_v12  ;;  %v4838_v40 = vrot.slane %v5247_v36, %v5939_v12  ;;  %v4846_v62 = vrot.slane %v4839_v20, %v5939_v12  ;;  %v4854_v4 = vrot.slane %v5248_v32, %v5939_v12 }
0x11b1   :  { %v4856_v3 = vcombine.high %v4830_v22, %v4838_v40  ;;  %v4872_v6 = vcombine.high %v4846_v62, %v4854_v4  ;;  %v4855_v41 = vcombine.low %v4830_v22, %v4838_v40  ;;  %v4871_v58 = vcombine.low %v4846_v62, %v4854_v4  ;;  %v5694_v4 = vld [vmem:[%s6899_s3 + $0x88] sm:$0xff]  }
0x11b2   :  { %v5043_v48 = vsel %vm69_vm0, %v5694_v4, 0 }
0x11b3   :  { %v4870_v42 = vrot.slane %v4856_v3, %v5942_v13  ;;  %v4886_v21 = vrot.slane %v4872_v6, %v5942_v13  ;;  %v4863_v57 = vrot.slane %v4855_v41, %v5942_v13  ;;  %v4879_v1 = vrot.slane %v4871_v58, %v5942_v13  ;;  %v5695_v3 = vld [vmem:[%s6899_s3 + $0x90] sm:$0xff]   ;;  %v5696_v41 = vld [vmem:[%s6899_s3 + $0x98] sm:$0xff]  }
0x11b4   :  { %v5046_v6 = vsel %vm69_vm0, %v5695_v3, 0  ;;  %v5049_v58 = vsel %vm69_vm0, %v5696_v41, 0 }
0x11b5   :  { %v4889_v15 = vcombine.low %v4870_v42, %v4886_v21  ;;  %v4888_v47 = vcombine.high %v4863_v57, %v4879_v1  ;;  %v4887_v12 = vcombine.low %v4863_v57, %v4879_v1  ;;  %v4890_v27 = vcombine.high %v4870_v42, %v4886_v21 }
0x11b7   :  { %v5667_v5 = vpack.i.bf16 %v4889_v15, %v3811_v19  ;;  %v5662_v8 = vpack.i.bf16 %v4888_v47, %v3810_v45  ;;  %v5672_v29 = vpack.i.bf16 %v4890_v27, %v3812_v33 }
0x11b9   :  { %5668 = vrot.lane.b32.xlu1 %v5667_v5, %s5817_s16  ;;  %5663 = vrot.lane.b32.xlu0 %v5662_v8, %s5818_s17 }
0x11bd   :  { %5673 = vrot.lane.b32.xlu1 %v5672_v29, %s5819_s18 }
0x122b   :  { %v5669_v13 = vpop.permute.xlu1 %5668  ;;  %v5664_v49 = vpop.permute.xlu0 %5663 }
0x122c   :  { %v5666_v56 = vunpack.i.h.bf16 %v5664_v49  ;;  %v5665_v50 = vunpack.i.l.bf16 %v5664_v49  ;;  %v5671_v31 = vunpack.i.h.bf16 %v5669_v13  ;;  %v5670_v19 = vunpack.i.l.bf16 %v5669_v13 }
0x122e   :  { %v3825_v45 = vsel %vm802_vm2, %v3809_v54, %v5665_v50  ;;  %v4903_v9 = vsel %vm802_vm2, %v4887_v12, %v5666_v56  ;;  %v4910_v54 = vrot.slane %v5782_v14, %v4909_v63  ;;  %v24_v12 = vld [vmem:[%s6898_s2 + $0x8] sm:$0xf] }
0x122f   :  { %v5674_v11 = vpop.permute.xlu1 %5673  ;;  %v3826_v28 = vsel %vm1373_vm4, %v3825_v45, %v5670_v19  ;;  %v4904_v60 = vsel %vm1373_vm4, %v4903_v9, %v5671_v31  ;;  %v5002_v5 = vrot.slane %v24_v12, %v99_v34  ;;  %v5008_v13 = vrot.slane %v24_v12, %v105_v38  ;;  %v5697_v9 = vld [vmem:[%s6899_s3 + $0xa0] sm:$0xff]   ;;  %v5698_v38 = vld [vmem:[%s6899_s3 + $0xa8] sm:$0xff]   ;;  %s5820_s3 = smov [#allocation2]  }
0x1230   :  { %v5676_v33 = vunpack.i.h.bf16 %v5674_v11  ;;  %v5675_v7 = vunpack.i.l.bf16 %v5674_v11  ;;  %v5122_v34 = vsel %vm5117_vm6, %v5697_v9, 0  ;;  %v5125_v11 = vsel %vm5117_vm6, %v5698_v38, 0  ;;  %s5177_s1 = sshll.u32 %s5820_s3, 4  ;;  %s5178_s1 = int_to_ptr.vmem [resolvable:$true] %s5177_s1 }
0x1231   :  { %s5783_s29 = scalar_lea.vmem %s5178_s1, 256  ;;  %p5788_p1 = scmp.lt.s32.totalorder %s5178_s1, %s5178_s1 }
0x1232   :  { %v3827_v55 = vsel %vm1375_vm5, %v3826_v28, %v5675_v7  ;;  %v4905_v61 = vsel %vm1375_vm5, %v4904_v60, %v5676_v33  ;;  %v5015_v33 = vrot.slane %v24_v12, %v112_v25  ;;  %v5106_v25 = vrot.slane %v24_v12, %v2458_v30  ;;  %p5784_p0 = scmp.ne.s32.totalorder %s5178_s1, %s5783_s29  ;;  %p5789_p2 = scmp.lt.s32.totalorder %s5783_s29, %s5783_s29 }
0x1233   :  { %v4906_v51 = vpack.c.bf16 %v4905_v61, %v3827_v55 }
0x1234   :  { %p5790_p3 = por %p5789_p2, %p5788_p1 }
0x1235   :  { %5609 = vmatmul.mubr.msk.bf16.vlgmr.msra.gmra.mrb[76].mxu0 %vm69_vm0, %v4906_v51 }
0x1236   :  { %5628 = vmatprep.mubr.msk.bf16.mxu0 %vm5808_vm1, %v5807_v16  ;;  %5625 = vmatpush3.bf16.xpose.msra.mxu0 %v5122_v34  ;;  %p5791_p4 = pnand %p5790_p3, %p5784_p0 }
0x1237   :  { %5626 = vmatprep.subr.bf16.mxu0 %v5807_v16 }
0x123e   :  { %5627 = vmatpush3.bf16.xpose.msra.mxu0 %v5125_v11 }
0x1308   :  { %v4964_v26 = vpop.f32.mrb[76].mxu0 }
0x1309   :  { %v4965_v59 = vadd.f32 %v4964_v26, %v4910_v54  ;;  %v5610_v0 = vpop.f32.mrb[77].mxu0 }
0x130a   :  { %v4967_v10 = vpop.f32.mrb[78].mxu0 }
0x130b   :  { %v6825_v46 = vadd.f32 %v4965_v59, %v6340_v17  ;;  %v4968_v23 = vadd.f32 %v4967_v10, %v4910_v54  ;;  %v5611_v18 = vpop.f32.mrb[79].mxu0  ;;  %v5040_v17 = vsel %vm69_vm0, %v5693_v37, 0 }
0x130c   :  { %5613 = vmatpush3.bf16.xpose.msra.mxu1 %v5040_v17 }
0x130d   :  { %v6828_v39 = vadd.f32 %v4968_v23, %v6345_v35  ;;  %v4973_v44 = vsel %vm69_vm0, %v6825_v46, 0.0  ;;  %5614 = vmatprep.subr.bf16.mxu1 %v5807_v16 }
0x130e   :  { %4974 = vadd.xlane.f32.xlu0 %v4973_v44 }
0x130f   :  { %v4976_v2 = vsel %vm69_vm0, %v6828_v39, 0.0 }
0x1310   :  { %4977 = vadd.xlane.f32.xlu1 %v4976_v2 }
0x1314   :  { %5615 = vmatpush3.bf16.xpose.msra.mxu1 %v5043_v48 }
0x1315   :  { %5616 = vmatprep.subr.bf16.mxu1 %v5807_v16 }
0x131c   :  { %5617 = vmatpush3.bf16.xpose.msra.mxu1 %v5046_v6 }
0x131d   :  { %5618 = vmatprep.subr.bf16.mxu1 %v5807_v16 }
0x1324   :  { %5619 = vmatpush3.bf16.xpose.msra.mxu1 %v5049_v58 }
0x139b   :  { %v4975_v52 = vpop.xlane.xlu0 %4974 }
0x139c   :  { %v4979_v35 = vmul.f32 0.03125, %v4975_v52 }
0x139d   :  { %v4978_v43 = vpop.xlane.xlu1 %4977 }
0x139e   :  { %v4981_v36 = vsub.f32 %v6825_v46, %v4979_v35  ;;  %v4980_v20 = vmul.f32 0.03125, %v4978_v43 }
0x13a0   :  { %v4982_v32 = vsub.f32 %v6828_v39, %v4980_v20  ;;  %v4983_v53 = vmul.f32 %v4981_v36, %v4981_v36 }
0x13a2   :  { %v4985_v22 = vsel %vm69_vm0, %v4983_v53, 0.0  ;;  %v4984_v40 = vmul.f32 %v4982_v32, %v4982_v32 }
0x13a3   :  { %4986 = vadd.xlane.f32.xlu0 %v4985_v22 }
0x13a4   :  { %v4988_v62 = vsel %vm69_vm0, %v4984_v40, 0.0 }
0x13a7   :  { %4989 = vadd.xlane.f32.xlu0 %v4988_v62 }
0x1430   :  { %v4987_v42 = vpop.xlane.xlu0 %4986 }
0x1431   :  { %v4991_v21 = vmul.f32 0.03125, %v4987_v42 }
0x1433   :  { %v4993_v57 = vadd.f32 1e-05, %v4991_v21 }
0x1434   :  { %v4990_v1 = vpop.xlane.xlu0 %4989 }
0x1435   :  { %5771 = vrsqrt.f32 %v4993_v57  ;;  %v4992_v15 = vmul.f32 0.03125, %v4990_v1 }
0x1437   :  { %v4994_v47 = vadd.f32 1e-05, %v4992_v15 }
0x1439   :  { %5773 = vrsqrt.f32 %v4994_v47 }
0x143f   :  { %v5772_v27 = vpop.eup %5771 }
0x1440   :  { %v4997_v8 = vmul.f32 %v5772_v27, %v4981_v36 }
0x1442   :  { %v5003_v49 = vmul.f32 %v5002_v5, %v4997_v8 }
0x1443   :  { %v5774_v29 = vpop.eup %5773 }
0x1444   :  { %v4998_v56 = vmul.f32 %v5774_v29, %v4982_v32  ;;  %v5009_v31 = vadd.f32 %v5008_v13, %v5003_v49 }
0x1446   :  { %v5004_v50 = vmul.f32 %v5002_v5, %v4998_v56 }
0x1448   :  { %v5010_v19 = vadd.f32 %v5008_v13, %v5004_v50 }
0x144a   :  { %v5011_v45 = vpack.c.bf16 %v5010_v19, %v5009_v31 }
0x144c   :  { %5621 = vmatmul.mubr.msk.bf16.vlgmr.msra.gmra.mrb[80].mxu1 %vm69_vm0, %v5011_v45 }
0x151f   :  { %v5085_v7 = vpop.f32.mrb[80].mxu1 }
0x1520   :  { %v5086_v28 = vadd.f32 %v5085_v7, %v5015_v33  ;;  %v5622_v60 = vpop.f32.mrb[81].mxu1 }
0x1521   :  { %v5088_v55 = vpop.f32.mrb[82].mxu1 }
0x1522   :  { %v5094_v61 = vmul.f32 0.70710677, %v5086_v28  ;;  %v5089_v51 = vadd.f32 %v5088_v55, %v5015_v33  ;;  %v5623_v63 = vpop.f32.mrb[83].mxu1  ;;  %v5092_v59 = vmul.f32 0.5, %v5086_v28 }
0x1524   :  { %5775 = verf.f32 %v5094_v61  ;;  %v5095_v14 = vmul.f32 0.70710677, %v5089_v51  ;;  %v5093_v0 = vmul.f32 0.5, %v5089_v51 }
0x1526   :  { %5777 = verf.f32 %v5095_v14 }
0x152e   :  { %v5776_v16 = vpop.eup %5775 }
0x152f   :  { %v5098_v54 = vadd.f32 1.0, %v5776_v16 }
0x1530   :  { %v5778_v26 = vpop.eup %5777 }
0x1531   :  { %v5099_v10 = vadd.f32 1.0, %v5778_v26  ;;  %v5100_v23 = vmul.f32 %v5098_v54, %v5092_v59 }
0x1533   :  { %v5101_v18 = vmul.f32 %v5099_v10, %v5093_v0 }
0x1535   :  { %v5102_v44 = vpack.c.bf16 %v5101_v18, %v5100_v23 }
0x1537   :  { %5629 = vmatmul.mubr.msk.bf16.vlgmr.msra.gmra.mrb[80].mxu0 %vm5117_vm6, %v5102_v44 }
0x160a   :  { %v5161_v2 = vpop.f32.mrb[80].mxu0 }
0x160b   :  { %v5162_v37 = vadd.f32 %v5161_v2, %v5106_v25  ;;  %v5630_v17 = vpop.f32.mrb[81].mxu0 }
0x160c   :  { %v5164_v52 = vpop.f32.mrb[82].mxu0 }
0x160d   :  { %v5168_v35 = vadd.f32 %v5162_v37, %v6825_v46  ;;  %v5165_v43 = vadd.f32 %v5164_v52, %v5106_v25  ;;  %v5631_v36 = vpop.f32.mrb[83].mxu0 }
0x160f   :  { %5170 = vst.msk [vmem:[#allocation2] sm:$0xff] %vm69_vm0, %v5168_v35  ;;  %v5169_v20 = vadd.f32 %v5165_v43, %v6828_v39 }
0x1611   :  { %5171 = vst.msk [vmem:[#allocation2 + $0x8] sm:$0xff] %vm69_vm0, %v5169_v20 }
0x1612   :  { %5794 = shalt.err (!%p5791_p4)
}
0x1613   :  { %s5795_s13 = scalar_lea.hbm %s6900_s4, 256 }
0x1614   :  { %p5796_p5 = scmp.ne.s32.totalorder %s6900_s4, %s5795_s13  ;;  %p5799_p6 = scmp.lt.u32.totalorder %s5795_s13, %s6900_s4 }
0x1616   :  { %p5801_p7 = pnand %p5799_p6, %p5796_p5 }
0x1618   :  { %5804 = shalt.err (!%p5801_p7)
}
0x1619   :  { %s5821_s9 = smov 128  }
0x161a   :  { %5183 = dma.vmem_to_hbm [thread:$0]  %s5178_s1, 256, %s6900_s4, [#allocation3], %s5821_s9, %s5821_s9, %s5818_s17  }
0x161b   :  { %5805 = dma.done.wait [#allocation3], 256  }
0x161c   :  { %5806 = vsyncadd [#allocation3], 4294967040 }
0x161d   :  { %5187 = vsyncpa [#allocation3], 1 }

</bundles_post_ra>
